<compile_context>
chip_gen: v6e
topology: v6e:2x2x1
jax: 0.10.0
libtpu: 0.0.40
codegen_flags: <defaults>
</compile_context>

<pallas_src>
import jax
import jax.numpy as jnp
import numpy as np
from jax import lax
from jax.experimental import pallas as pl
from jax.experimental.pallas import tpu as pltpu

C_IN = 23
C_IN_PAD = 24        # input channels padded to a sublane multiple
SEQ = 71             # nn.Linear(71, out_dim) fixes the sequence length
T_PAD = 128          # time padded to one full lane tile per batch element
OUT_DIM = 34
OUT_PAD = 128        # head output columns padded to a full lane tile
N_FEAT = 32          # channels coming out of the conv stack
LRELU_SLOPE = 0.3
BN_EPS = 1e-5
LN_EPS = 1e-5


def _encoder_kernel(x_ref, w1_ref, w2_ref, w3_ref, w4_ref, cs_ref,
                    lw1_ref, lw2_ref, hv_ref, o_ref):
    x = x_ref[0]                           # (C_IN_PAD, bt*T_PAD)
    n = x.shape[-1]                        # bt * T_PAD (static)
    bt = o_ref.shape[0] // N_FEAT          # static

    # lanes [0, SEQ) of every 128-wide batch segment are valid time steps
    lane = lax.broadcasted_iota(jnp.int32, (1, n), 1)
    valid = (lane % T_PAD) < SEQ           # (1, n) bool

    def lrelu(h):
        return jnp.where(h >= 0, h, LRELU_SLOPE * h)

    def conv3(h, w_ref, co):
        # Conv1d(k=3, stride=1, pad=1) as THREE accumulated MXU dots on the
        # +/-1 shifted activations (no 3x concatenated-activation copy).
        # pltpu.roll follows jnp.roll semantics; the wrapped column lands in
        # the zeroed lane-pad region, which realises the conv's zero padding
        # at both segment boundaries.
        w = w_ref[...]                     # (3*co, ci): [w_{t-1}; w_t; w_{t+1}]
        hp = pltpu.roll(h, 1, 1)           # hp[:, t] = h[:, t-1]
        hn = pltpu.roll(h, n - 1, 1)       # hn[:, t] = h[:, t+1]
        acc = jnp.dot(w[0:co], hp, preferred_element_type=jnp.float32)
        acc = acc + jnp.dot(w[co:2 * co], h, preferred_element_type=jnp.float32)
        acc = acc + jnp.dot(w[2 * co:3 * co], hn,
                            preferred_element_type=jnp.float32)
        return acc

    # packed per-channel constants: col 0 = scale, col 1 = shift
    cs = cs_ref[...]                       # (160, 2)
    a1, c1 = cs[0:32, 0:1], cs[0:32, 1:2]
    a2, c2 = cs[32:96, 0:1], cs[32:96, 1:2]
    a3, c3 = cs[96:128, 0:1], cs[96:128, 1:2]
    c4 = cs[128:160, 1:2]

    # conv stack; the time-pad region is re-zeroed after every activation so
    # the roll wrap never leaks neighbouring batches into t=0 / t=70.
    h = jnp.where(valid, lrelu(conv3(x, w1_ref, 32) * a1 + c1), 0.0)
    h = jnp.where(valid, lrelu(conv3(h, w2_ref, 64) * a2 + c2), 0.0)
    h = jnp.where(valid, lrelu(conv3(h, w3_ref, 32) * a3 + c3), 0.0)
    h = conv3(h, w4_ref, 32) + c4          # (32, bt*T_PAD), pad region garbage

    # ---- fused head over all bt batch elements ----
    # regroup (32, bt*128) -> (bt*32, 128): lane-aligned slices, sublane concat
    hb = jnp.concatenate(
        [h[:, b * T_PAD:(b + 1) * T_PAD] for b in range(bt)], axis=0)

    hv = hv_ref[...]                       # (8, 128) packed head vectors
    lb1, gam, bet, lb2 = hv[0:1, :], hv[1:2, :], hv[2:3, :], hv[3:4, :]

    # Linear(71->34): lw1 is zero-padded over rows 71..127 (kills the conv
    # pad-region garbage) and over output columns 34..127 (lane-dense output).
    y = jnp.dot(hb, lw1_ref[...], preferred_element_type=jnp.float32) + lb1

    # LayerNorm over exactly the 34 valid columns
    col = lax.broadcasted_iota(jnp.int32, (1, OUT_PAD), 1)
    cmask = col < OUT_DIM
    inv = 1.0 / OUT_DIM
    mu = jnp.sum(jnp.where(cmask, y, 0.0), axis=-1, keepdims=True) * inv
    d = jnp.where(cmask, y - mu, 0.0)
    var = jnp.sum(d * d, axis=-1, keepdims=True) * inv
    y = d * lax.rsqrt(var + LN_EPS) * gam + bet
    y = lrelu(y)

    # Linear(34->34), zero-padded to (128, 128); pad columns stay exactly 0
    y = jnp.dot(y, lw2_ref[...], preferred_element_type=jnp.float32) + lb2
    o_ref[...] = y                          # single lane-dense store


def _tpu_has_two_tensorcores():
    try:
        kind = jax.devices()[0].device_kind.lower()
    except Exception:
        return False
    return "v7" in kind                    # v7x: 2 TensorCores per chip


def _default_batch_tile(B):
    if _tpu_has_two_tensorcores():
        # two balanced fat grid steps on v7x (one per TensorCore); lower VMEM cap
        return max(1, min(32, (B + 1) // 2))
    # single TensorCore (v5e / v6e): one fat grid step, capped for VMEM
    return max(1, min(64, B))


def wav_encoder_v2(x, kernel_params, *, batch_tile=None):
    """x: (B, 71, 23) float32  ->  (B, 34, 32) float32."""
    B = x.shape[0]
    bt = batch_tile if batch_tile is not None else _default_batch_tile(B)
    bt = max(1, min(bt, B))
    steps = -(-B // bt)
    b_pad = steps * bt

    # (B, 71, 23) -> (steps, C_IN_PAD, bt*T_PAD): channels on sublanes,
    # batch-major zero-padded time packed along lanes.
    x_ct = jnp.transpose(x, (0, 2, 1)).astype(jnp.float32)          # (B, 23, 71)
    x_ct = jnp.pad(x_ct, ((0, b_pad - B), (0, C_IN_PAD - C_IN),
                          (0, T_PAD - SEQ)))
    x_ct = x_ct.reshape(steps, bt, C_IN_PAD, T_PAD)
    x_ct = jnp.transpose(x_ct, (0, 2, 1, 3)).reshape(steps, C_IN_PAD,
                                                     bt * T_PAD)

    def const_spec(arr):
        nd = arr.ndim
        return pl.BlockSpec(arr.shape, lambda g, _nd=nd: (0,) * _nd)

    in_specs = ([pl.BlockSpec((1, C_IN_PAD, bt * T_PAD), lambda g: (g, 0, 0))]
                + [const_spec(p) for p in kernel_params])
    out_specs = pl.BlockSpec((bt * N_FEAT, OUT_PAD), lambda g: (g, 0))

    # advisory cost estimate so XLA schedules this small custom call sensibly
    conv_flops = 2 * T_PAD * (32 * 3 * C_IN_PAD + 64 * 3 * 32
                              + 32 * 3 * 64 + 32 * 3 * 32)
    head_flops = 2 * (N_FEAT * T_PAD * OUT_PAD + N_FEAT * OUT_PAD * OUT_PAD)
    param_bytes = sum(int(np.prod(p.shape)) * 4 for p in kernel_params)
    cost = pl.CostEstimate(
        flops=(conv_flops + head_flops) * b_pad,
        transcendentals=N_FEAT * b_pad,
        bytes_accessed=(C_IN_PAD * T_PAD + N_FEAT * OUT_PAD) * 4 * b_pad
        + param_bytes)

    # single-TC path may use bt=64 -> raise the scoped VMEM limit explicitly;
    # v7x (64 MiB physical) keeps the default with its lower bt cap.
    vmem_limit = None if _tpu_has_two_tensorcores() else 64 * 1024 * 1024

    out = pl.pallas_call(
        _encoder_kernel,
        out_shape=jax.ShapeDtypeStruct((b_pad * N_FEAT, OUT_PAD), jnp.float32),
        grid_spec=pltpu.PrefetchScalarGridSpec(
            num_scalar_prefetch=0,
            grid=(steps,),
            in_specs=in_specs,
            out_specs=out_specs),
        compiler_params=pltpu.CompilerParams(
            dimension_semantics=("parallel",),
            vmem_limit_bytes=vmem_limit),
        cost_estimate=cost,
    )(x_ct, *kernel_params)

    # unpad + final transpose on the host side (fused by XLA when jitted
    # together with the kernel call)
    out = out.reshape(b_pad, N_FEAT, OUT_PAD)[:B, :, :OUT_DIM]       # (B, 32, 34)
    return jnp.transpose(out, (0, 2, 1))                             # (B, 34, 32)


# ----------------------------------------------------------------------------
# Deterministic parameter construction (synthetic; no checkpoint load)
# ----------------------------------------------------------------------------
def init_raw_params(key):
    ks = iter(jax.random.split(key, 32))

    def nrm(shape, scale):
        return scale * jax.random.normal(next(ks), shape, dtype=jnp.float32)

    def unif(shape, lo, hi):
        return jax.random.uniform(next(ks), shape, jnp.float32, lo, hi)

    raw = {}
    chans = [(C_IN, 32), (32, 64), (64, 32), (32, 32)]
    for li, (ci, co) in enumerate(chans):
        raw[f"conv{li}_w"] = nrm((co, ci, 3), 0.3 / np.sqrt(ci * 3))
        raw[f"conv{li}_b"] = nrm((co,), 0.05)
    for li, co in enumerate([32, 64, 32]):
        raw[f"bn{li}_gamma"] = unif((co,), 0.8, 1.2)
        raw[f"bn{li}_beta"] = nrm((co,), 0.05)
        raw[f"bn{li}_mean"] = nrm((co,), 0.05)
        raw[f"bn{li}_var"] = unif((co,), 0.5, 1.5)
    raw["lin0_w"] = nrm((OUT_DIM, SEQ), 1.0 / np.sqrt(SEQ))
    raw["lin0_b"] = nrm((OUT_DIM,), 0.05)
    raw["ln_gamma"] = unif((OUT_DIM,), 0.8, 1.2)
    raw["ln_beta"] = nrm((OUT_DIM,), 0.05)
    raw["lin1_w"] = nrm((OUT_DIM, OUT_DIM), 1.0 / np.sqrt(OUT_DIM))
    raw["lin1_b"] = nrm((OUT_DIM,), 0.05)
    return raw


def pack_kernel_params(raw):
    conv_ws = []
    cs_rows = []
    for li in range(4):
        w = raw[f"conv{li}_w"]                      # (co, ci, 3) PyTorch layout
        if li == 0:
            w = jnp.pad(w, ((0, 0), (0, C_IN_PAD - C_IN), (0, 0)))
        co = w.shape[0]
        # stack the 3 taps along sublanes: rows [0:co]=w_{t-1}, [co:2co]=w_t,
        # [2co:3co]=w_{t+1}  (sublane slices inside the kernel are aligned)
        wk = jnp.concatenate([w[:, :, 0], w[:, :, 1], w[:, :, 2]], axis=0)
        conv_ws.append(wk)
        b = raw[f"conv{li}_b"]
        if li < 3:
            scale = raw[f"bn{li}_gamma"] / jnp.sqrt(raw[f"bn{li}_var"] + BN_EPS)
            shift = (b - raw[f"bn{li}_mean"]) * scale + raw[f"bn{li}_beta"]
        else:
            scale = jnp.ones((co,), jnp.float32)
            shift = b
        cs_rows.append(jnp.stack([scale, shift], axis=1))   # (co, 2)
    cs_pack = jnp.concatenate(cs_rows, axis=0)               # (160, 2)

    # head weights zero-padded to lane-dense (128, 128)
    lw1 = jnp.zeros((T_PAD, OUT_PAD), jnp.float32)
    lw1 = lw1.at[:SEQ, :OUT_DIM].set(raw["lin0_w"].T)
    lw2 = jnp.zeros((OUT_PAD, OUT_PAD), jnp.float32)
    lw2 = lw2.at[:OUT_DIM, :OUT_DIM].set(raw["lin1_w"].T)

    # packed head vectors: row 0 = lin0 bias, 1 = LN gamma, 2 = LN beta,
    # 3 = lin1 bias; zero in columns [34, 128)
    hv = jnp.zeros((8, OUT_PAD), jnp.float32)
    hv = hv.at[0, :OUT_DIM].set(raw["lin0_b"])
    hv = hv.at[1, :OUT_DIM].set(raw["ln_gamma"])
    hv = hv.at[2, :OUT_DIM].set(raw["ln_beta"])
    hv = hv.at[3, :OUT_DIM].set(raw["lin1_b"])

    return tuple(conv_ws) + (cs_pack, lw1, lw2, hv)


# ----------------------------------------------------------------------------
# Pure-JAX reference (mirrors the PyTorch forward, eval-mode BN)
# ----------------------------------------------------------------------------
def reference_forward(x, raw):
    h = jnp.transpose(x, (0, 2, 1))             # (B, 23, 71)
    hp = lax.Precision.HIGHEST
    for li in range(4):
        w = raw[f"conv{li}_w"]
        b = raw[f"conv{li}_b"]
        h = lax.conv_general_dilated(
            h, w, window_strides=(1,), padding=((1, 1),),
            dimension_numbers=("NCH", "OIH", "NCH"), precision=hp)
        h = h + b[None, :, None]
        if li < 3:
            scale = raw[f"bn{li}_gamma"] / jnp.sqrt(raw[f"bn{li}_var"] + BN_EPS)
            h = ((h - raw[f"bn{li}_mean"][None, :, None]) * scale[None, :, None]
                 + raw[f"bn{li}_beta"][None, :, None])
            h = jnp.where(h >= 0, h, LRELU_SLOPE * h)
    y = jnp.einsum("bct,ot->bco", h, raw["lin0_w"], precision=hp) + raw["lin0_b"]
    mu = jnp.mean(y, axis=-1, keepdims=True)
    var = jnp.mean((y - mu) ** 2, axis=-1, keepdims=True)
    y = (y - mu) / jnp.sqrt(var + LN_EPS) * raw["ln_gamma"] + raw["ln_beta"]
    y = jnp.where(y >= 0, y, LRELU_SLOPE * y)
    y = jnp.einsum("bco,po->bcp", y, raw["lin1_w"], precision=hp) + raw["lin1_b"]
    return jnp.transpose(y, (0, 2, 1))          # (B, 34, 32)


if __name__ == "__main__":
    B = 4
    x = jax.random.normal(jax.random.PRNGKey(0), (B, SEQ, C_IN),
                          dtype=jnp.float32)

    raw = init_raw_params(jax.random.PRNGKey(42))
    kernel_params = pack_kernel_params(raw)

    # keep host-side layout ops in the same jit as the pallas_call
    fwd = jax.jit(lambda xx: wav_encoder_v2(xx, kernel_params))
    out = jax.block_until_ready(fwd(x))
    assert out.shape == (B, OUT_DIM, N_FEAT), out.shape

    ref = reference_forward(x, raw)
    np.testing.assert_allclose(np.asarray(out), np.asarray(ref),
                               rtol=5e-3, atol=5e-3)
    print("KERNEL_OK")
</pallas_src>

<mosaic_0001>
module attributes {stable_mosaic.version = 11 : i64} {
  func.func @_encoder_kernel(%arg0: i32, %arg1: memref<1x24x512xf32, #tpu.memory_space<vmem>>, %arg2: memref<96x24xf32, #tpu.memory_space<vmem>>, %arg3: memref<192x32xf32, #tpu.memory_space<vmem>>, %arg4: memref<96x64xf32, #tpu.memory_space<vmem>>, %arg5: memref<96x32xf32, #tpu.memory_space<vmem>>, %arg6: memref<160x2xf32, #tpu.memory_space<vmem>>, %arg7: memref<128x128xf32, #tpu.memory_space<vmem>>, %arg8: memref<128x128xf32, #tpu.memory_space<vmem>>, %arg9: memref<8x128xf32, #tpu.memory_space<vmem>>, %arg10: memref<128x128xf32, #tpu.memory_space<vmem>>) attributes {dimension_semantics = [#tpu.dimension_semantics<parallel>], iteration_bounds = array<i64: 1>, scalar_prefetch = 0 : i64, scratch_operands = 0 : i64, tpu.core_type = #tpu.core_type<tc>, window_params = [{transform_indices = @transform_0, window_bounds = array<i64: 1, 24, 512>}, {pipeline_mode = #tpu.pipeline_mode<synchronous>, transform_indices = @transform_1, window_bounds = array<i64: 96, 24>}, {pipeline_mode = #tpu.pipeline_mode<synchronous>, transform_indices = @transform_2, window_bounds = array<i64: 192, 32>}, {pipeline_mode = #tpu.pipeline_mode<synchronous>, transform_indices = @transform_3, window_bounds = array<i64: 96, 64>}, {pipeline_mode = #tpu.pipeline_mode<synchronous>, transform_indices = @transform_4, window_bounds = array<i64: 96, 32>}, {pipeline_mode = #tpu.pipeline_mode<synchronous>, transform_indices = @transform_5, window_bounds = array<i64: 160, 2>}, {pipeline_mode = #tpu.pipeline_mode<synchronous>, transform_indices = @transform_6, window_bounds = array<i64: 128, 128>}, {pipeline_mode = #tpu.pipeline_mode<synchronous>, transform_indices = @transform_7, window_bounds = array<i64: 128, 128>}, {pipeline_mode = #tpu.pipeline_mode<synchronous>, transform_indices = @transform_8, window_bounds = array<i64: 8, 128>}, {transform_indices = @transform_9, window_bounds = array<i64: 128, 128>}]} {
    %c0 = arith.constant 0 : index
    %c0_0 = arith.constant 0 : index
    %c0_1 = arith.constant 0 : index
    %0 = vector.load %arg1[%c0, %c0_0, %c0_1] : memref<1x24x512xf32, #tpu.memory_space<vmem>>, vector<1x24x512xf32>
    %1 = vector.shape_cast %0 : vector<1x24x512xf32> to vector<24x512xf32>
    %2 = tpu.iota {dimensions = array<i32: 1>} : vector<1x512xi32>
    %c128_i32 = arith.constant 128 : i32
    %c0_i32 = arith.constant 0 : i32
    %3 = arith.cmpi eq, %c128_i32, %c0_i32 : i32
    %c1_i32 = arith.constant 1 : i32
    %4 = arith.select %3, %c1_i32, %c128_i32 : i32
    %5 = vector.broadcast %4 : i32 to vector<1x512xi32>
    %6 = arith.remsi %2, %5 : vector<1x512xi32>
    %c0_i32_2 = arith.constant 0 : i32
    %7 = vector.broadcast %c0_i32_2 : i32 to vector<1x512xi32>
    %8 = arith.cmpi ne, %6, %7 : vector<1x512xi32>
    %c0_i32_3 = arith.constant 0 : i32
    %9 = vector.broadcast %c0_i32_3 : i32 to vector<1x512xi32>
    %10 = arith.cmpi slt, %6, %9 : vector<1x512xi32>
    %c0_i32_4 = arith.constant 0 : i32
    %11 = arith.cmpi slt, %4, %c0_i32_4 : i32
    %12 = vector.broadcast %11 : i1 to vector<1x512xi1>
    %13 = vector.broadcast %12 : vector<1x512xi1> to vector<1x512xi1>
    %14 = arith.xori %10, %13 : vector<1x512xi1>
    %15 = arith.andi %14, %8 : vector<1x512xi1>
    %16 = vector.broadcast %4 : i32 to vector<1x512xi32>
    %17 = arith.addi %6, %16 : vector<1x512xi32>
    %18 = arith.select %15, %17, %6 : vector<1x512xi1>, vector<1x512xi32>
    %c71_i32 = arith.constant 71 : i32
    %19 = vector.broadcast %c71_i32 : i32 to vector<1x512xi32>
    %20 = arith.cmpi slt, %18, %19 : vector<1x512xi32>
    %c0_5 = arith.constant 0 : index
    %c0_6 = arith.constant 0 : index
    %21 = vector.load %arg6[%c0_5, %c0_6] : memref<160x2xf32, #tpu.memory_space<vmem>>, vector<160x2xf32>
    %22 = vector.extract_strided_slice %21 {offsets = [0, 0], sizes = [32, 1], strides = [1, 1]} : vector<160x2xf32> to vector<32x1xf32>
    %23 = vector.extract_strided_slice %21 {offsets = [0, 1], sizes = [32, 1], strides = [1, 1]} : vector<160x2xf32> to vector<32x1xf32>
    %24 = vector.extract_strided_slice %21 {offsets = [32, 0], sizes = [64, 1], strides = [1, 1]} : vector<160x2xf32> to vector<64x1xf32>
    %25 = vector.extract_strided_slice %21 {offsets = [32, 1], sizes = [64, 1], strides = [1, 1]} : vector<160x2xf32> to vector<64x1xf32>
    %26 = vector.extract_strided_slice %21 {offsets = [96, 0], sizes = [32, 1], strides = [1, 1]} : vector<160x2xf32> to vector<32x1xf32>
    %27 = vector.extract_strided_slice %21 {offsets = [96, 1], sizes = [32, 1], strides = [1, 1]} : vector<160x2xf32> to vector<32x1xf32>
    %28 = vector.extract_strided_slice %21 {offsets = [128, 1], sizes = [32, 1], strides = [1, 1]} : vector<160x2xf32> to vector<32x1xf32>
    %c0_7 = arith.constant 0 : index
    %c0_8 = arith.constant 0 : index
    %29 = vector.load %arg2[%c0_7, %c0_8] : memref<96x24xf32, #tpu.memory_space<vmem>>, vector<96x24xf32>
    %c1_i32_9 = arith.constant 1 : i32
    %30 = tpu.dynamic_rotate %1 by %c1_i32_9 dim 1 : vector<24x512xf32>, i32 -> vector<24x512xf32>
    %c511_i32 = arith.constant 511 : i32
    %31 = tpu.dynamic_rotate %1 by %c511_i32 dim 1 : vector<24x512xf32>, i32 -> vector<24x512xf32>
    %32 = vector.extract_strided_slice %29 {offsets = [0, 0], sizes = [32, 24], strides = [1, 1]} : vector<96x24xf32> to vector<32x24xf32>
    %cst = arith.constant dense<0.000000e+00> : vector<32x512xf32>
    %33 = tpu.matmul %32, %30, %cst {dimension_numbers = #tpu.dot_dimension_numbers<[1], [0], [0], [1], [0, 0, 1, 1], [], []>} : vector<32x24xf32>, vector<24x512xf32>, vector<32x512xf32> -> vector<32x512xf32>
    %34 = vector.extract_strided_slice %29 {offsets = [32, 0], sizes = [32, 24], strides = [1, 1]} : vector<96x24xf32> to vector<32x24xf32>
    %cst_10 = arith.constant dense<0.000000e+00> : vector<32x512xf32>
    %35 = tpu.matmul %34, %1, %cst_10 {dimension_numbers = #tpu.dot_dimension_numbers<[1], [0], [0], [1], [0, 0, 1, 1], [], []>} : vector<32x24xf32>, vector<24x512xf32>, vector<32x512xf32> -> vector<32x512xf32>
    %36 = arith.addf %33, %35 : vector<32x512xf32>
    %37 = vector.extract_strided_slice %29 {offsets = [64, 0], sizes = [32, 24], strides = [1, 1]} : vector<96x24xf32> to vector<32x24xf32>
    %cst_11 = arith.constant dense<0.000000e+00> : vector<32x512xf32>
    %38 = tpu.matmul %37, %31, %cst_11 {dimension_numbers = #tpu.dot_dimension_numbers<[1], [0], [0], [1], [0, 0, 1, 1], [], []>} : vector<32x24xf32>, vector<24x512xf32>, vector<32x512xf32> -> vector<32x512xf32>
    %39 = arith.addf %36, %38 : vector<32x512xf32>
    %40 = vector.broadcast %22 : vector<32x1xf32> to vector<32x512xf32>
    %41 = arith.mulf %39, %40 : vector<32x512xf32>
    %42 = vector.broadcast %23 : vector<32x1xf32> to vector<32x512xf32>
    %43 = arith.addf %41, %42 : vector<32x512xf32>
    %cst_12 = arith.constant 0.000000e+00 : f32
    %44 = vector.broadcast %cst_12 : f32 to vector<32x512xf32>
    %45 = arith.cmpf oge, %43, %44 : vector<32x512xf32>
    %cst_13 = arith.constant 3.000000e-01 : f32
    %46 = vector.broadcast %cst_13 : f32 to vector<32x512xf32>
    %47 = arith.mulf %46, %43 : vector<32x512xf32>
    %48 = arith.select %45, %43, %47 : vector<32x512xi1>, vector<32x512xf32>
    %cst_14 = arith.constant 0.000000e+00 : f32
    %49 = vector.shape_cast %20 : vector<1x512xi1> to vector<1x512xi1>
    %50 = vector.broadcast %49 : vector<1x512xi1> to vector<32x512xi1>
    %51 = vector.broadcast %cst_14 : f32 to vector<32x512xf32>
    %52 = arith.select %50, %48, %51 : vector<32x512xi1>, vector<32x512xf32>
    %c0_15 = arith.constant 0 : index
    %c0_16 = arith.constant 0 : index
    %53 = vector.load %arg3[%c0_15, %c0_16] : memref<192x32xf32, #tpu.memory_space<vmem>>, vector<192x32xf32>
    %c1_i32_17 = arith.constant 1 : i32
    %54 = tpu.dynamic_rotate %52 by %c1_i32_17 dim 1 : vector<32x512xf32>, i32 -> vector<32x512xf32>
    %c511_i32_18 = arith.constant 511 : i32
    %55 = tpu.dynamic_rotate %52 by %c511_i32_18 dim 1 : vector<32x512xf32>, i32 -> vector<32x512xf32>
    %56 = vector.extract_strided_slice %53 {offsets = [0, 0], sizes = [64, 32], strides = [1, 1]} : vector<192x32xf32> to vector<64x32xf32>
    %cst_19 = arith.constant dense<0.000000e+00> : vector<64x512xf32>
    %57 = tpu.matmul %56, %54, %cst_19 {dimension_numbers = #tpu.dot_dimension_numbers<[1], [0], [0], [1], [0, 0, 1, 1], [], []>} : vector<64x32xf32>, vector<32x512xf32>, vector<64x512xf32> -> vector<64x512xf32>
    %58 = vector.extract_strided_slice %53 {offsets = [64, 0], sizes = [64, 32], strides = [1, 1]} : vector<192x32xf32> to vector<64x32xf32>
    %cst_20 = arith.constant dense<0.000000e+00> : vector<64x512xf32>
    %59 = tpu.matmul %58, %52, %cst_20 {dimension_numbers = #tpu.dot_dimension_numbers<[1], [0], [0], [1], [0, 0, 1, 1], [], []>} : vector<64x32xf32>, vector<32x512xf32>, vector<64x512xf32> -> vector<64x512xf32>
    %60 = arith.addf %57, %59 : vector<64x512xf32>
    %61 = vector.extract_strided_slice %53 {offsets = [128, 0], sizes = [64, 32], strides = [1, 1]} : vector<192x32xf32> to vector<64x32xf32>
    %cst_21 = arith.constant dense<0.000000e+00> : vector<64x512xf32>
    %62 = tpu.matmul %61, %55, %cst_21 {dimension_numbers = #tpu.dot_dimension_numbers<[1], [0], [0], [1], [0, 0, 1, 1], [], []>} : vector<64x32xf32>, vector<32x512xf32>, vector<64x512xf32> -> vector<64x512xf32>
    %63 = arith.addf %60, %62 : vector<64x512xf32>
    %64 = vector.broadcast %24 : vector<64x1xf32> to vector<64x512xf32>
    %65 = arith.mulf %63, %64 : vector<64x512xf32>
    %66 = vector.broadcast %25 : vector<64x1xf32> to vector<64x512xf32>
    %67 = arith.addf %65, %66 : vector<64x512xf32>
    %cst_22 = arith.constant 0.000000e+00 : f32
    %68 = vector.broadcast %cst_22 : f32 to vector<64x512xf32>
    %69 = arith.cmpf oge, %67, %68 : vector<64x512xf32>
    %cst_23 = arith.constant 3.000000e-01 : f32
    %70 = vector.broadcast %cst_23 : f32 to vector<64x512xf32>
    %71 = arith.mulf %70, %67 : vector<64x512xf32>
    %72 = arith.select %69, %67, %71 : vector<64x512xi1>, vector<64x512xf32>
    %cst_24 = arith.constant 0.000000e+00 : f32
    %73 = vector.shape_cast %20 : vector<1x512xi1> to vector<1x512xi1>
    %74 = vector.broadcast %73 : vector<1x512xi1> to vector<64x512xi1>
    %75 = vector.broadcast %cst_24 : f32 to vector<64x512xf32>
    %76 = arith.select %74, %72, %75 : vector<64x512xi1>, vector<64x512xf32>
    %c0_25 = arith.constant 0 : index
    %c0_26 = arith.constant 0 : index
    %77 = vector.load %arg4[%c0_25, %c0_26] : memref<96x64xf32, #tpu.memory_space<vmem>>, vector<96x64xf32>
    %c1_i32_27 = arith.constant 1 : i32
    %78 = tpu.dynamic_rotate %76 by %c1_i32_27 dim 1 : vector<64x512xf32>, i32 -> vector<64x512xf32>
    %c511_i32_28 = arith.constant 511 : i32
    %79 = tpu.dynamic_rotate %76 by %c511_i32_28 dim 1 : vector<64x512xf32>, i32 -> vector<64x512xf32>
    %80 = vector.extract_strided_slice %77 {offsets = [0, 0], sizes = [32, 64], strides = [1, 1]} : vector<96x64xf32> to vector<32x64xf32>
    %cst_29 = arith.constant dense<0.000000e+00> : vector<32x512xf32>
    %81 = tpu.matmul %80, %78, %cst_29 {dimension_numbers = #tpu.dot_dimension_numbers<[1], [0], [0], [1], [0, 0, 1, 1], [], []>} : vector<32x64xf32>, vector<64x512xf32>, vector<32x512xf32> -> vector<32x512xf32>
    %82 = vector.extract_strided_slice %77 {offsets = [32, 0], sizes = [32, 64], strides = [1, 1]} : vector<96x64xf32> to vector<32x64xf32>
    %cst_30 = arith.constant dense<0.000000e+00> : vector<32x512xf32>
    %83 = tpu.matmul %82, %76, %cst_30 {dimension_numbers = #tpu.dot_dimension_numbers<[1], [0], [0], [1], [0, 0, 1, 1], [], []>} : vector<32x64xf32>, vector<64x512xf32>, vector<32x512xf32> -> vector<32x512xf32>
    %84 = arith.addf %81, %83 : vector<32x512xf32>
    %85 = vector.extract_strided_slice %77 {offsets = [64, 0], sizes = [32, 64], strides = [1, 1]} : vector<96x64xf32> to vector<32x64xf32>
    %cst_31 = arith.constant dense<0.000000e+00> : vector<32x512xf32>
    %86 = tpu.matmul %85, %79, %cst_31 {dimension_numbers = #tpu.dot_dimension_numbers<[1], [0], [0], [1], [0, 0, 1, 1], [], []>} : vector<32x64xf32>, vector<64x512xf32>, vector<32x512xf32> -> vector<32x512xf32>
    %87 = arith.addf %84, %86 : vector<32x512xf32>
    %88 = vector.broadcast %26 : vector<32x1xf32> to vector<32x512xf32>
    %89 = arith.mulf %87, %88 : vector<32x512xf32>
    %90 = vector.broadcast %27 : vector<32x1xf32> to vector<32x512xf32>
    %91 = arith.addf %89, %90 : vector<32x512xf32>
    %cst_32 = arith.constant 0.000000e+00 : f32
    %92 = vector.broadcast %cst_32 : f32 to vector<32x512xf32>
    %93 = arith.cmpf oge, %91, %92 : vector<32x512xf32>
    %cst_33 = arith.constant 3.000000e-01 : f32
    %94 = vector.broadcast %cst_33 : f32 to vector<32x512xf32>
    %95 = arith.mulf %94, %91 : vector<32x512xf32>
    %96 = arith.select %93, %91, %95 : vector<32x512xi1>, vector<32x512xf32>
    %cst_34 = arith.constant 0.000000e+00 : f32
    %97 = vector.shape_cast %20 : vector<1x512xi1> to vector<1x512xi1>
    %98 = vector.broadcast %97 : vector<1x512xi1> to vector<32x512xi1>
    %99 = vector.broadcast %cst_34 : f32 to vector<32x512xf32>
    %100 = arith.select %98, %96, %99 : vector<32x512xi1>, vector<32x512xf32>
    %c0_35 = arith.constant 0 : index
    %c0_36 = arith.constant 0 : index
    %101 = vector.load %arg5[%c0_35, %c0_36] : memref<96x32xf32, #tpu.memory_space<vmem>>, vector<96x32xf32>
    %c1_i32_37 = arith.constant 1 : i32
    %102 = tpu.dynamic_rotate %100 by %c1_i32_37 dim 1 : vector<32x512xf32>, i32 -> vector<32x512xf32>
    %c511_i32_38 = arith.constant 511 : i32
    %103 = tpu.dynamic_rotate %100 by %c511_i32_38 dim 1 : vector<32x512xf32>, i32 -> vector<32x512xf32>
    %104 = vector.extract_strided_slice %101 {offsets = [0, 0], sizes = [32, 32], strides = [1, 1]} : vector<96x32xf32> to vector<32x32xf32>
    %cst_39 = arith.constant dense<0.000000e+00> : vector<32x512xf32>
    %105 = tpu.matmul %104, %102, %cst_39 {dimension_numbers = #tpu.dot_dimension_numbers<[1], [0], [0], [1], [0, 0, 1, 1], [], []>} : vector<32x32xf32>, vector<32x512xf32>, vector<32x512xf32> -> vector<32x512xf32>
    %106 = vector.extract_strided_slice %101 {offsets = [32, 0], sizes = [32, 32], strides = [1, 1]} : vector<96x32xf32> to vector<32x32xf32>
    %cst_40 = arith.constant dense<0.000000e+00> : vector<32x512xf32>
    %107 = tpu.matmul %106, %100, %cst_40 {dimension_numbers = #tpu.dot_dimension_numbers<[1], [0], [0], [1], [0, 0, 1, 1], [], []>} : vector<32x32xf32>, vector<32x512xf32>, vector<32x512xf32> -> vector<32x512xf32>
    %108 = arith.addf %105, %107 : vector<32x512xf32>
    %109 = vector.extract_strided_slice %101 {offsets = [64, 0], sizes = [32, 32], strides = [1, 1]} : vector<96x32xf32> to vector<32x32xf32>
    %cst_41 = arith.constant dense<0.000000e+00> : vector<32x512xf32>
    %110 = tpu.matmul %109, %103, %cst_41 {dimension_numbers = #tpu.dot_dimension_numbers<[1], [0], [0], [1], [0, 0, 1, 1], [], []>} : vector<32x32xf32>, vector<32x512xf32>, vector<32x512xf32> -> vector<32x512xf32>
    %111 = arith.addf %108, %110 : vector<32x512xf32>
    %112 = vector.broadcast %28 : vector<32x1xf32> to vector<32x512xf32>
    %113 = arith.addf %111, %112 : vector<32x512xf32>
    %114 = vector.extract_strided_slice %113 {offsets = [0, 0], sizes = [32, 128], strides = [1, 1]} : vector<32x512xf32> to vector<32x128xf32>
    %115 = vector.extract_strided_slice %113 {offsets = [0, 128], sizes = [32, 128], strides = [1, 1]} : vector<32x512xf32> to vector<32x128xf32>
    %116 = vector.extract_strided_slice %113 {offsets = [0, 256], sizes = [32, 128], strides = [1, 1]} : vector<32x512xf32> to vector<32x128xf32>
    %117 = vector.extract_strided_slice %113 {offsets = [0, 384], sizes = [32, 128], strides = [1, 1]} : vector<32x512xf32> to vector<32x128xf32>
    %118 = tpu.concatenate %114, %115, %116, %117 in 0 : vector<32x128xf32>, vector<32x128xf32>, vector<32x128xf32>, vector<32x128xf32> -> vector<128x128xf32>
    %c0_42 = arith.constant 0 : index
    %c0_43 = arith.constant 0 : index
    %119 = vector.load %arg9[%c0_42, %c0_43] : memref<8x128xf32, #tpu.memory_space<vmem>>, vector<8x128xf32>
    %120 = vector.extract_strided_slice %119 {offsets = [0, 0], sizes = [1, 128], strides = [1, 1]} : vector<8x128xf32> to vector<1x128xf32>
    %121 = vector.extract_strided_slice %119 {offsets = [1, 0], sizes = [1, 128], strides = [1, 1]} : vector<8x128xf32> to vector<1x128xf32>
    %122 = vector.extract_strided_slice %119 {offsets = [2, 0], sizes = [1, 128], strides = [1, 1]} : vector<8x128xf32> to vector<1x128xf32>
    %123 = vector.extract_strided_slice %119 {offsets = [3, 0], sizes = [1, 128], strides = [1, 1]} : vector<8x128xf32> to vector<1x128xf32>
    %c0_44 = arith.constant 0 : index
    %c0_45 = arith.constant 0 : index
    %124 = vector.load %arg7[%c0_44, %c0_45] : memref<128x128xf32, #tpu.memory_space<vmem>>, vector<128x128xf32>
    %cst_46 = arith.constant dense<0.000000e+00> : vector<128x128xf32>
    %125 = tpu.matmul %118, %124, %cst_46 {dimension_numbers = #tpu.dot_dimension_numbers<[1], [0], [0], [1], [0, 0, 1, 1], [], []>} : vector<128x128xf32>, vector<128x128xf32>, vector<128x128xf32> -> vector<128x128xf32>
    %126 = vector.broadcast %120 : vector<1x128xf32> to vector<128x128xf32>
    %127 = arith.addf %125, %126 : vector<128x128xf32>
    %128 = tpu.iota {dimensions = array<i32: 1>} : vector<1x128xi32>
    %c34_i32 = arith.constant 34 : i32
    %129 = vector.broadcast %c34_i32 : i32 to vector<1x128xi32>
    %130 = arith.cmpi slt, %128, %129 : vector<1x128xi32>
    %cst_47 = arith.constant 0.000000e+00 : f32
    %131 = vector.shape_cast %130 : vector<1x128xi1> to vector<1x128xi1>
    %132 = vector.broadcast %131 : vector<1x128xi1> to vector<128x128xi1>
    %133 = vector.broadcast %cst_47 : f32 to vector<128x128xf32>
    %134 = arith.select %132, %127, %133 : vector<128x128xi1>, vector<128x128xf32>
    %cst_48 = arith.constant dense<0.000000e+00> : vector<128xf32>
    %135 = vector.multi_reduction <add>, %134, %cst_48 [1] : vector<128x128xf32> to vector<128xf32>
    %136 = vector.shape_cast %135 : vector<128xf32> to vector<128x1xf32>
    %cst_49 = arith.constant 0.0294117648 : f32
    %137 = vector.broadcast %cst_49 : f32 to vector<128x1xf32>
    %138 = arith.mulf %136, %137 : vector<128x1xf32>
    %139 = vector.broadcast %138 : vector<128x1xf32> to vector<128x128xf32>
    %140 = arith.subf %127, %139 : vector<128x128xf32>
    %cst_50 = arith.constant 0.000000e+00 : f32
    %141 = vector.shape_cast %130 : vector<1x128xi1> to vector<1x128xi1>
    %142 = vector.broadcast %141 : vector<1x128xi1> to vector<128x128xi1>
    %143 = vector.broadcast %cst_50 : f32 to vector<128x128xf32>
    %144 = arith.select %142, %140, %143 : vector<128x128xi1>, vector<128x128xf32>
    %145 = arith.mulf %144, %144 : vector<128x128xf32>
    %cst_51 = arith.constant dense<0.000000e+00> : vector<128xf32>
    %146 = vector.multi_reduction <add>, %145, %cst_51 [1] : vector<128x128xf32> to vector<128xf32>
    %147 = vector.shape_cast %146 : vector<128xf32> to vector<128x1xf32>
    %cst_52 = arith.constant 0.0294117648 : f32
    %148 = vector.broadcast %cst_52 : f32 to vector<128x1xf32>
    %149 = arith.mulf %147, %148 : vector<128x1xf32>
    %cst_53 = arith.constant 9.99999974E-6 : f32
    %150 = vector.broadcast %cst_53 : f32 to vector<128x1xf32>
    %151 = arith.addf %149, %150 : vector<128x1xf32>
    %152 = math.rsqrt %151 : vector<128x1xf32>
    %153 = vector.broadcast %152 : vector<128x1xf32> to vector<128x128xf32>
    %154 = arith.mulf %144, %153 : vector<128x128xf32>
    %155 = vector.broadcast %121 : vector<1x128xf32> to vector<128x128xf32>
    %156 = arith.mulf %154, %155 : vector<128x128xf32>
    %157 = vector.broadcast %122 : vector<1x128xf32> to vector<128x128xf32>
    %158 = arith.addf %156, %157 : vector<128x128xf32>
    %cst_54 = arith.constant 0.000000e+00 : f32
    %159 = vector.broadcast %cst_54 : f32 to vector<128x128xf32>
    %160 = arith.cmpf oge, %158, %159 : vector<128x128xf32>
    %cst_55 = arith.constant 3.000000e-01 : f32
    %161 = vector.broadcast %cst_55 : f32 to vector<128x128xf32>
    %162 = arith.mulf %161, %158 : vector<128x128xf32>
    %163 = arith.select %160, %158, %162 : vector<128x128xi1>, vector<128x128xf32>
    %c0_56 = arith.constant 0 : index
    %c0_57 = arith.constant 0 : index
    %164 = vector.load %arg8[%c0_56, %c0_57] : memref<128x128xf32, #tpu.memory_space<vmem>>, vector<128x128xf32>
    %cst_58 = arith.constant dense<0.000000e+00> : vector<128x128xf32>
    %165 = tpu.matmul %163, %164, %cst_58 {dimension_numbers = #tpu.dot_dimension_numbers<[1], [0], [0], [1], [0, 0, 1, 1], [], []>} : vector<128x128xf32>, vector<128x128xf32>, vector<128x128xf32> -> vector<128x128xf32>
    %166 = vector.broadcast %123 : vector<1x128xf32> to vector<128x128xf32>
    %167 = arith.addf %165, %166 : vector<128x128xf32>
    %c0_59 = arith.constant 0 : index
    %c0_60 = arith.constant 0 : index
    %168 = vector.load %arg10[%c0_59, %c0_60] : memref<128x128xf32, #tpu.memory_space<vmem>>, vector<128x128xf32>
    tpu.vector_store %arg10[%c0_59, %c0_60], %167 {strides = array<i32>} : memref<128x128xf32, #tpu.memory_space<vmem>>, vector<128x128xf32>,
    return
  }
  func.func @transform_0(%arg0: i32) -> (i32, i32, i32) {
    %c0_i32 = arith.constant 0 : i32
    %c0_i32_0 = arith.constant 0 : i32
    %c0_i32_1 = arith.constant 0 : i32
    return %arg0, %c0_i32, %c0_i32_0 : i32, i32, i32
  }
  func.func @transform_1(%arg0: i32) -> (i32, i32) {
    %c0_i32 = arith.constant 0 : i32
    %c0_i32_0 = arith.constant 0 : i32
    %c0_i32_1 = arith.constant 0 : i32
    return %c0_i32, %c0_i32_0 : i32, i32
  }
  func.func @transform_2(%arg0: i32) -> (i32, i32) {
    %c0_i32 = arith.constant 0 : i32
    %c0_i32_0 = arith.constant 0 : i32
    %c0_i32_1 = arith.constant 0 : i32
    return %c0_i32, %c0_i32_0 : i32, i32
  }
  func.func @transform_3(%arg0: i32) -> (i32, i32) {
    %c0_i32 = arith.constant 0 : i32
    %c0_i32_0 = arith.constant 0 : i32
    %c0_i32_1 = arith.constant 0 : i32
    return %c0_i32, %c0_i32_0 : i32, i32
  }
  func.func @transform_4(%arg0: i32) -> (i32, i32) {
    %c0_i32 = arith.constant 0 : i32
    %c0_i32_0 = arith.constant 0 : i32
    %c0_i32_1 = arith.constant 0 : i32
    return %c0_i32, %c0_i32_0 : i32, i32
  }
  func.func @transform_5(%arg0: i32) -> (i32, i32) {
    %c0_i32 = arith.constant 0 : i32
    %c0_i32_0 = arith.constant 0 : i32
    %c0_i32_1 = arith.constant 0 : i32
    return %c0_i32, %c0_i32_0 : i32, i32
  }
  func.func @transform_6(%arg0: i32) -> (i32, i32) {
    %c0_i32 = arith.constant 0 : i32
    %c0_i32_0 = arith.constant 0 : i32
    %c0_i32_1 = arith.constant 0 : i32
    return %c0_i32, %c0_i32_0 : i32, i32
  }
  func.func @transform_7(%arg0: i32) -> (i32, i32) {
    %c0_i32 = arith.constant 0 : i32
    %c0_i32_0 = arith.constant 0 : i32
    %c0_i32_1 = arith.constant 0 : i32
    return %c0_i32, %c0_i32_0 : i32, i32
  }
  func.func @transform_8(%arg0: i32) -> (i32, i32) {
    %c0_i32 = arith.constant 0 : i32
    %c0_i32_0 = arith.constant 0 : i32
    %c0_i32_1 = arith.constant 0 : i32
    return %c0_i32, %c0_i32_0 : i32, i32
  }
  func.func @transform_9(%arg0: i32) -> (i32, i32) {
    %c0_i32 = arith.constant 0 : i32
    %c0_i32_0 = arith.constant 0 : i32
    return %arg0, %c0_i32 : i32, i32
  }
}

</mosaic_0001>

<bundles_post_ra>
// kernel: _lambda_.1
= control target key start
LH: loop header
LB: loop body
LE: loop exit
PB: predicated region body
PF: predicated region fallthrough
CT: control target
= control target key end

     0   :  { %14 = vsyncpa [#allocation3], 0  ;;  %s7515_s0 = inlined_call_operand.vmem [shape: f32[1,24,512], index: 0, kind: input, shape index: {}]   ;;  %s7516_s1 = inlined_call_operand.hbm [shape: f32[96,24], index: 1, kind: input, shape index: {}]   ;;  %s7517_s2 = inlined_call_operand.vmem [shape: f32[192,32], index: 2, kind: input, shape index: {}]   ;;  %s7518_s3 = inlined_call_operand.hbm [shape: f32[96,64], index: 3, kind: input, shape index: {}]   ;;  %s7519_s4 = inlined_call_operand.hbm [shape: f32[96,32], index: 4, kind: input, shape index: {}]   ;;  %s7520_s5 = inlined_call_operand.vmem [shape: f32[160,2], index: 5, kind: input, shape index: {}]   ;;  %s7521_s6 = inlined_call_operand.hbm [shape: f32[128,128], index: 6, kind: input, shape index: {}]   ;;  %s7522_s7 = inlined_call_operand.hbm [shape: f32[128,128], index: 7, kind: input, shape index: {}]   ;;  %s7523_s8 = inlined_call_operand.vmem [shape: f32[8,128], index: 8, kind: input, shape index: {}]   ;;  %s7524_s9 = inlined_call_operand.vmem [shape: f32[128,128], index: 9, kind: output, shape index: {}]  }
   0x1   :  { %15 = vsyncpa [#allocation5], 0 }
   0x2   :  { %16 = vsyncpa [#allocation8], 0  ;;  %s4995_s30 = smov [#allocation4]   ;;  %s4996_s11 = smov [#allocation7]  }
   0x3   :  { %s38_s10 = sshll.u32 %s4995_s30, 4  ;;  %s64_s12 = sshll.u32 %s4996_s11, 4  ;;  %s39_s10 = int_to_ptr.vmem [resolvable:$true] %s38_s10  ;;  %s65_s12 = int_to_ptr.vmem [resolvable:$true] %s64_s12 }
   0x4   :  { %s4897_s13 = scalar_lea.vmem %s39_s10, 1536  ;;  %p4902_p1 = scmp.lt.s32.totalorder %s39_s10, %s39_s10 }
   0x5   :  { %p4898_p0 = scmp.ne.s32.totalorder %s39_s10, %s4897_s13  ;;  %p4903_p2 = scmp.lt.s32.totalorder %s4897_s13, %s4897_s13 }
   0x7   :  { %p4904_p3 = por %p4903_p2, %p4902_p1 }
   0x9   :  { %p4905_p4 = pnand %p4904_p3, %p4898_p0 }
   0xb   :  { %4908 = shalt.err (!%p4905_p4)
}
   0xc   :  { %s4997_s14 = smov 128   ;;  %s4998_s15 = smov 8  }
   0xd   :  { %44 = dma.hbm_to_vmem [thread:$0]  %s7518_s3, 1536, %s39_s10, [#allocation5], %s4997_s14, %s4997_s14, %s4998_s15  }
   0xe   :  { %s4917_s18 = scalar_lea.vmem %s65_s12, 2048  ;;  %p4922_p6 = scmp.lt.s32.totalorder %s65_s12, %s65_s12 }
   0xf   :  { %p4918_p5 = scmp.ne.s32.totalorder %s65_s12, %s4917_s18  ;;  %p4923_p7 = scmp.lt.s32.totalorder %s4917_s18, %s4917_s18 }
  0x11   :  { %p4924_p8 = por %p4923_p7, %p4922_p6 }
  0x13   :  { %p4925_p9 = pnand %p4924_p8, %p4918_p5 }
  0x15   :  { %4928 = shalt.err (!%p4925_p9)
}
  0x16   :  { %70 = dma.hbm_to_vmem [thread:$0]  %s7521_s6, 2048, %s65_s12, [#allocation8], %s4997_s14, %s4997_s14, %s4998_s15  }
  0x17   :  { %s4999_s21 = smov [#allocation2]   ;;  %s5000_s23 = smov [#allocation6]  }
  0x18   :  { %s24_s22 = sshll.u32 %s4999_s21, 4  ;;  %s50_s24 = sshll.u32 %s5000_s23, 4  ;;  %s25_s22 = int_to_ptr.vmem [resolvable:$true] %s24_s22  ;;  %s51_s24 = int_to_ptr.vmem [resolvable:$true] %s50_s24 }
  0x19   :  { %s4937_s3 = scalar_lea.vmem %s25_s22, 1536  ;;  %p4942_p11 = scmp.lt.s32.totalorder %s25_s22, %s25_s22 }
  0x1a   :  { %p4938_p10 = scmp.ne.s32.totalorder %s25_s22, %s4937_s3  ;;  %p4943_p12 = scmp.lt.s32.totalorder %s4937_s3, %s4937_s3 }
  0x1c   :  { %p4944_p13 = por %p4943_p12, %p4942_p11 }
  0x1e   :  { %p4945_p0 = pnand %p4944_p13, %p4938_p10 }
  0x20   :  { %4948 = shalt.err (!%p4945_p0)
}
  0x21   :  { %30 = dma.hbm_to_vmem [thread:$0]  %s7516_s1, 1536, %s25_s22, [#allocation3], %s4997_s14, %s4997_s14, %s4998_s15  }
  0x22   :  { %s4957_s6 = scalar_lea.vmem %s51_s24, 1536  ;;  %p4962_p2 = scmp.lt.s32.totalorder %s51_s24, %s51_s24 }
  0x23   :  { %p4958_p1 = scmp.ne.s32.totalorder %s51_s24, %s4957_s6  ;;  %p4963_p3 = scmp.lt.s32.totalorder %s4957_s6, %s4957_s6 }
  0x25   :  { %p4964_p4 = por %p4963_p3, %p4962_p2 }
  0x27   :  { %p4965_p5 = pnand %p4964_p4, %p4958_p1 }
  0x29   :  { %4968 = shalt.err (!%p4965_p5)
}
  0x2a   :  { %56 = dma.hbm_to_vmem [thread:$0]  %s7519_s4, 1536, %s51_s24, [#allocation5], %s4997_s14, %s4997_s14, %s4998_s15  }
  0x2b   :  { %s5001_s29 = smov [#allocation9]  }
  0x2c   :  { %s76_s30 = sshll.u32 %s5001_s29, 4  ;;  %s77_s30 = int_to_ptr.vmem [resolvable:$true] %s76_s30 }
  0x2d   :  { %s4977_s10 = scalar_lea.vmem %s77_s30, 2048  ;;  %p4982_p7 = scmp.lt.s32.totalorder %s77_s30, %s77_s30 }
  0x2e   :  { %p4978_p6 = scmp.ne.s32.totalorder %s77_s30, %s4977_s10  ;;  %p4983_p8 = scmp.lt.s32.totalorder %s4977_s10, %s4977_s10 }
  0x30   :  { %p4984_p9 = por %p4983_p8, %p4982_p7 }
  0x32   :  { %p4985_p10 = pnand %p4984_p9, %p4978_p6 }
  0x34   :  { %4988 = shalt.err (!%p4985_p10)
}
  0x35   :  { %82 = dma.hbm_to_vmem [thread:$0]  %s7522_s7, 2048, %s77_s30, [#allocation8], %s4997_s14, %s4997_s14, %s4998_s15  }
  0x36   :  { %4989 = dma.done.wait [#allocation3], 1536  }
  0x37   :  { %4990 = vsyncadd [#allocation3], 4294965760 }
  0x38   :  { %4991 = dma.done.wait [#allocation5], 3072  }
  0x39   :  { %4992 = vsyncadd [#allocation5], 4294964224 }
  0x3a   :  { %4993 = dma.done.wait [#allocation8], 4096  }
  0x3b   :  { %4994 = vsyncadd [#allocation8], 4294963200  ;;  %v7528_v0 = vmov 0.0   ;;  %v110_v1 = vld [vmem:[%s7515_s0 + $0x50] sm:$0xff]  ;;  %v108_v2 = vld [vmem:[%s7515_s0 + $0x40] sm:$0xff]  ;;  %s5003_s7 = smov 1   ;;  %v7525_v23 = vlaneseq }
  0x3c   :  { %352 = vmatprep.mubr.f32.mxu0 %v7528_v0  ;;  %441 = vmatprep.mubr.f32.mxu1 %v7528_v0  ;;  %v111_v3 = vld [vmem:[%s7515_s0 + $0x58] sm:$0xff]  ;;  %v109_v4 = vld [vmem:[%s7515_s0 + $0x48] sm:$0xff]  ;;  %v104_v7 = vld [vmem:[%s7515_s0 + $0x20] sm:$0xff]  ;;  %vm275_vm0 = vcmask 195584   ;;  %v5005_v19 = vmov 0   ;;  %v7526_v21 = vmov 1  }
  0x3d   :  { %217 = vrot.lane.b32.xlu1 %v110_v1, %s5003_s7  ;;  %205 = vrot.lane.b32.xlu0 %v108_v2, %s5003_s7  ;;  %v105_v5 = vld [vmem:[%s7515_s0 + $0x28] sm:$0xff]  ;;  %v107_v6 = vld [vmem:[%s7515_s0 + $0x38] sm:$0xff]  ;;  %v193_v13 = vld [vmem:[#allocation2 + $0x20] sm:$0xff]  ;;  %v5183_v24 = vand.u32 127, %v7525_v23 }
  0x3e   :  { %403 = vmatprep.subr.mxu1 %v111_v3  ;;  %314 = vmatprep.subr.mxu0 %v109_v4  ;;  %v106_v8 = vld [vmem:[%s7515_s0 + $0x30] sm:$0xff]  ;;  %v101_v9 = vld [vmem:[%s7515_s0 + $0x8] sm:$0xff]  ;;  %v103_v10 = vld [vmem:[%s7515_s0 + $0x18] sm:$0xff] }
  0x3f   :  { %315 = vmatpush1.msra.mxu0 %v108_v2  ;;  %404 = vmatpush1.msra.mxu1 %v110_v1  ;;  %v100_v11 = vld [vmem:[%s7515_s0] sm:$0xff]  ;;  %v102_v12 = vld [vmem:[%s7515_s0 + $0x10] sm:$0xff]  ;;  %v194_v14 = vld [vmem:[#allocation2 + $0x28] sm:$0xff]  ;;  %s5004_s0 = smov 127   ;;  %7552 = vst [vmem:[#allocation13_spill] sm:$0xff] %v5183_v24  ;;  %vm225_vm1 = vcmp.lt.s32.totalorder %v5183_v24, 1 }
  0x40   :  { %316 = vmatprep.subr.mxu0 %v105_v5  ;;  %405 = vmatprep.subr.mxu1 %v107_v6  ;;  %v195_v15 = vld [vmem:[#allocation2 + $0x30] sm:$0xff]  ;;  %v196_v16 = vld [vmem:[#allocation2 + $0x38] sm:$0xff]  ;;  %v170_v20 = vld [vmem:[%s7520_s5 + $0x8] sm:$0xff]  ;;  %vm262_vm2 = vcmp.lt.s32.totalorder %v5183_v24, 127  ;;  %vm165_vm3 = vcmp.lt.s32.totalorder %v5183_v24, 71 }
  0x41   :  { %223 = vrot.lane.b32.xlu1 %v111_v3, %s5003_s7  ;;  %211 = vrot.lane.b32.xlu0 %v109_v4, %s5003_s7  ;;  %v171_v17 = vld [vmem:[%s7520_s5 + $0x10] sm:$0xff]  ;;  %v172_v18 = vld [vmem:[%s7520_s5 + $0x18] sm:$0xff]  ;;  %v189_v46 = vld [vmem:[#allocation2] sm:$0xff] }
  0x42   :  { %317 = vmatpush1.msra.mxu0 %v104_v7  ;;  %406 = vmatpush1.msra.mxu1 %v106_v8  ;;  %v169_v22 = vld [vmem:[%s7520_s5] sm:$0xff]  ;;  %v190_v52 = vld [vmem:[#allocation2 + $0x8] sm:$0xff]  ;;  %v191_v56 = vld [vmem:[#allocation2 + $0x10] sm:$0xff] }
  0x43   :  { %318 = vmatprep.subr.mxu0 %v101_v9  ;;  %407 = vmatprep.subr.mxu1 %v103_v10  ;;  %v192_v62 = vld [vmem:[#allocation2 + $0x18] sm:$0xff] }
  0x44   :  { %319 = vmatpush1.msra.mxu0 %v100_v11  ;;  %408 = vmatpush1.msra.mxu1 %v102_v12 }
  0x45   :  { %209 = vrot.lane.b32.xlu1 %v105_v5, %s5003_s7  ;;  %203 = vrot.lane.b32.xlu0 %v104_v7, %s5003_s7 }
  0x46   :  { %4475 = vmatmul.mubr.msk.f32.vlgmr.msra.gmra.mxu0 %vm275_vm0, %v193_v13  ;;  %4479 = vmatmul.mubr.msk.f32.vlgmr.msra.gmra.mxu1 %vm275_vm0, %v193_v13 }
  0x47   :  { %358 = vmatprep.mubr.f32.mxu0 %v7528_v0  ;;  %447 = vmatprep.mubr.f32.mxu1 %v7528_v0 }
  0x48   :  { %4848 = vset.pattern.permute.xlu1 %v5005_v19  ;;  %4847 = vset.pattern.permute.xlu0 %v5005_v19 }
  0x49   :  { %221 = vrot.lane.b32.xlu1 %v107_v6, %s5003_s7  ;;  %215 = vrot.lane.b32.xlu0 %v106_v8, %s5003_s7 }
  0x4a   :  { %4476 = vmatmul.mubr.msk.f32.gmra.mxu0 %vm275_vm0, %v194_v14  ;;  %4480 = vmatmul.mubr.msk.f32.gmra.mxu1 %vm275_vm0, %v194_v14 }
  0x4b   :  { %364 = vmatprep.mubr.f32.mxu0 %v7528_v0  ;;  %453 = vmatprep.mubr.f32.mxu1 %v7528_v0 }
  0x4d   :  { %207 = vrot.lane.b32.xlu1 %v101_v9, %s5003_s7  ;;  %201 = vrot.lane.b32.xlu0 %v100_v11, %s5003_s7 }
  0x4e   :  { %4477 = vmatmul.mubr.msk.f32.gmra.mxu0 %vm275_vm0, %v195_v15  ;;  %4481 = vmatmul.mubr.msk.f32.gmra.mxu1 %vm275_vm0, %v195_v15  ;;  %v198_v15 = vld [vmem:[#allocation2 + $0x48] sm:$0xff] }
  0x4f   :  { %370 = vmatprep.mubr.f32.mxu0 %v7528_v0  ;;  %459 = vmatprep.mubr.f32.mxu1 %v7528_v0 }
  0x51   :  { %219 = vrot.lane.b32.xlu1 %v103_v10, %s5003_s7  ;;  %213 = vrot.lane.b32.xlu0 %v102_v12, %s5003_s7 }
  0x52   :  { %4478 = vmatmul.mubr.msk.f32.gmra.mxu0 %vm275_vm0, %v196_v16  ;;  %4482 = vmatmul.mubr.msk.f32.gmra.mxu1 %vm275_vm0, %v196_v16  ;;  %v199_v16 = vld [vmem:[#allocation2 + $0x50] sm:$0xff] }
  0x53   :  { %542 = vmatprep.mubr.f32.mxu0 %v7528_v0  ;;  %631 = vmatprep.mubr.f32.mxu1 %v7528_v0 }
  0x55   :  { %254 = vrot.lane.b32.xlu1 %v110_v1, %s5004_s0  ;;  %248 = vrot.lane.b32.xlu0 %v109_v4, %s5004_s0 }
  0x59   :  { %260 = vrot.lane.b32.xlu1 %v111_v3, %s5004_s0  ;;  %242 = vrot.lane.b32.xlu0 %v108_v2, %s5004_s0 }
  0x5d   :  { %252 = vrot.lane.b32.xlu1 %v106_v8, %s5004_s0  ;;  %246 = vrot.lane.b32.xlu0 %v105_v5, %s5004_s0 }
  0x61   :  { %258 = vrot.lane.b32.xlu1 %v107_v6, %s5004_s0  ;;  %240 = vrot.lane.b32.xlu0 %v104_v7, %s5004_s0 }
  0x65   :  { %250 = vrot.lane.b32.xlu1 %v102_v12, %s5004_s0  ;;  %244 = vrot.lane.b32.xlu0 %v101_v9, %s5004_s0 }
  0x69   :  { %256 = vrot.lane.b32.xlu1 %v103_v10, %s5004_s0  ;;  %238 = vrot.lane.b32.xlu0 %v100_v11, %s5004_s0  ;;  %v197_v11 = vld [vmem:[#allocation2 + $0x40] sm:$0xff] }
  0x6d   :  { %874 = vperm.xlu1 %4848, %v171_v17   ;;  %879 = vperm.xlu0 %4847, %v172_v18  }
  0x71   :  { %4849 = vset.pattern.permute.xlu1 %v7526_v21  ;;  %869 = vperm.xlu0 %4847, %v170_v20  }
  0x72   :  { %911 = vperm.xlu1 %4849, %v172_v18  }
  0x75   :  { %864 = vperm.xlu0 %4847, %v169_v22  }
  0x76   :  { %907 = vperm.xlu1 %4849, %v171_v17   ;;  %v200_v17 = vld [vmem:[#allocation2 + $0x58] sm:$0xff] }
  0x79   :  { %4850 = vset.pattern.permute.xlu0 %v7526_v21 }
  0x7a   :  { %903 = vperm.xlu1 %4849, %v170_v20   ;;  %899 = vperm.xlu0 %4850, %v169_v22  }
  0x7e   :  { %4851 = vset.pattern.permute.xlu1 %v5005_v19 }
  0xaf   :  { %v218_v25 = vpop.permute.xlu1 %217  ;;  %v206_v26 = vpop.permute.xlu0 %205 }
  0xb3   :  { %v224_v27 = vpop.permute.xlu1 %223  ;;  %v212_v28 = vpop.permute.xlu0 %211 }
  0xb4   :  { %v234_v29 = vsel %vm225_vm1, %v206_v26, %v212_v28  ;;  %v228_v30 = vsel %vm225_vm1, %v218_v25, %v224_v27  ;;  %v237_v31 = vsel %vm225_vm1, %v224_v27, %v206_v26  ;;  %v231_v32 = vsel %vm225_vm1, %v212_v28, %v218_v25 }
  0xb5   :  { %504 = vmatprep.subr.mxu0 %v234_v29  ;;  %593 = vmatprep.subr.mxu1 %v228_v30 }
  0xb6   :  { %505 = vmatpush1.msra.mxu0 %v237_v31  ;;  %594 = vmatpush1.msra.mxu1 %v231_v32 }
  0xb7   :  { %v210_v33 = vpop.permute.xlu1 %209  ;;  %v204_v34 = vpop.permute.xlu0 %203 }
  0xb8   :  { %v233_v35 = vsel %vm225_vm1, %v204_v34, %v210_v33 }
  0xb9   :  { %506 = vmatprep.subr.mxu0 %v233_v35 }
  0xbb   :  { %v222_v36 = vpop.permute.xlu1 %221  ;;  %v216_v37 = vpop.permute.xlu0 %215 }
  0xbc   :  { %v236_v38 = vsel %vm225_vm1, %v222_v36, %v204_v34  ;;  %v227_v39 = vsel %vm225_vm1, %v216_v37, %v222_v36  ;;  %v230_v40 = vsel %vm225_vm1, %v210_v33, %v216_v37 }
  0xbd   :  { %507 = vmatpush1.msra.mxu0 %v236_v38  ;;  %595 = vmatprep.subr.mxu1 %v227_v39 }
  0xbe   :  { %596 = vmatpush1.msra.mxu1 %v230_v40 }
  0xbf   :  { %v208_v41 = vpop.permute.xlu1 %207  ;;  %v202_v42 = vpop.permute.xlu0 %201 }
  0xc0   :  { %v232_v43 = vsel %vm225_vm1, %v202_v42, %v208_v41 }
  0xc1   :  { %508 = vmatprep.subr.mxu0 %v232_v43 }
  0xc3   :  { %v220_v44 = vpop.permute.xlu1 %219  ;;  %v214_v45 = vpop.permute.xlu0 %213 }
  0xc4   :  { %v235_v47 = vsel %vm225_vm1, %v220_v44, %v202_v42  ;;  %v226_v48 = vsel %vm225_vm1, %v214_v45, %v220_v44  ;;  %v229_v49 = vsel %vm225_vm1, %v208_v41, %v214_v45 }
  0xc5   :  { %509 = vmatpush1.msra.mxu0 %v235_v47  ;;  %597 = vmatprep.subr.mxu1 %v226_v48 }
  0xc6   :  { %4483 = vmatmul.mubr.msk.f32.vlgmr.msra.gmra.mxu0 %vm275_vm0, %v189_v46  ;;  %598 = vmatpush1.msra.mxu1 %v229_v49 }
  0xc7   :  { %v255_v50 = vpop.permute.xlu1 %254  ;;  %4487 = vmatmul.mubr.msk.f32.vlgmr.msra.gmra.mxu1 %vm275_vm0, %v189_v46  ;;  %v249_v51 = vpop.permute.xlu0 %248  ;;  %548 = vmatprep.mubr.f32.mxu0 %v7528_v0 }
  0xc8   :  { %v268_v53 = vsel %vm262_vm2, %v249_v51, %v255_v50  ;;  %637 = vmatprep.mubr.f32.mxu1 %v7528_v0 }
  0xc9   :  { %694 = vmatprep.subr.mxu0 %v268_v53 }
  0xca   :  { %4484 = vmatmul.mubr.msk.f32.gmra.mxu0 %vm275_vm0, %v190_v52 }
  0xcb   :  { %v261_v54 = vpop.permute.xlu1 %260  ;;  %4488 = vmatmul.mubr.msk.f32.gmra.mxu1 %vm275_vm0, %v190_v52  ;;  %v243_v55 = vpop.permute.xlu0 %242  ;;  %554 = vmatprep.mubr.f32.mxu0 %v7528_v0 }
  0xcc   :  { %v271_v57 = vsel %vm262_vm2, %v243_v55, %v249_v51  ;;  %v274_v58 = vsel %vm262_vm2, %v261_v54, %v243_v55  ;;  %643 = vmatprep.mubr.f32.mxu1 %v7528_v0  ;;  %v265_v59 = vsel %vm262_vm2, %v255_v50, %v261_v54 }
  0xcd   :  { %695 = vmatpush1.msra.mxu0 %v271_v57  ;;  %783 = vmatprep.subr.mxu1 %v274_v58  ;;  %v5277_v57 = vadd.s32 256, %v5183_v24  ;;  %v5280_v58 = vadd.s32 384, %v5183_v24 }
  0xce   :  { %4485 = vmatmul.mubr.msk.f32.gmra.mxu0 %vm275_vm0, %v191_v56  ;;  %784 = vmatpush1.msra.mxu1 %v265_v59 }
  0xcf   :  { %v253_v60 = vpop.permute.xlu1 %252  ;;  %4489 = vmatmul.mubr.msk.f32.gmra.mxu1 %vm275_vm0, %v191_v56  ;;  %v247_v61 = vpop.permute.xlu0 %246  ;;  %560 = vmatprep.mubr.f32.mxu0 %v7528_v0  ;;  %v114_v56 = vadd.s32 128, %v5183_v24 }
  0xd0   :  { %v267_v63 = vsel %vm262_vm2, %v247_v61, %v253_v60  ;;  %649 = vmatprep.mubr.f32.mxu1 %v7528_v0 }
  0xd1   :  { %696 = vmatprep.subr.mxu0 %v267_v63 }
  0xd2   :  { %4486 = vmatmul.mubr.msk.f32.gmra.mxu0 %vm275_vm0, %v192_v62 }
  0xd3   :  { %v259_v1 = vpop.permute.xlu1 %258  ;;  %4490 = vmatmul.mubr.msk.f32.gmra.mxu1 %vm275_vm0, %v192_v62  ;;  %v241_v2 = vpop.permute.xlu0 %240  ;;  %732 = vmatprep.mubr.f32.mxu0 %v7528_v0 }
  0xd4   :  { %v270_v3 = vsel %vm262_vm2, %v241_v2, %v247_v61  ;;  %v273_v4 = vsel %vm262_vm2, %v259_v1, %v241_v2  ;;  %v264_v5 = vsel %vm262_vm2, %v253_v60, %v259_v1  ;;  %821 = vmatprep.mubr.f32.mxu1 %v7528_v0  ;;  %v128_v1 = vand.u32 127, %v114_v56 }
  0xd5   :  { %697 = vmatpush1.msra.mxu0 %v270_v3  ;;  %785 = vmatprep.subr.mxu1 %v273_v4 }
  0xd6   :  { %786 = vmatpush1.msra.mxu1 %v264_v5  ;;  %v135_v5 = vand.u32 127, %v5277_v57  ;;  %vm5301_vm4 = vcmp.lt.s32.totalorder %v128_v1, 71 }
  0xd7   :  { %v251_v6 = vpop.permute.xlu1 %250  ;;  %v245_v7 = vpop.permute.xlu0 %244 }
  0xd8   :  { %v266_v8 = vsel %vm262_vm2, %v245_v7, %v251_v6  ;;  %vm5309_vm6 = vcmp.lt.s32.totalorder %v135_v5, 71 }
  0xd9   :  { %698 = vmatprep.subr.mxu0 %v266_v8 }
  0xdb   :  { %v257_v9 = vpop.permute.xlu1 %256  ;;  %v239_v10 = vpop.permute.xlu0 %238 }
  0xdc   :  { %v269_v12 = vsel %vm262_vm2, %v239_v10, %v245_v7  ;;  %v272_v13 = vsel %vm262_vm2, %v257_v9, %v239_v10  ;;  %v263_v14 = vsel %vm262_vm2, %v251_v6, %v257_v9  ;;  %v142_v6 = vand.u32 127, %v5280_v58 }
  0xdd   :  { %699 = vmatpush1.msra.mxu0 %v269_v12  ;;  %787 = vmatprep.subr.mxu1 %v272_v13 }
  0xde   :  { %4491 = vmatmul.mubr.msk.f32.vlgmr.msra.gmra.mxu0 %vm275_vm0, %v197_v11  ;;  %788 = vmatpush1.msra.mxu1 %v263_v14  ;;  %vm5325_vm8 = vcmp.lt.s32.totalorder %v142_v6, 71 }
  0xdf   :  { %4495 = vmatmul.mubr.msk.f32.vlgmr.msra.gmra.mxu1 %vm275_vm0, %v197_v11  ;;  %738 = vmatprep.mubr.f32.mxu0 %v7528_v0 }
  0xe0   :  { %827 = vmatprep.mubr.f32.mxu1 %v7528_v0 }
  0xe2   :  { %4492 = vmatmul.mubr.msk.f32.gmra.mxu0 %vm275_vm0, %v198_v15 }
  0xe3   :  { %4496 = vmatmul.mubr.msk.f32.gmra.mxu1 %vm275_vm0, %v198_v15  ;;  %744 = vmatprep.mubr.f32.mxu0 %v7528_v0 }
  0xe4   :  { %833 = vmatprep.mubr.f32.mxu1 %v7528_v0 }
  0xe6   :  { %4493 = vmatmul.mubr.msk.f32.gmra.mxu0 %vm275_vm0, %v199_v16 }
  0xe7   :  { %4497 = vmatmul.mubr.msk.f32.gmra.mxu1 %vm275_vm0, %v199_v16  ;;  %750 = vmatprep.mubr.f32.mxu0 %v7528_v0 }
  0xe8   :  { %839 = vmatprep.mubr.f32.mxu1 %v7528_v0  ;;  %v5267_v48 = vpop.permute.xlu0 %879  ;;  %v5269_v50 = vpop.permute.xlu1 %874 }
  0xea   :  { %4494 = vmatmul.mubr.msk.f32.gmra.mxu0 %vm275_vm0, %v200_v17 }
  0xeb   :  { %4498 = vmatmul.mubr.msk.f32.gmra.mxu1 %vm275_vm0, %v200_v17  ;;  %1211 = vmatprep.mubr.f32.mxu0 %v7528_v0 }
  0xec   :  { %1324 = vmatprep.mubr.f32.mxu1 %v7528_v0  ;;  %v5271_v52 = vpop.permute.xlu0 %869 }
  0xed   :  { %v5273_v55 = vpop.permute.xlu1 %911 }
  0xf0   :  { %v865_v62 = vpop.permute.xlu0 %864 }
  0xf1   :  { %v5284_v11 = vpop.permute.xlu1 %907 }
 0x106   :  { %v354_v18 = vpop.f32.mrf.mxu0  ;;  %v443_v20 = vpop.f32.mrf.mxu1 }
 0x108   :  { %v356_v22 = vpop.f32.mrf.mxu0  ;;  %v445_v25 = vpop.f32.mrf.mxu1 }
 0x10a   :  { %v360_v26 = vpop.f32.mrf.mxu0  ;;  %v449_v27 = vpop.f32.mrf.mxu1 }
 0x10c   :  { %v362_v28 = vpop.f32.mrf.mxu0  ;;  %v451_v29 = vpop.f32.mrf.mxu1 }
 0x10e   :  { %v366_v30 = vpop.f32.mrf.mxu0  ;;  %v455_v31 = vpop.f32.mrf.mxu1 }
 0x110   :  { %v368_v32 = vpop.f32.mrf.mxu0  ;;  %v457_v33 = vpop.f32.mrf.mxu1 }
 0x112   :  { %v372_v34 = vpop.f32.mrf.mxu0  ;;  %v461_v35 = vpop.f32.mrf.mxu1 }
 0x114   :  { %v374_v36 = vpop.f32.mrf.mxu0  ;;  %v463_v37 = vpop.f32.mrf.mxu1 }
 0x186   :  { %v544_v38 = vpop.f32.mrf.mxu0 }
 0x187   :  { %v633_v39 = vpop.f32.mrf.mxu1  ;;  %v545_v60 = vadd.f32 %v544_v38, %v354_v18 }
 0x188   :  { %v546_v40 = vpop.f32.mrf.mxu0  ;;  %v634_v7 = vadd.f32 %v633_v39, %v443_v20  ;;  %v5286_v20 = vpop.permute.xlu0 %899 }
 0x189   :  { %v635_v41 = vpop.f32.mrf.mxu1  ;;  %v547_v2 = vadd.f32 %v546_v40, %v356_v22 }
 0x18a   :  { %v550_v42 = vpop.f32.mrf.mxu0  ;;  %v636_v8 = vadd.f32 %v635_v41, %v445_v25 }
 0x18b   :  { %v639_v43 = vpop.f32.mrf.mxu1  ;;  %v551_v9 = vadd.f32 %v550_v42, %v360_v26 }
 0x18c   :  { %v552_v44 = vpop.f32.mrf.mxu0  ;;  %v640_v10 = vadd.f32 %v639_v43, %v449_v27 }
 0x18d   :  { %v641_v45 = vpop.f32.mrf.mxu1  ;;  %v553_v13 = vadd.f32 %v552_v44, %v362_v28 }
 0x18e   :  { %v556_v46 = vpop.f32.mrf.mxu0  ;;  %v642_v14 = vadd.f32 %v641_v45, %v451_v29 }
 0x18f   :  { %v645_v47 = vpop.f32.mrf.mxu1  ;;  %v557_v15 = vadd.f32 %v556_v46, %v366_v30 }
 0x190   :  { %v558_v49 = vpop.f32.mrf.mxu0  ;;  %v646_v18 = vadd.f32 %v645_v47, %v455_v31 }
 0x191   :  { %v647_v51 = vpop.f32.mrf.mxu1  ;;  %v559_v57 = vadd.f32 %v558_v49, %v368_v32 }
 0x192   :  { %v562_v53 = vpop.f32.mrf.mxu0 }
 0x193   :  { %v651_v54 = vpop.f32.mrf.mxu1  ;;  %v563_v27 = vadd.f32 %v562_v53, %v372_v34 }
 0x194   :  { %v564_v59 = vpop.f32.mrf.mxu0  ;;  %v652_v39 = vadd.f32 %v651_v54, %v461_v35 }
 0x195   :  { %v653_v61 = vpop.f32.mrf.mxu1  ;;  %v565_v30 = vadd.f32 %v564_v59, %v374_v36 }
 0x196   :  { %v654_v31 = vadd.f32 %v653_v61, %v463_v37 }
 0x19e   :  { %v734_v63 = vpop.f32.mrf.mxu0 }
 0x19f   :  { %v846_v3 = vadd.f32 %v734_v63, %v545_v60  ;;  %v823_v4 = vpop.f32.mrf.mxu1  ;;  %v648_v60 = vadd.f32 %v647_v51, %v457_v33  ;;  %v904_v33 = vpop.permute.xlu1 %903 }
 0x1a0   :  { %v736_v12 = vpop.f32.mrf.mxu0  ;;  %v848_v38 = vadd.f32 %v823_v4, %v634_v7 }
 0x1a1   :  { %v847_v16 = vadd.f32 %v736_v12, %v547_v2  ;;  %v825_v17 = vpop.f32.mrf.mxu1  ;;  %v882_v22 = vmul.f32 %v865_v62, %v846_v3 }
 0x1a2   :  { %v849_v40 = vadd.f32 %v825_v17, %v636_v8  ;;  %v740_v56 = vpop.f32.mrf.mxu0  ;;  %v5290_v32 = vmul.f32 %v865_v62, %v848_v38 }
 0x1a3   :  { %v883_v63 = vmul.f32 %v865_v62, %v847_v16  ;;  %v850_v25 = vadd.f32 %v740_v56, %v551_v9  ;;  %v829_v26 = vpop.f32.mrf.mxu1  ;;  %v5293_v45 = vadd.f32 %v5286_v20, %v882_v22  ;;  %v7556_v9 = vmov 0 }
 0x1a4   :  { %v885_v41 = vmul.f32 %v865_v62, %v849_v40  ;;  %v852_v28 = vadd.f32 %v829_v26, %v640_v10  ;;  %v742_v29 = vpop.f32.mrf.mxu0  ;;  %v7553_v62 = vmov 0  ;;  %v7557_v9 = vsel %vm5309_vm6, 4294967295, %v7556_v9 }
 0x1a5   :  { %v886_v42 = vmul.f32 %v5271_v52, %v850_v25  ;;  %v851_v43 = vadd.f32 %v742_v29, %v553_v13  ;;  %v831_v44 = vpop.f32.mrf.mxu1  ;;  %v5298_v37 = vadd.f32 %v5286_v20, %v883_v63  ;;  %v7554_v62 = vsel %vm5301_vm4, 4294967295, %v7553_v62  ;;  %7558 = vst [vmem:[#allocation15_spill] sm:$0xff] %v7557_v9 }
 0x1a6   :  { %v888_v34 = vmul.f32 %v5271_v52, %v852_v28  ;;  %v853_v35 = vadd.f32 %v831_v44, %v642_v14  ;;  %v746_v46 = vpop.f32.mrf.mxu0  ;;  %7555 = vst [vmem:[#allocation14_spill] sm:$0xff] %v7554_v62  ;;  %v5306_v2 = vadd.f32 %v5286_v20, %v885_v41  ;;  %v7559_v56 = vmov 0 }
 0x1a7   :  { %v918_v47 = vadd.f32 %v904_v33, %v886_v42  ;;  %v887_v49 = vmul.f32 %v5271_v52, %v851_v43  ;;  %v854_v51 = vadd.f32 %v746_v46, %v557_v15  ;;  %v835_v36 = vpop.f32.mrf.mxu1  ;;  %v7560_v56 = vsel %vm5325_vm8, 4294967295, %v7559_v56 }
 0x1a8   :  { %v920_v53 = vadd.f32 %v904_v33, %v888_v34  ;;  %v889_v54 = vmul.f32 %v5271_v52, %v853_v35  ;;  %v856_v59 = vadd.f32 %v835_v36, %v646_v18  ;;  %v748_v61 = vpop.f32.mrf.mxu0  ;;  %7561 = vst [vmem:[#allocation16_spill] sm:$0xff] %v7560_v56 }
 0x1a9   :  { %v919_v3 = vadd.f32 %v904_v33, %v887_v49  ;;  %v890_v4 = vmul.f32 %v5269_v50, %v854_v51  ;;  %v855_v7 = vadd.f32 %v748_v61, %v559_v57  ;;  %v837_v8 = vpop.f32.mrf.mxu1  ;;  %vm934_vm5 = vcmp.ge.f32.partialorder %v918_v47, 0.0 }
 0x1aa   :  { %v921_v52 = vadd.f32 %v904_v33, %v889_v54  ;;  %v892_v10 = vmul.f32 %v5269_v50, %v856_v59  ;;  %v857_v1 = vadd.f32 %v837_v8, %v648_v60  ;;  %v752_v12 = vpop.f32.mrf.mxu0  ;;  %v950_v13 = vmul.f32 0.3, %v918_v47 }
 0x1ab   :  { %v922_v14 = vadd.f32 %v5284_v11, %v890_v4  ;;  %v891_v15 = vmul.f32 %v5269_v50, %v855_v7  ;;  %v858_v16 = vadd.f32 %v752_v12, %v563_v27  ;;  %v841_v17 = vpop.f32.mrf.mxu1  ;;  %vm935_vm7 = vcmp.ge.f32.partialorder %v919_v3, 0.0 }
 0x1ac   :  { %v5317_v18 = vadd.f32 %v5284_v11, %v892_v10  ;;  %v893_v5 = vmul.f32 %v5269_v50, %v857_v1  ;;  %v860_v22 = vadd.f32 %v841_v17, %v652_v39  ;;  %v754_v38 = vpop.f32.mrf.mxu0  ;;  %v5321_v40 = vsel %vm934_vm5, %v918_v47, %v950_v13 }
 0x1ad   :  { %v923_v57 = vadd.f32 %v5284_v11, %v891_v15  ;;  %v894_v60 = vmul.f32 %v5267_v48, %v858_v16  ;;  %v859_v63 = vadd.f32 %v754_v38, %v565_v30  ;;  %v843_v25 = vpop.f32.mrf.mxu1  ;;  %v5334_v50 = vsel %vm165_vm3, %v5321_v40, 0.0 }
 0x1ae   :  { %v925_v26 = vadd.f32 %v5284_v11, %v893_v5  ;;  %v896_v27 = vmul.f32 %v5267_v48, %v860_v22  ;;  %v861_v58 = vadd.f32 %v843_v25, %v654_v31  ;;  %1028 = vrot.lane.b32.xlu0 %v5334_v50, %s5003_s7  ;;  %v951_v6 = vmul.f32 0.3, %v919_v3  ;;  %v1010_v22 = vld [vmem:[%s7517_s2 + $0x40] sm:$0xff] }
 0x1af   :  { %v926_v39 = vadd.f32 %v5273_v55, %v894_v60  ;;  %v895_v41 = vmul.f32 %v5267_v48, %v859_v63  ;;  %vm936_vm9 = vcmp.ge.f32.partialorder %v920_v53, 0.0  ;;  %v952_v28 = vmul.f32 0.3, %v920_v53  ;;  %v1012_v63 = vld [vmem:[%s7517_s2 + $0x50] sm:$0xff] }
 0x1b0   :  { %v928_v29 = vadd.f32 %v5273_v55, %v896_v27  ;;  %v897_v30 = vmul.f32 %v5267_v48, %v861_v58  ;;  %v967_v42 = vsel %vm935_vm7, %v919_v3, %v951_v6  ;;  %vm937_vm10 = vcmp.ge.f32.partialorder %v921_v52, 0.0  ;;  %v1013_v27 = vld [vmem:[%s7517_s2 + $0x58] sm:$0xff]  ;;  %v1014_v6 = vld [vmem:[%s7517_s2 + $0x60] sm:$0xff] }
 0x1b1   :  { %v958_v11 = vmul.f32 0.3, %v926_v39  ;;  %v927_v31 = vadd.f32 %v5273_v55, %v895_v41  ;;  %v5348_v43 = vsel %vm5301_vm4, %v967_v42, 0.0  ;;  %v5350_v44 = vsel %vm936_vm9, %v920_v53, %v952_v28  ;;  %v1015_v41 = vld [vmem:[%s7517_s2 + $0x68] sm:$0xff]  ;;  %v1016_v28 = vld [vmem:[%s7517_s2 + $0x70] sm:$0xff] }
 0x1b2   :  { %v960_v33 = vmul.f32 0.3, %v928_v29  ;;  %v929_v34 = vadd.f32 %v5273_v55, %v897_v30  ;;  %1036 = vrot.lane.b32.xlu1 %v5348_v43, %s5003_s7  ;;  %v5358_v48 = vsel %vm5309_vm6, %v5350_v44, 0.0  ;;  %v953_v35 = vmul.f32 0.3, %v921_v52  ;;  %v180_v30 = vld [vmem:[%s7520_s5 + $0x58] sm:$0xff] }
 0x1b3   :  { %1044 = vrot.lane.b32.xlu0 %v5358_v48, %s5003_s7  ;;  %vm938_vm11 = vcmp.ge.f32.partialorder %v922_v14, 0.0  ;;  %v954_v46 = vmul.f32 0.3, %v922_v14  ;;  %vm943_vm12 = vcmp.ge.f32.partialorder %v927_v31, 0.0  ;;  %v959_v47 = vmul.f32 0.3, %v927_v31 }
 0x1b4   :  { %v969_v49 = vsel %vm937_vm10, %v921_v52, %v953_v35  ;;  %vm942_vm13 = vcmp.ge.f32.partialorder %v926_v39, 0.0  ;;  %vm945_vm14 = vcmp.ge.f32.partialorder %v929_v34, 0.0  ;;  %v961_v55 = vmul.f32 0.3, %v929_v34 }
 0x1b5   :  { %v5364_v51 = vsel %vm5325_vm8, %v969_v49, 0.0  ;;  %v970_v36 = vsel %vm938_vm11, %v922_v14, %v954_v46  ;;  %v5366_v53 = vsel %vm943_vm12, %v927_v31, %v959_v47  ;;  %v974_v54 = vsel %vm942_vm13, %v926_v39, %v958_v11  ;;  %v178_v11 = vld [vmem:[%s7520_s5 + $0x48] sm:$0xff]  ;;  %v177_v31 = vld [vmem:[%s7520_s5 + $0x40] sm:$0xff] }
 0x1b6   :  { %1052 = vrot.lane.b32.xlu1 %v5364_v51, %s5003_s7  ;;  %v5372_v59 = vsel %vm165_vm3, %v970_v36, 0.0  ;;  %4499 = vmatprep.subr.msk.mxu0 %vm5301_vm4, %v5366_v53  ;;  %v5377_v61 = vsel %vm945_vm14, %v929_v34, %v961_v55  ;;  %vm939_vm15 = vcmp.ge.f32.partialorder %v923_v57, 0.0  ;;  %v955_v3 = vmul.f32 0.3, %v923_v57 }
 0x1b7   :  { %1030 = vrot.lane.b32.xlu0 %v5372_v59, %s5003_s7  ;;  %4500 = vmatpush1.msk.msra.mxu0 %vm165_vm3, %v974_v54  ;;  %vm944_vm0 = vcmp.ge.f32.partialorder %v928_v29, 0.0  ;;  %vm941_vm5 = vcmp.ge.f32.partialorder %v925_v26, 0.0  ;;  %v957_v4 = vmul.f32 0.3, %v925_v26  ;;  %vm940_vm7 = vcmp.ge.f32.partialorder %v5317_v18, 0.0 }
 0x1b8   :  { %v916_v7 = vadd.f32 %v5286_v20, %v5290_v32  ;;  %4515 = vmatprep.subr.msk.mxu1 %vm5325_vm8, %v5377_v61  ;;  %v971_v8 = vsel %vm939_vm15, %v923_v57, %v955_v3  ;;  %v976_v52 = vsel %vm944_vm0, %v928_v29, %v960_v33  ;;  %v956_v10 = vmul.f32 0.3, %v5317_v18  ;;  %v1017_v29 = vld [vmem:[%s7517_s2 + $0x78] sm:$0xff]  ;;  %v174_v33 = vld [vmem:[%s7520_s5 + $0x28] sm:$0xff] }
 0x1b9   :  { %v5392_v1 = vsel %vm5301_vm4, %v971_v8, 0.0  ;;  %4501 = vmatprep.subr.msk.mxu0 %vm5301_vm4, %v971_v8  ;;  %4516 = vmatpush1.msk.msra.mxu1 %vm5309_vm6, %v976_v52  ;;  %v947_v20 = vmul.f32 0.3, %v5298_v37  ;;  %v973_v32 = vsel %vm941_vm5, %v925_v26, %v957_v4  ;;  %vm931_vm9 = vcmp.ge.f32.partialorder %v5298_v37, 0.0 }
 0x1ba   :  { %1038 = vrot.lane.b32.xlu1 %v5392_v1, %s5003_s7  ;;  %4502 = vmatpush1.msk.msra.mxu0 %vm165_vm3, %v970_v36  ;;  %v972_v12 = vsel %vm940_vm7, %v5317_v18, %v956_v10  ;;  %v946_v13 = vmul.f32 0.3, %v5293_v45  ;;  %v949_v15 = vmul.f32 0.3, %v5306_v2  ;;  %vm930_vm10 = vcmp.ge.f32.partialorder %v5293_v45, 0.0 }
 0x1bb   :  { %4517 = vmatprep.subr.msk.mxu1 %vm5325_vm8, %v973_v32  ;;  %v5410_v14 = vsel %vm5309_vm6, %v972_v12, 0.0  ;;  %4503 = vmatprep.subr.msk.mxu0 %vm5301_vm4, %v967_v42  ;;  %vm933_vm11 = vcmp.ge.f32.partialorder %v5306_v2, 0.0  ;;  %v948_v16 = vmul.f32 0.3, %v916_v7  ;;  %v5425_v17 = vsel %vm5325_vm8, %v973_v32, 0.0  ;;  %v179_v42 = vld [vmem:[%s7520_s5 + $0x50] sm:$0xff] }
 0x1bc   :  { %1046 = vrot.lane.b32.xlu0 %v5410_v14, %s5003_s7  ;;  %4518 = vmatpush1.msk.msra.mxu1 %vm5309_vm6, %v972_v12  ;;  %v963_v18 = vsel %vm931_vm9, %v5298_v37, %v947_v20  ;;  %vm932_vm12 = vcmp.ge.f32.partialorder %v916_v7, 0.0  ;;  %v962_v5 = vsel %vm930_vm10, %v5293_v45, %v946_v13  ;;  %vm1122_vm13 = vcmask 261120  }
 0x1bd   :  { %4519 = vmatprep.subr.msk.mxu1 %vm5325_vm8, %v969_v49  ;;  %4504 = vmatpush1.msk.msra.mxu0 %vm165_vm3, %v5321_v40  ;;  %v965_v37 = vsel %vm933_vm11, %v5306_v2, %v949_v15  ;;  %v1000_v38 = vsel %vm5309_vm6, %v976_v52, 0.0  ;;  %v964_v45 = vsel %vm932_vm12, %v916_v7, %v948_v16  ;;  %v998_v40 = vsel %vm165_vm3, %v974_v54, 0.0  ;;  %v1011_v2 = vld [vmem:[%s7517_s2 + $0x48] sm:$0xff] }
 0x1be   :  { %1054 = vrot.lane.b32.xlu1 %v5425_v17, %s5003_s7  ;;  %4505 = vmatprep.subr.msk.mxu0 %vm5301_vm4, %v963_v18  ;;  %v986_v57 = vsel %vm165_vm3, %v962_v5, 0.0  ;;  %v999_v60 = vsel %vm5301_vm4, %v5366_v53, 0.0  ;;  %v988_v25 = vsel %vm5309_vm6, %v964_v45, 0.0  ;;  %v1001_v26 = vsel %vm5325_vm8, %v5377_v61, 0.0 }
 0x1bf   :  { %4520 = vmatpush1.msk.msra.mxu1 %vm5309_vm6, %v5350_v44  ;;  %4506 = vmatpush1.msk.msra.mxu0 %vm165_vm3, %v962_v5  ;;  %v987_v58 = vsel %vm5301_vm4, %v963_v18, 0.0  ;;  %v989_v39 = vsel %vm5325_vm8, %v965_v37, 0.0  ;;  %v175_v44 = vld [vmem:[%s7520_s5 + $0x30] sm:$0xff] }
 0x1c0   :  { %4521 = vmatprep.subr.msk.mxu1 %vm5325_vm8, %v965_v37  ;;  %1048 = vrot.lane.b32.xlu0 %v1000_v38, %s5003_s7 }
 0x1c1   :  { %4522 = vmatpush1.msk.msra.mxu1 %vm5309_vm6, %v964_v45  ;;  %4507 = vmatmul.mubr.msk.f32.vlgmr.msra.gmra.mxu0 %vm1122_vm13, %v1010_v22 }
 0x1c2   :  { %1032 = vrot.lane.b32.xlu1 %v998_v40, %s5003_s7  ;;  %4523 = vmatmul.mubr.msk.f32.vlgmr.msra.gmra.mxu1 %vm1122_vm13, %v1010_v22  ;;  %v1002_v22 = vld [vmem:[%s7517_s2] sm:$0xff] }
 0x1c3   :  { %1217 = vmatprep.mubr.f32.mxu0 %v7528_v0  ;;  %1330 = vmatprep.mubr.f32.mxu1 %v7528_v0 }
 0x1c4   :  { %1026 = vrot.lane.b32.xlu0 %v986_v57, %s5003_s7 }
 0x1c5   :  { %4508 = vmatmul.mubr.msk.f32.gmra.mxu0 %vm1122_vm13, %v1011_v2 }
 0x1c6   :  { %1040 = vrot.lane.b32.xlu1 %v999_v60, %s5003_s7  ;;  %4524 = vmatmul.mubr.msk.f32.gmra.mxu1 %vm1122_vm13, %v1011_v2 }
 0x1c7   :  { %1223 = vmatprep.mubr.f32.mxu0 %v7528_v0  ;;  %1336 = vmatprep.mubr.f32.mxu1 %v7528_v0 }
 0x1c8   :  { %1042 = vrot.lane.b32.xlu0 %v988_v25, %s5003_s7 }
 0x1c9   :  { %4509 = vmatmul.mubr.msk.f32.gmra.mxu0 %vm1122_vm13, %v1012_v63 }
 0x1ca   :  { %1056 = vrot.lane.b32.xlu1 %v1001_v26, %s5003_s7  ;;  %4525 = vmatmul.mubr.msk.f32.gmra.mxu1 %vm1122_vm13, %v1012_v63 }
 0x1cb   :  { %1229 = vmatprep.mubr.f32.mxu0 %v7528_v0  ;;  %1342 = vmatprep.mubr.f32.mxu1 %v7528_v0 }
 0x1cc   :  { %1080 = vrot.lane.b32.xlu0 %v998_v40, %s5004_s0 }
 0x1cd   :  { %4510 = vmatmul.mubr.msk.f32.gmra.mxu0 %vm1122_vm13, %v1013_v27 }
 0x1ce   :  { %1034 = vrot.lane.b32.xlu1 %v987_v58, %s5003_s7  ;;  %4526 = vmatmul.mubr.msk.f32.gmra.mxu1 %vm1122_vm13, %v1013_v27 }
 0x1cf   :  { %1235 = vmatprep.mubr.f32.mxu0 %v7528_v0  ;;  %1348 = vmatprep.mubr.f32.mxu1 %v7528_v0 }
 0x1d0   :  { %1086 = vrot.lane.b32.xlu0 %v5392_v1, %s5004_s0 }
 0x1d1   :  { %4511 = vmatmul.mubr.msk.f32.gmra.mxu0 %vm1122_vm13, %v1014_v6 }
 0x1d2   :  { %1050 = vrot.lane.b32.xlu1 %v989_v39, %s5003_s7  ;;  %4527 = vmatmul.mubr.msk.f32.gmra.mxu1 %vm1122_vm13, %v1014_v6 }
 0x1d3   :  { %1241 = vmatprep.mubr.f32.mxu0 %v7528_v0  ;;  %1354 = vmatprep.mubr.f32.mxu1 %v7528_v0 }
 0x1d4   :  { %1078 = vrot.lane.b32.xlu0 %v5372_v59, %s5004_s0 }
 0x1d5   :  { %4512 = vmatmul.mubr.msk.f32.gmra.mxu0 %vm1122_vm13, %v1015_v41 }
 0x1d6   :  { %1096 = vrot.lane.b32.xlu1 %v1000_v38, %s5004_s0  ;;  %4528 = vmatmul.mubr.msk.f32.gmra.mxu1 %vm1122_vm13, %v1015_v41 }
 0x1d7   :  { %1247 = vmatprep.mubr.f32.mxu0 %v7528_v0  ;;  %1360 = vmatprep.mubr.f32.mxu1 %v7528_v0 }
 0x1d8   :  { %1084 = vrot.lane.b32.xlu0 %v5348_v43, %s5004_s0  ;;  %v176_v43 = vld [vmem:[%s7520_s5 + $0x38] sm:$0xff] }
 0x1d9   :  { %4513 = vmatmul.mubr.msk.f32.gmra.mxu0 %vm1122_vm13, %v1016_v28 }
 0x1da   :  { %1094 = vrot.lane.b32.xlu1 %v5410_v14, %s5004_s0  ;;  %4529 = vmatmul.mubr.msk.f32.gmra.mxu1 %vm1122_vm13, %v1016_v28 }
 0x1db   :  { %1253 = vmatprep.mubr.f32.mxu0 %v7528_v0  ;;  %1366 = vmatprep.mubr.f32.mxu1 %v7528_v0 }
 0x1dc   :  { %1076 = vrot.lane.b32.xlu0 %v5334_v50, %s5004_s0  ;;  %v173_v50 = vld [vmem:[%s7520_s5 + $0x20] sm:$0xff] }
 0x1dd   :  { %4514 = vmatmul.mubr.msk.f32.gmra.mxu0 %vm1122_vm13, %v1017_v29 }
 0x1de   :  { %1102 = vrot.lane.b32.xlu1 %v5425_v17, %s5004_s0  ;;  %4530 = vmatmul.mubr.msk.f32.gmra.mxu1 %vm1122_vm13, %v1017_v29  ;;  %v1006_v29 = vld [vmem:[%s7517_s2 + $0x20] sm:$0xff] }
 0x1df   :  { %1461 = vmatprep.mubr.f32.mxu0 %v7528_v0  ;;  %1574 = vmatprep.mubr.f32.mxu1 %v7528_v0 }
 0x1e0   :  { %1088 = vrot.lane.b32.xlu0 %v999_v60, %s5004_s0 }
 0x1e2   :  { %1092 = vrot.lane.b32.xlu1 %v5358_v48, %s5004_s0 }
 0x1e4   :  { %1082 = vrot.lane.b32.xlu0 %v987_v58, %s5004_s0  ;;  %v1005_v58 = vld [vmem:[%s7517_s2 + $0x18] sm:$0xff] }
 0x1e6   :  { %1100 = vrot.lane.b32.xlu1 %v5364_v51, %s5004_s0 }
 0x1e8   :  { %1074 = vrot.lane.b32.xlu0 %v986_v57, %s5004_s0  ;;  %v1003_v57 = vld [vmem:[%s7517_s2 + $0x8] sm:$0xff] }
 0x1ea   :  { %1104 = vrot.lane.b32.xlu1 %v1001_v26, %s5004_s0 }
 0x1ec   :  { %1978 = vperm.xlu0 %4850, %v173_v50  }
 0x1ee   :  { %1090 = vrot.lane.b32.xlu1 %v988_v25, %s5004_s0  ;;  %v1004_v25 = vld [vmem:[%s7517_s2 + $0x10] sm:$0xff] }
 0x1f0   :  { %4853 = vset.pattern.permute.xlu0 %v5005_v19 }
 0x1f1   :  { %1942 = vperm.xlu0 %4853, %v180_v30  }
 0x1f2   :  { %1098 = vrot.lane.b32.xlu1 %v989_v39, %s5004_s0 }
 0x1f5   :  { %1932 = vperm.xlu0 %4853, %v178_v11  }
 0x1f6   :  { %1937 = vperm.xlu1 %4851, %v179_v42  }
 0x1f9   :  { %1927 = vperm.xlu0 %4853, %v177_v31  }
 0x1fa   :  { %4852 = vset.pattern.permute.xlu1 %v7526_v21 }
 0x1fb   :  { %2006 = vperm.xlu1 %4852, %v180_v30  }
 0x1fd   :  { %1922 = vperm.xlu0 %4853, %v176_v43  }
 0x1ff   :  { %2002 = vperm.xlu1 %4852, %v179_v42  }
 0x201   :  { %1917 = vperm.xlu0 %4853, %v175_v44  }
 0x203   :  { %1998 = vperm.xlu1 %4852, %v178_v11  }
 0x205   :  { %1912 = vperm.xlu0 %4853, %v174_v33  }
 0x207   :  { %1994 = vperm.xlu1 %4852, %v177_v31   ;;  %v1007_v31 = vld [vmem:[%s7517_s2 + $0x28] sm:$0xff] }
 0x209   :  { %1907 = vperm.xlu0 %4853, %v173_v50  }
 0x20b   :  { %1990 = vperm.xlu1 %4852, %v176_v43  }
 0x20f   :  { %1986 = vperm.xlu1 %4852, %v175_v44  }
 0x213   :  { %1982 = vperm.xlu1 %4852, %v174_v33  }
 0x217   :  { %4854 = vset.pattern.permute.xlu1 %v5005_v19 }
 0x220   :  { %v1029_v34 = vpop.permute.xlu0 %1028 }
 0x224   :  { %v1037_v48 = vpop.permute.xlu1 %1036 }
 0x225   :  { %v1045_v35 = vpop.permute.xlu0 %1044  ;;  %v1067_v12 = vsel %vm225_vm1, %v1029_v34, %v1037_v48 }
 0x226   :  { %v1063_v18 = vsel %vm225_vm1, %v1037_v48, %v1045_v35 }
 0x228   :  { %v1053_v46 = vpop.permute.xlu1 %1052 }
 0x229   :  { %v1031_v47 = vpop.permute.xlu0 %1030  ;;  %v1071_v14 = vsel %vm225_vm1, %v1053_v46, %v1029_v34  ;;  %v1059_v15 = vsel %vm225_vm1, %v1045_v35, %v1053_v46  ;;  %v1008_v34 = vld [vmem:[%s7517_s2 + $0x30] sm:$0xff] }
 0x22c   :  { %v1039_v49 = vpop.permute.xlu1 %1038 }
 0x22d   :  { %v1068_v52 = vsel %vm225_vm1, %v1031_v47, %v1039_v49 }
 0x22e   :  { %v1047_v55 = vpop.permute.xlu0 %1046 }
 0x22f   :  { %v1064_v13 = vsel %vm225_vm1, %v1039_v49, %v1047_v55 }
 0x230   :  { %v1055_v51 = vpop.permute.xlu1 %1054 }
 0x231   :  { %v1060_v1 = vsel %vm225_vm1, %v1047_v55, %v1055_v51  ;;  %v1072_v20 = vsel %vm225_vm1, %v1055_v51, %v1031_v47  ;;  %v1009_v51 = vld [vmem:[%s7517_s2 + $0x38] sm:$0xff] }
 0x232   :  { %v1049_v36 = vpop.permute.xlu0 %1048 }
 0x234   :  { %v1033_v53 = vpop.permute.xlu1 %1032 }
 0x236   :  { %v1027_v54 = vpop.permute.xlu0 %1026 }
 0x238   :  { %v1041_v59 = vpop.permute.xlu1 %1040 }
 0x239   :  { %v1069_v61 = vsel %vm225_vm1, %v1033_v53, %v1041_v59  ;;  %v1065_v10 = vsel %vm225_vm1, %v1041_v59, %v1049_v36 }
 0x23a   :  { %1421 = vmatprep.subr.mxu0 %v1069_v61  ;;  %v1043_v3 = vpop.permute.xlu0 %1042 }
 0x23c   :  { %v1057_v4 = vpop.permute.xlu1 %1056 }
 0x23d   :  { %v1073_v7 = vsel %vm225_vm1, %v1057_v4, %v1033_v53  ;;  %v1061_v19 = vsel %vm225_vm1, %v1049_v36, %v1057_v4 }
 0x23e   :  { %1422 = vmatpush1.msra.mxu0 %v1073_v7  ;;  %1534 = vmatprep.subr.mxu1 %v1061_v19  ;;  %v5585_v8 = vpop.permute.xlu0 %1080  ;;  %v1019_v19 = vld [vmem:[%s7517_s2 + $0x88] sm:$0xff] }
 0x23f   :  { %1423 = vmatprep.subr.mxu0 %v1068_v52  ;;  %1535 = vmatpush1.msra.mxu1 %v1065_v10  ;;  %v1021_v52 = vld [vmem:[%s7517_s2 + $0x98] sm:$0xff]  ;;  %v1022_v10 = vld [vmem:[%s7517_s2 + $0xa0] sm:$0xff] }
 0x240   :  { %1536 = vmatprep.subr.mxu1 %v1060_v1  ;;  %v1035_v32 = vpop.permute.xlu1 %1034  ;;  %1424 = vmatpush1.msra.mxu0 %v1072_v20  ;;  %v1023_v1 = vld [vmem:[%s7517_s2 + $0xa8] sm:$0xff]  ;;  %v1024_v20 = vld [vmem:[%s7517_s2 + $0xb0] sm:$0xff] }
 0x241   :  { %1425 = vmatprep.subr.mxu0 %v1067_v12  ;;  %1537 = vmatpush1.msra.mxu1 %v1064_v13  ;;  %v1066_v16 = vsel %vm225_vm1, %v1027_v54, %v1035_v32  ;;  %v1062_v40 = vsel %vm225_vm1, %v1035_v32, %v1043_v3  ;;  %v1025_v32 = vld [vmem:[%s7517_s2 + $0xb8] sm:$0xff] }
 0x242   :  { %1426 = vmatpush1.msra.mxu0 %v1071_v14  ;;  %1538 = vmatprep.subr.mxu1 %v1059_v15  ;;  %v1087_v17 = vpop.permute.xlu0 %1086 }
 0x243   :  { %1427 = vmatprep.subr.mxu0 %v1066_v16  ;;  %1539 = vmatpush1.msra.mxu1 %v1063_v18 }
 0x244   :  { %v1051_v5 = vpop.permute.xlu1 %1050 }
 0x245   :  { %v1070_v37 = vsel %vm225_vm1, %v1051_v5, %v1027_v54  ;;  %v1058_v38 = vsel %vm225_vm1, %v1043_v3, %v1051_v5  ;;  %v1018_v3 = vld [vmem:[%s7517_s2 + $0x80] sm:$0xff] }
 0x246   :  { %1428 = vmatpush1.msra.mxu0 %v1070_v37  ;;  %1540 = vmatprep.subr.mxu1 %v1058_v38  ;;  %v1079_v45 = vpop.permute.xlu0 %1078 }
 0x247   :  { %4531 = vmatmul.mubr.msk.f32.vlgmr.msra.gmra.mxu0 %vm1122_vm13, %v1002_v22  ;;  %1541 = vmatpush1.msra.mxu1 %v1062_v40  ;;  %v1116_v30 = vsel %vm262_vm2, %v1079_v45, %v1087_v17 }
 0x248   :  { %v1097_v2 = vpop.permute.xlu1 %1096  ;;  %4539 = vmatmul.mubr.msk.f32.vlgmr.msra.gmra.mxu1 %vm1122_vm13, %v1002_v22  ;;  %1467 = vmatprep.mubr.f32.mxu0 %v7528_v0 }
 0x249   :  { %1580 = vmatprep.mubr.f32.mxu1 %v7528_v0 }
 0x24a   :  { %v1085_v60 = vpop.permute.xlu0 %1084 }
 0x24b   :  { %4532 = vmatmul.mubr.msk.f32.gmra.mxu0 %vm1122_vm13, %v1003_v57 }
 0x24c   :  { %v1095_v63 = vpop.permute.xlu1 %1094  ;;  %4540 = vmatmul.mubr.msk.f32.gmra.mxu1 %vm1122_vm13, %v1003_v57  ;;  %1473 = vmatprep.mubr.f32.mxu0 %v7528_v0 }
 0x24d   :  { %1586 = vmatprep.mubr.f32.mxu1 %v7528_v0  ;;  %v1112_v50 = vsel %vm262_vm2, %v1087_v17, %v1095_v63 }
 0x24e   :  { %v1077_v26 = vpop.permute.xlu0 %1076 }
 0x24f   :  { %4533 = vmatmul.mubr.msk.f32.gmra.mxu0 %vm1122_vm13, %v1004_v25  ;;  %v1115_v43 = vsel %vm262_vm2, %v1077_v26, %v1085_v60 }
 0x250   :  { %v1103_v27 = vpop.permute.xlu1 %1102  ;;  %4541 = vmatmul.mubr.msk.f32.gmra.mxu1 %vm1122_vm13, %v1004_v25  ;;  %1479 = vmatprep.mubr.f32.mxu0 %v7528_v0 }
 0x251   :  { %1592 = vmatprep.mubr.f32.mxu1 %v7528_v0  ;;  %v1120_v46 = vsel %vm262_vm2, %v1103_v27, %v1079_v45  ;;  %v1108_v55 = vsel %vm262_vm2, %v1095_v63, %v1103_v27 }
 0x252   :  { %v1089_v6 = vpop.permute.xlu0 %1088 }
 0x253   :  { %4534 = vmatmul.mubr.msk.f32.gmra.mxu0 %vm1122_vm13, %v1005_v58  ;;  %v1113_v39 = vsel %vm262_vm2, %v1089_v6, %v1097_v2  ;;  %v1117_v41 = vsel %vm262_vm2, %v5585_v8, %v1089_v6 }
 0x254   :  { %v1093_v28 = vpop.permute.xlu1 %1092  ;;  %4542 = vmatmul.mubr.msk.f32.gmra.mxu1 %vm1122_vm13, %v1005_v58  ;;  %1671 = vmatprep.subr.mxu0 %v1113_v39 }
 0x255   :  { %1672 = vmatpush1.msra.mxu0 %v1117_v41  ;;  %1485 = vmatprep.mubr.f32.mxu0 %v7528_v0  ;;  %v1111_v11 = vsel %vm262_vm2, %v1085_v60, %v1093_v28 }
 0x256   :  { %1673 = vmatprep.subr.mxu0 %v1112_v50  ;;  %1598 = vmatprep.mubr.f32.mxu1 %v7528_v0  ;;  %v1083_v44 = vpop.permute.xlu0 %1082 }
 0x257   :  { %4535 = vmatmul.mubr.msk.f32.gmra.mxu0 %vm1122_vm13, %v1006_v29 }
 0x258   :  { %1674 = vmatpush1.msra.mxu0 %v1116_v30  ;;  %v1101_v42 = vpop.permute.xlu1 %1100  ;;  %4543 = vmatmul.mubr.msk.f32.gmra.mxu1 %vm1122_vm13, %v1006_v29 }
 0x259   :  { %1675 = vmatprep.subr.mxu0 %v1111_v11  ;;  %1491 = vmatprep.mubr.f32.mxu0 %v7528_v0  ;;  %v1119_v53 = vsel %vm262_vm2, %v1101_v42, %v1077_v26  ;;  %v1107_v59 = vsel %vm262_vm2, %v1093_v28, %v1101_v42 }
 0x25a   :  { %1676 = vmatpush1.msra.mxu0 %v1115_v43  ;;  %1604 = vmatprep.mubr.f32.mxu1 %v7528_v0  ;;  %v1075_v47 = vpop.permute.xlu0 %1074 }
 0x25b   :  { %4536 = vmatmul.mubr.msk.f32.gmra.mxu0 %vm1122_vm13, %v1007_v31  ;;  %v1114_v54 = vsel %vm262_vm2, %v1075_v47, %v1083_v44 }
 0x25c   :  { %v1105_v33 = vpop.permute.xlu1 %1104  ;;  %4544 = vmatmul.mubr.msk.f32.gmra.mxu1 %vm1122_vm13, %v1007_v31  ;;  %1497 = vmatprep.mubr.f32.mxu0 %v7528_v0 }
 0x25d   :  { %v1121_v48 = vsel %vm262_vm2, %v1105_v33, %v5585_v8  ;;  %1610 = vmatprep.mubr.f32.mxu1 %v7528_v0  ;;  %v1109_v35 = vsel %vm262_vm2, %v1097_v2, %v1105_v33  ;;  %v1020_v8 = vld [vmem:[%s7517_s2 + $0x90] sm:$0xff] }
 0x25e   :  { %1784 = vmatprep.subr.mxu1 %v1121_v48 }
 0x25f   :  { %4537 = vmatmul.mubr.msk.f32.gmra.mxu0 %vm1122_vm13, %v1008_v34  ;;  %1785 = vmatpush1.msra.mxu1 %v1109_v35 }
 0x260   :  { %v1091_v49 = vpop.permute.xlu1 %1090  ;;  %4545 = vmatmul.mubr.msk.f32.gmra.mxu1 %vm1122_vm13, %v1008_v34  ;;  %1786 = vmatprep.subr.mxu1 %v1120_v46 }
 0x261   :  { %1787 = vmatpush1.msra.mxu1 %v1108_v55  ;;  %1503 = vmatprep.mubr.f32.mxu0 %v7528_v0  ;;  %v1110_v36 = vsel %vm262_vm2, %v1083_v44, %v1091_v49 }
 0x262   :  { %1677 = vmatprep.subr.mxu0 %v1110_v36  ;;  %1788 = vmatprep.subr.mxu1 %v1119_v53 }
 0x263   :  { %4538 = vmatmul.mubr.msk.f32.gmra.mxu0 %vm1122_vm13, %v1009_v51  ;;  %1616 = vmatprep.mubr.f32.mxu1 %v7528_v0 }
 0x264   :  { %1678 = vmatpush1.msra.mxu0 %v1114_v54  ;;  %1789 = vmatpush1.msra.mxu1 %v1107_v59  ;;  %v1099_v61 = vpop.permute.xlu1 %1098 }
 0x265   :  { %4546 = vmatmul.mubr.msk.f32.gmra.mxu1 %vm1122_vm13, %v1009_v51  ;;  %1711 = vmatprep.mubr.f32.mxu0 %v7528_v0  ;;  %v1118_v4 = vsel %vm262_vm2, %v1099_v61, %v1075_v47  ;;  %v1106_v7 = vsel %vm262_vm2, %v1091_v49, %v1099_v61 }
 0x266   :  { %1790 = vmatprep.subr.mxu1 %v1118_v4  ;;  %1824 = vmatprep.mubr.f32.mxu1 %v7528_v0 }
 0x267   :  { %4547 = vmatmul.mubr.msk.f32.vlgmr.msra.gmra.mxu0 %vm1122_vm13, %v1018_v3  ;;  %1791 = vmatpush1.msra.mxu1 %v1106_v7  ;;  %v5815_v42 = vpop.permute.xlu0 %1978 }
 0x268   :  { %1717 = vmatprep.mubr.f32.mxu0 %v7528_v0  ;;  %7566 = vst [vmem:[#allocation21_spill] sm:$0xff] %v5815_v42 }
 0x269   :  { %4555 = vmatmul.mubr.msk.f32.vlgmr.msra.gmra.mxu1 %vm1122_vm13, %v1018_v3 }
 0x26a   :  { %1830 = vmatprep.mubr.f32.mxu1 %v7528_v0 }
 0x26b   :  { %4548 = vmatmul.mubr.msk.f32.gmra.mxu0 %vm1122_vm13, %v1019_v19 }
 0x26c   :  { %1723 = vmatprep.mubr.f32.mxu0 %v7528_v0  ;;  %v5823_v44 = vpop.permute.xlu0 %1942 }
 0x26d   :  { %4556 = vmatmul.mubr.msk.f32.gmra.mxu1 %vm1122_vm13, %v1019_v19  ;;  %7570 = vst [vmem:[#allocation25_spill] sm:$0xff] %v5823_v44 }
 0x26e   :  { %1836 = vmatprep.mubr.f32.mxu1 %v7528_v0 }
 0x26f   :  { %4549 = vmatmul.mubr.msk.f32.gmra.mxu0 %vm1122_vm13, %v1020_v8 }
 0x270   :  { %1729 = vmatprep.mubr.f32.mxu0 %v7528_v0  ;;  %v5829_v49 = vpop.permute.xlu0 %1932 }
 0x271   :  { %4557 = vmatmul.mubr.msk.f32.gmra.mxu1 %vm1122_vm13, %v1020_v8  ;;  %v5827_v35 = vpop.permute.xlu1 %1937  ;;  %7573 = vst [vmem:[#allocation28_spill] sm:$0xff] %v5829_v49 }
 0x272   :  { %1842 = vmatprep.mubr.f32.mxu1 %v7528_v0  ;;  %7572 = vst [vmem:[#allocation27_spill] sm:$0xff] %v5827_v35 }
 0x273   :  { %4550 = vmatmul.mubr.msk.f32.gmra.mxu0 %vm1122_vm13, %v1021_v52 }
 0x274   :  { %1735 = vmatprep.mubr.f32.mxu0 %v7528_v0  ;;  %v5833_v3 = vpop.permute.xlu0 %1927 }
 0x275   :  { %4558 = vmatmul.mubr.msk.f32.gmra.mxu1 %vm1122_vm13, %v1021_v52  ;;  %7575 = vst [vmem:[#allocation30_spill] sm:$0xff] %v5833_v3 }
 0x276   :  { %1848 = vmatprep.mubr.f32.mxu1 %v7528_v0  ;;  %v5831_v54 = vpop.permute.xlu1 %2006 }
 0x277   :  { %4551 = vmatmul.mubr.msk.f32.gmra.mxu0 %vm1122_vm13, %v1022_v10  ;;  %7574 = vst [vmem:[#allocation29_spill] sm:$0xff] %v5831_v54 }
 0x278   :  { %1741 = vmatprep.mubr.f32.mxu0 %v7528_v0 }
 0x279   :  { %4559 = vmatmul.mubr.msk.f32.gmra.mxu1 %vm1122_vm13, %v1022_v10 }
 0x27a   :  { %1854 = vmatprep.mubr.f32.mxu1 %v7528_v0  ;;  %v5835_v52 = vpop.permute.xlu1 %2002 }
 0x27b   :  { %4552 = vmatmul.mubr.msk.f32.gmra.mxu0 %vm1122_vm13, %v1023_v1  ;;  %7576 = vst [vmem:[#allocation31_spill] sm:$0xff] %v5835_v52 }
 0x27c   :  { %1747 = vmatprep.mubr.f32.mxu0 %v7528_v0 }
 0x27d   :  { %4560 = vmatmul.mubr.msk.f32.gmra.mxu1 %vm1122_vm13, %v1023_v1 }
 0x27e   :  { %1860 = vmatprep.mubr.f32.mxu1 %v7528_v0  ;;  %v5839_v44 = vpop.permute.xlu1 %1998 }
 0x27f   :  { %4553 = vmatmul.mubr.msk.f32.gmra.mxu0 %vm1122_vm13, %v1024_v20  ;;  %7578 = vst [vmem:[#allocation33_spill] sm:$0xff] %v5839_v44 }
 0x280   :  { %1753 = vmatprep.mubr.f32.mxu0 %v7528_v0 }
 0x281   :  { %4561 = vmatmul.mubr.msk.f32.gmra.mxu1 %vm1122_vm13, %v1024_v20  ;;  %v5761_v13 = vpop.f32.mrf.mxu0  ;;  %v5837_v20 = vpop.permute.xlu0 %1922 }
 0x282   :  { %1866 = vmatprep.mubr.f32.mxu1 %v7528_v0  ;;  %v5759_v12 = vpop.f32.mrf.mxu1  ;;  %7577 = vst [vmem:[#allocation32_spill] sm:$0xff] %v5837_v20  ;;  %v5843_v62 = vpop.permute.xlu1 %1994 }
 0x283   :  { %4554 = vmatmul.mubr.msk.f32.gmra.mxu0 %vm1122_vm13, %v1025_v32  ;;  %v5765_v15 = vpop.f32.mrf.mxu0  ;;  %7580 = vst [vmem:[#allocation35_spill] sm:$0xff] %v5843_v62 }
 0x284   :  { %2450 = vmatprep.mubr.f32.mxu0 %v7528_v0  ;;  %v5763_v14 = vpop.f32.mrf.mxu1 }
 0x285   :  { %4562 = vmatmul.mubr.msk.f32.gmra.mxu1 %vm1122_vm13, %v1025_v32  ;;  %v5769_v17 = vpop.f32.mrf.mxu0  ;;  %v5841_v35 = vpop.permute.xlu0 %1917 }
 0x286   :  { %2539 = vmatprep.mubr.f32.mxu1 %v7528_v0  ;;  %v5767_v16 = vpop.f32.mrf.mxu1  ;;  %7579 = vst [vmem:[#allocation34_spill] sm:$0xff] %v5841_v35 }
 0x287   :  { %v5773_v5 = vpop.f32.mrf.mxu0 }
 0x288   :  { %v5771_v18 = vpop.f32.mrf.mxu1 }
 0x289   :  { %v5777_v37 = vpop.f32.mrf.mxu0 }
 0x28a   :  { %v5775_v22 = vpop.f32.mrf.mxu1 }
 0x28b   :  { %v5781_v45 = vpop.f32.mrf.mxu0 }
 0x28c   :  { %v5779_v38 = vpop.f32.mrf.mxu1 }
 0x28d   :  { %v5785_v2 = vpop.f32.mrf.mxu0 }
 0x28e   :  { %v5783_v40 = vpop.f32.mrf.mxu1 }
 0x28f   :  { %v5789_v60 = vpop.f32.mrf.mxu0 }
 0x290   :  { %v5787_v57 = vpop.f32.mrf.mxu1 }
 0x291   :  { %v5793_v25 = vpop.f32.mrf.mxu0 }
 0x292   :  { %v5791_v63 = vpop.f32.mrf.mxu1 }
 0x293   :  { %v5797_v27 = vpop.f32.mrf.mxu0 }
 0x294   :  { %v5795_v26 = vpop.f32.mrf.mxu1 }
 0x295   :  { %v5801_v6 = vpop.f32.mrf.mxu0 }
 0x296   :  { %v5799_v58 = vpop.f32.mrf.mxu1 }
 0x297   :  { %v5805_v41 = vpop.f32.mrf.mxu0 }
 0x298   :  { %v5803_v39 = vpop.f32.mrf.mxu1 }
 0x299   :  { %v5809_v29 = vpop.f32.mrf.mxu0 }
 0x29a   :  { %v5807_v28 = vpop.f32.mrf.mxu1  ;;  %7563 = vst [vmem:[#allocation18_spill] sm:$0xff] %v5809_v29 }
 0x29b   :  { %7562 = vst [vmem:[#allocation17_spill] sm:$0xff] %v5807_v28  ;;  %v5813_v30 = vpop.f32.mrf.mxu0 }
 0x29c   :  { %v5811_v50 = vpop.f32.mrf.mxu1  ;;  %7565 = vst [vmem:[#allocation20_spill] sm:$0xff] %v5813_v30 }
 0x29d   :  { %7564 = vst [vmem:[#allocation19_spill] sm:$0xff] %v5811_v50  ;;  %v5819_v31 = vpop.f32.mrf.mxu0 }
 0x29e   :  { %v5817_v11 = vpop.f32.mrf.mxu1  ;;  %7568 = vst [vmem:[#allocation23_spill] sm:$0xff] %v5819_v31 }
 0x29f   :  { %7567 = vst [vmem:[#allocation22_spill] sm:$0xff] %v5817_v11  ;;  %v5825_v33 = vpop.f32.mrf.mxu0 }
 0x2a0   :  { %v5821_v43 = vpop.f32.mrf.mxu1  ;;  %7571 = vst [vmem:[#allocation26_spill] sm:$0xff] %v5825_v33 }
 0x2a1   :  { %7569 = vst [vmem:[#allocation24_spill] sm:$0xff] %v5821_v43  ;;  %v5845_v43 = vpop.permute.xlu0 %1912 }
 0x2a2   :  { %7581 = vst [vmem:[#allocation36_spill] sm:$0xff] %v5845_v43 }
 0x307   :  { %v1463_v34 = vpop.f32.mrf.mxu0 }
 0x308   :  { %v1576_v48 = vpop.f32.mrf.mxu1  ;;  %v1464_v11 = vadd.f32 %v1463_v34, %v5761_v13  ;;  %v1908_v34 = vpop.permute.xlu0 %1907 }
 0x309   :  { %v1465_v46 = vpop.f32.mrf.mxu0  ;;  %v1577_v31 = vadd.f32 %v1576_v48, %v5759_v12 }
 0x30a   :  { %v1578_v47 = vpop.f32.mrf.mxu1  ;;  %v1466_v44 = vadd.f32 %v1465_v46, %v5765_v15  ;;  %v5865_v15 = vpop.permute.xlu1 %1990 }
 0x30b   :  { %v1469_v55 = vpop.f32.mrf.mxu0  ;;  %v1579_v35 = vadd.f32 %v1578_v47, %v5763_v14  ;;  %v7582_v47 = vld [vmem:[#allocation18_spill] sm:$0xff] }
 0x30c   :  { %v1582_v51 = vpop.f32.mrf.mxu1  ;;  %v1470_v42 = vadd.f32 %v1469_v55, %v5769_v17  ;;  %v7584_v55 = vld [vmem:[#allocation20_spill] sm:$0xff] }
 0x30d   :  { %v1471_v36 = vpop.f32.mrf.mxu0  ;;  %v1583_v50 = vadd.f32 %v1582_v51, %v5767_v16 }
 0x30e   :  { %v1584_v53 = vpop.f32.mrf.mxu1  ;;  %v1472_v62 = vadd.f32 %v1471_v36, %v5773_v5  ;;  %v7586_v36 = vld [vmem:[#allocation21_spill] sm:$0xff] }
 0x30f   :  { %v1475_v59 = vpop.f32.mrf.mxu0  ;;  %v1585_v30 = vadd.f32 %v1584_v53, %v5771_v18  ;;  %v5916_v53 = vpop.permute.xlu1 %1986 }
 0x310   :  { %v1588_v61 = vpop.f32.mrf.mxu1  ;;  %v1476_v29 = vadd.f32 %v1475_v59, %v5777_v37 }
 0x311   :  { %v1477_v4 = vpop.f32.mrf.mxu0  ;;  %v5857_v13 = vadd.f32 %v1588_v61, %v5775_v22  ;;  %v7588_v61 = vld [vmem:[#allocation22_spill] sm:$0xff] }
 0x312   :  { %v1590_v7 = vpop.f32.mrf.mxu1  ;;  %v5860_v12 = vadd.f32 %v1477_v4, %v5781_v45 }
 0x313   :  { %v1481_v19 = vpop.f32.mrf.mxu0  ;;  %v5863_v14 = vadd.f32 %v1590_v7, %v5779_v38 }
 0x314   :  { %v1594_v8 = vpop.f32.mrf.mxu1  ;;  %v5868_v16 = vadd.f32 %v1481_v19, %v5785_v2 }
 0x315   :  { %v1483_v10 = vpop.f32.mrf.mxu0  ;;  %v5871_v17 = vadd.f32 %v1594_v8, %v5783_v40 }
 0x316   :  { %v1596_v1 = vpop.f32.mrf.mxu1  ;;  %v5874_v18 = vadd.f32 %v1483_v10, %v5789_v60 }
 0x317   :  { %v1487_v32 = vpop.f32.mrf.mxu0  ;;  %v5877_v5 = vadd.f32 %v1596_v1, %v5787_v57 }
 0x318   :  { %v1600_v23 = vpop.f32.mrf.mxu1  ;;  %v5880_v45 = vadd.f32 %v1487_v32, %v5793_v25 }
 0x319   :  { %v1489_v21 = vpop.f32.mrf.mxu0  ;;  %v5883_v38 = vadd.f32 %v1600_v23, %v5791_v63 }
 0x31a   :  { %v1602_v0 = vpop.f32.mrf.mxu1  ;;  %v5886_v2 = vadd.f32 %v1489_v21, %v5797_v27 }
 0x31b   :  { %v1493_v54 = vpop.f32.mrf.mxu0  ;;  %v5889_v48 = vadd.f32 %v1602_v0, %v5795_v26  ;;  %v7583_v26 = vld [vmem:[#allocation17_spill] sm:$0xff] }
 0x31c   :  { %v1606_v49 = vpop.f32.mrf.mxu1  ;;  %v5892_v60 = vadd.f32 %v1493_v54, %v5801_v6 }
 0x31d   :  { %v1495_v56 = vpop.f32.mrf.mxu0  ;;  %v5895_v57 = vadd.f32 %v1606_v49, %v5799_v58  ;;  %v7585_v49 = vld [vmem:[#allocation19_spill] sm:$0xff] }
 0x31e   :  { %v1608_v3 = vpop.f32.mrf.mxu1  ;;  %v5898_v25 = vadd.f32 %v1495_v56, %v5805_v41 }
 0x31f   :  { %v1499_v9 = vpop.f32.mrf.mxu0  ;;  %v5901_v63 = vadd.f32 %v1608_v3, %v5803_v39 }
 0x320   :  { %v1612_v52 = vpop.f32.mrf.mxu1  ;;  %v5904_v0 = vadd.f32 %v1499_v9, %v7582_v47  ;;  %v7587_v9 = vld [vmem:[#allocation23_spill] sm:$0xff]  ;;  %v1983_v47 = vpop.permute.xlu1 %1982 }
 0x321   :  { %v1501_v24 = vpop.f32.mrf.mxu0  ;;  %v5907_v6 = vadd.f32 %v1612_v52, %v7583_v26  ;;  %v7590_v52 = vld [vmem:[#allocation24_spill] sm:$0xff] }
 0x322   :  { %v1614_v20 = vpop.f32.mrf.mxu1  ;;  %v5910_v58 = vadd.f32 %v1501_v24, %v7584_v55  ;;  %v7589_v24 = vld [vmem:[#allocation26_spill] sm:$0xff] }
 0x323   :  { %v1505_v33 = vpop.f32.mrf.mxu0  ;;  %v5913_v56 = vadd.f32 %v1614_v20, %v7585_v49  ;;  %v7592_v55 = vld [vmem:[#allocation34_spill] sm:$0xff] }
 0x324   :  { %v5919_v59 = vadd.f32 %v1505_v33, %v7587_v9 }
 0x325   :  { %v1618_v28 = vpop.f32.mrf.mxu1  ;;  %v1507_v43 = vpop.f32.mrf.mxu0 }
 0x326   :  { %v5922_v3 = vadd.f32 %v1618_v28, %v7588_v61  ;;  %v5925_v4 = vadd.f32 %v1507_v43, %v7589_v24 }
 0x327   :  { %v1620_v22 = vpop.f32.mrf.mxu1  ;;  %v1713_v37 = vpop.f32.mrf.mxu0 }
 0x328   :  { %v1873_v40 = vadd.f32 %v1713_v37, %v1464_v11  ;;  %v5928_v10 = vadd.f32 %v1620_v22, %v7590_v52 }
 0x329   :  { %v1826_v46 = vpop.f32.mrf.mxu1  ;;  %v1715_v23 = vpop.f32.mrf.mxu0 }
 0x32a   :  { %v1945_v21 = vmul.f32 %v1908_v34, %v1873_v40  ;;  %v1875_v27 = vadd.f32 %v1826_v46, %v1577_v31  ;;  %v1874_v11 = vadd.f32 %v1715_v23, %v1466_v44  ;;  %v7591_v46 = vld [vmem:[#allocation36_spill] sm:$0xff] }
 0x32b   :  { %v1828_v41 = vpop.f32.mrf.mxu1  ;;  %v1719_v51 = vpop.f32.mrf.mxu0 }
 0x32c   :  { %v2009_v39 = vadd.f32 %v7586_v36, %v1945_v21  ;;  %v1947_v31 = vmul.f32 %v1908_v34, %v1875_v27  ;;  %v1946_v44 = vmul.f32 %v1908_v34, %v1874_v11  ;;  %v1876_v54 = vadd.f32 %v1828_v41, %v1579_v35 }
 0x32d   :  { %v1877_v7 = vadd.f32 %v1719_v51, %v1470_v42  ;;  %v1832_v19 = vpop.f32.mrf.mxu1  ;;  %v1721_v8 = vpop.f32.mrf.mxu0 }
 0x32e   :  { %v2010_v1 = vadd.f32 %v7586_v36, %v1946_v44  ;;  %v1948_v20 = vmul.f32 %v1908_v34, %v1876_v54  ;;  %v1879_v32 = vadd.f32 %v1832_v19, %v1583_v50  ;;  %v2011_v35 = vadd.f32 %v7586_v36, %v1947_v31  ;;  %v7593_v31 = vld [vmem:[#allocation13_spill] sm:$0xff] }
 0x32f   :  { %v1878_v33 = vadd.f32 %v1721_v8, %v1472_v62  ;;  %v1834_v37 = vpop.f32.mrf.mxu1  ;;  %v1725_v40 = vpop.f32.mrf.mxu0  ;;  %vm2041_vm14 = vcmp.ge.f32.partialorder %v2009_v39, 0.0  ;;  %v2073_v28 = vmul.f32 0.3, %v2009_v39  ;;  %v5933_v43 = vmul.f32 %v7591_v46, %v1877_v7 }
 0x330   :  { %v1951_v42 = vmul.f32 %v7591_v46, %v1879_v32  ;;  %v1880_v23 = vadd.f32 %v1834_v37, %v1585_v30  ;;  %v1881_v21 = vadd.f32 %v1725_v40, %v1476_v29  ;;  %vm2042_vm15 = vcmp.ge.f32.partialorder %v2010_v1, 0.0  ;;  %v7595_v37 = vld [vmem:[#allocation32_spill] sm:$0xff] }
 0x331   :  { %v1950_v22 = vmul.f32 %v7591_v46, %v1878_v33  ;;  %v1838_v27 = vpop.f32.mrf.mxu1  ;;  %v1727_v11 = vpop.f32.mrf.mxu0  ;;  %v5937_v34 = vsel %vm2041_vm14, %v2009_v39, %v2073_v28  ;;  %v2074_v50 = vmul.f32 0.3, %v2010_v1  ;;  %v2012_v62 = vadd.f32 %v7586_v36, %v1948_v20 }
 0x332   :  { %v1952_v26 = vmul.f32 %v7591_v46, %v1880_v23  ;;  %v1953_v49 = vmul.f32 %v7592_v55, %v1881_v21  ;;  %v1883_v41 = vadd.f32 %v1838_v27, %v5857_v13  ;;  %v5943_v51 = vadd.f32 %v1983_v47, %v1951_v42 }
 0x333   :  { %v1882_v29 = vadd.f32 %v1727_v11, %v5860_v12  ;;  %v1840_v30 = vpop.f32.mrf.mxu1  ;;  %v5949_v39 = vsel %vm165_vm3, %v5937_v34, 0.0  ;;  %v1731_v44 = vpop.f32.mrf.mxu0  ;;  %v5951_v54 = vsel %vm2042_vm15, %v2010_v1, %v2074_v50  ;;  %v5953_v36 = vadd.f32 %v1983_v47, %v1950_v22 }
 0x334   :  { %v5955_v9 = vadd.f32 %v1983_v47, %v1952_v26  ;;  %v1955_v61 = vmul.f32 %v7592_v55, %v1883_v41  ;;  %v1884_v13 = vadd.f32 %v1840_v30, %v5863_v14  ;;  %2181 = vrot.lane.b32.xlu0 %v5949_v39, %s5003_s7  ;;  %v5962_v12 = vadd.f32 %v5916_v53, %v1953_v49 }
 0x335   :  { %v1954_v24 = vmul.f32 %v7592_v55, %v1882_v29  ;;  %v1885_v7 = vadd.f32 %v1731_v44, %v5868_v16  ;;  %v1844_v19 = vpop.f32.mrf.mxu1  ;;  %v5969_v52 = vsel %vm5301_vm4, %v5951_v54, 0.0  ;;  %v1733_v1 = vpop.f32.mrf.mxu0  ;;  %vm2043_vm0 = vcmp.ge.f32.partialorder %v2011_v35, 0.0 }
 0x336   :  { %v1956_v20 = vmul.f32 %v7592_v55, %v1884_v13  ;;  %v1887_v14 = vadd.f32 %v1844_v19, %v5871_v17  ;;  %2197 = vrot.lane.b32.xlu1 %v5969_v52, %s5003_s7  ;;  %v1886_v32 = vadd.f32 %v1733_v1, %v5874_v18  ;;  %v5977_v33 = vadd.f32 %v5916_v53, %v1955_v61 }
 0x337   :  { %v5980_v16 = vadd.f32 %v5916_v53, %v1954_v24  ;;  %v1957_v40 = vmul.f32 %v7595_v37, %v1885_v7  ;;  %v1846_v28 = vpop.f32.mrf.mxu1  ;;  %v2075_v46 = vmul.f32 0.3, %v2011_v35  ;;  %v1737_v42 = vpop.f32.mrf.mxu0  ;;  %vm2044_vm5 = vcmp.ge.f32.partialorder %v2012_v62, 0.0 }
 0x338   :  { %v1959_v23 = vmul.f32 %v7595_v37, %v1887_v14  ;;  %v1958_v17 = vmul.f32 %v7595_v37, %v1886_v32  ;;  %v1888_v21 = vadd.f32 %v1846_v28, %v5877_v5  ;;  %v5987_v18 = vadd.f32 %v5916_v53, %v1956_v20  ;;  %v7601_v14 = vld [vmem:[#allocation35_spill] sm:$0xff]  ;;  %v185_v5 = vld [vmem:[%s7520_s5 + $0x80] sm:$0xff] }
 0x339   :  { %v5989_v22 = vsel %vm2043_vm0, %v2011_v35, %v2075_v46  ;;  %v1889_v27 = vadd.f32 %v1737_v42, %v5880_v45  ;;  %v1850_v11 = vpop.f32.mrf.mxu1  ;;  %v2076_v50 = vmul.f32 0.3, %v2012_v62  ;;  %v1739_v26 = vpop.f32.mrf.mxu0  ;;  %v5993_v55 = vadd.f32 %v5865_v15, %v1957_v40  ;;  %v7598_v45 = vld [vmem:[#allocation30_spill] sm:$0xff] }
 0x33a   :  { %v5996_v49 = vadd.f32 %v5865_v15, %v1959_v23  ;;  %v1960_v41 = vmul.f32 %v7595_v37, %v1888_v21  ;;  %v6002_v53 = vsel %vm5309_vm6, %v5989_v22, 0.0  ;;  %v1891_v29 = vadd.f32 %v1850_v11, %v5883_v38  ;;  %v7602_v23 = vld [vmem:[#allocation28_spill] sm:$0xff] }
 0x33b   :  { %7597 = vst [vmem:[#allocation18_spill] sm:$0xff] %v6002_v53  ;;  %2213 = vrot.lane.b32.xlu0 %v6002_v53, %s5003_s7  ;;  %v1961_v35 = vmul.f32 %v7598_v45, %v1889_v27  ;;  %v6008_v30 = vsel %vm2044_vm5, %v2012_v62, %v2076_v50  ;;  %v1890_v44 = vadd.f32 %v1739_v26, %v5886_v2  ;;  %v1852_v61 = vpop.f32.mrf.mxu1  ;;  %v1743_v13 = vpop.f32.mrf.mxu0  ;;  %vm2046_vm9 = vcmp.ge.f32.partialorder %v5953_v36, 0.0  ;;  %v7603_v26 = vld [vmem:[#allocation33_spill] sm:$0xff] }
 0x33c   :  { %v6012_v24 = vadd.f32 %v5865_v15, %v1958_v17  ;;  %v6017_v19 = vsel %vm5325_vm8, %v6008_v30, 0.0  ;;  %v1892_v1 = vadd.f32 %v1852_v61, %v5889_v48  ;;  %v2013_v20 = vadd.f32 %v1983_v47, %v5933_v43 }
 0x33d   :  { %7600 = vst [vmem:[#allocation17_spill] sm:$0xff] %v6017_v19  ;;  %v6022_v38 = vadd.f32 %v7601_v14, %v1961_v35  ;;  %v1963_v62 = vmul.f32 %v7598_v45, %v1891_v29  ;;  %2229 = vrot.lane.b32.xlu1 %v6017_v19, %s5003_s7  ;;  %v1962_v2 = vmul.f32 %v7598_v45, %v1890_v44  ;;  %v1856_v37 = vpop.f32.mrf.mxu1  ;;  %v1745_v40 = vpop.f32.mrf.mxu0  ;;  %vm2047_vm10 = vcmp.ge.f32.partialorder %v5943_v51, 0.0 }
 0x33e   :  { %v1893_v32 = vadd.f32 %v1743_v13, %v5892_v60  ;;  %v1964_v28 = vmul.f32 %v7598_v45, %v1892_v1  ;;  %vm2045_vm7 = vcmp.ge.f32.partialorder %v2013_v20, 0.0  ;;  %v2077_v48 = vmul.f32 0.3, %v2013_v20 }
 0x33f   :  { %v1895_v43 = vadd.f32 %v1856_v37, %v5895_v57  ;;  %v6032_v47 = vadd.f32 %v5865_v15, %v1960_v41  ;;  %v6035_v46 = vmul.f32 0.3, %v6022_v38  ;;  %v6038_v42 = vadd.f32 %v7601_v14, %v1963_v62  ;;  %v1858_v60 = vpop.f32.mrf.mxu1  ;;  %v1749_v21 = vpop.f32.mrf.mxu0 }
 0x340   :  { %v1965_v17 = vmul.f32 %v7602_v23, %v1893_v32  ;;  %v6042_v27 = vadd.f32 %v7601_v14, %v1962_v2  ;;  %v6044_v11 = vsel %vm2045_vm7, %v2013_v20, %v2077_v48  ;;  %v6049_v15 = vadd.f32 %v7601_v14, %v1964_v28 }
 0x341   :  { %v1967_v57 = vmul.f32 %v7602_v23, %v1895_v43  ;;  %v6054_v50 = vsel %vm165_vm3, %v6044_v11, 0.0  ;;  %v2078_v45 = vmul.f32 0.3, %v5953_v36  ;;  %v1862_v35 = vpop.f32.mrf.mxu1  ;;  %v1751_v29 = vpop.f32.mrf.mxu0  ;;  %v1894_v61 = vadd.f32 %v1745_v40, %v5898_v25 }
 0x342   :  { %v6057_v41 = vadd.f32 %v7603_v26, %v1965_v17  ;;  %2183 = vrot.lane.b32.xlu0 %v6054_v50, %s5003_s7  ;;  %v1896_v13 = vadd.f32 %v1858_v60, %v5901_v63  ;;  %v6069_v1 = vmul.f32 0.3, %v6038_v42  ;;  %v2079_v14 = vmul.f32 0.3, %v5943_v51 }
 0x343   :  { %v6063_v44 = vadd.f32 %v7603_v26, %v1967_v57  ;;  %v6072_v20 = vsel %vm2046_vm9, %v5953_v36, %v2078_v45  ;;  %v1897_v62 = vadd.f32 %v1749_v21, %v5904_v0  ;;  %v1864_v2 = vpop.f32.mrf.mxu1  ;;  %v1966_v63 = vmul.f32 %v7602_v23, %v1894_v61  ;;  %v7604_v0 = vld [vmem:[#allocation27_spill] sm:$0xff]  ;;  %v1755_v48 = vpop.f32.mrf.mxu0 }
 0x344   :  { %v6077_v32 = vmul.f32 0.3, %v6057_v41  ;;  %v6082_v25 = vsel %vm5301_vm4, %v6072_v20, 0.0  ;;  %v1968_v37 = vmul.f32 %v7602_v23, %v1896_v13  ;;  %v6089_v36 = vsel %vm2047_vm10, %v5943_v51, %v2079_v14 }
 0x345   :  { %2199 = vrot.lane.b32.xlu1 %v6082_v25, %s5003_s7  ;;  %v1969_v40 = vmul.f32 %v7604_v0, %v1897_v62  ;;  %v1899_v28 = vadd.f32 %v1862_v35, %v5907_v6  ;;  %vm2048_vm11 = vcmp.ge.f32.partialorder %v5955_v9, 0.0  ;;  %v6095_v43 = vmul.f32 0.3, %v6063_v44  ;;  %v1868_v60 = vpop.f32.mrf.mxu1  ;;  %v7605_v6 = vld [vmem:[#allocation31_spill] sm:$0xff] }
 0x346   :  { %v6098_v17 = vadd.f32 %v7603_v26, %v1966_v63  ;;  %v6103_v23 = vsel %vm5309_vm6, %v6089_v36, 0.0  ;;  %v2080_v51 = vmul.f32 0.3, %v5955_v9  ;;  %v1898_v45 = vadd.f32 %v1751_v29, %v5910_v58 }
 0x347   :  { %2215 = vrot.lane.b32.xlu0 %v6103_v23, %s5003_s7  ;;  %v6109_v21 = vadd.f32 %v7605_v6, %v1969_v40  ;;  %v1971_v57 = vmul.f32 %v7604_v0, %v1899_v28  ;;  %v1900_v35 = vadd.f32 %v1864_v2, %v5913_v56  ;;  %vm2049_vm12 = vcmp.ge.f32.partialorder %v5962_v12, 0.0  ;;  %v1870_v40 = vpop.f32.mrf.mxu1 }
 0x348   :  { %v6115_v61 = vsel %vm2048_vm11, %v5955_v9, %v2080_v51  ;;  %v2081_v13 = vmul.f32 0.3, %v5962_v12  ;;  %v1901_v14 = vadd.f32 %v1755_v48, %v5919_v59  ;;  %v6121_v62 = vadd.f32 %v7603_v26, %v1968_v37  ;;  %v7606_v26 = vld [vmem:[#allocation25_spill] sm:$0xff]  ;;  %v1757_v37 = vpop.f32.mrf.mxu0 }
 0x349   :  { %v6124_v63 = vadd.f32 %v7605_v6, %v1971_v57  ;;  %v6129_v58 = vsel %vm5325_vm8, %v6115_v61, 0.0  ;;  %v1970_v56 = vmul.f32 %v7604_v0, %v1898_v45  ;;  %v1972_v9 = vmul.f32 %v7604_v0, %v1900_v35 }
 0x34a   :  { %2231 = vrot.lane.b32.xlu1 %v6129_v58, %s5003_s7  ;;  %v6136_v59 = vsel %vm2049_vm12, %v5962_v12, %v2081_v13  ;;  %v1973_v29 = vmul.f32 %v7606_v26, %v1901_v14  ;;  %v1903_v2 = vadd.f32 %v1868_v60, %v5922_v3  ;;  %v6141_v28 = vmul.f32 0.3, %v6109_v21  ;;  %v7607_v3 = vld [vmem:[#allocation29_spill] sm:$0xff] }
 0x34b   :  { %v6144_v48 = vmul.f32 0.3, %v6124_v63  ;;  %v6149_v51 = vsel %vm165_vm3, %v6136_v59, 0.0  ;;  %vm2050_vm14 = vcmp.ge.f32.partialorder %v5980_v16, 0.0  ;;  %v2034_v12 = vadd.f32 %v7605_v6, %v1970_v56 }
 0x34c   :  { %2185 = vrot.lane.b32.xlu0 %v6149_v51, %s5003_s7  ;;  %v2037_v0 = vadd.f32 %v7607_v3, %v1973_v29  ;;  %v1975_v60 = vmul.f32 %v7606_v26, %v1903_v2  ;;  %v2082_v57 = vmul.f32 0.3, %v5980_v16  ;;  %v1902_v45 = vadd.f32 %v1757_v37, %v5925_v4 }
 0x34d   :  { %v1904_v35 = vadd.f32 %v1870_v40, %v5928_v10  ;;  %vm2051_vm15 = vcmp.ge.f32.partialorder %v5977_v33, 0.0  ;;  %v2083_v13 = vmul.f32 0.3, %v5977_v33  ;;  %v2036_v14 = vadd.f32 %v7605_v6, %v1972_v9 }
 0x34e   :  { %v2039_v56 = vadd.f32 %v7607_v3, %v1975_v60  ;;  %v6165_v19 = vsel %vm2050_vm14, %v5980_v16, %v2082_v57  ;;  %vm2052_vm0 = vcmp.ge.f32.partialorder %v5987_v18, 0.0  ;;  %v1974_v4 = vmul.f32 %v7606_v26, %v1902_v45 }
 0x34f   :  { %v6171_v29 = vsel %vm5301_vm4, %v6165_v19, 0.0  ;;  %v1976_v10 = vmul.f32 %v7606_v26, %v1904_v35  ;;  %v6176_v2 = vsel %vm2051_vm15, %v5977_v33, %v2083_v13  ;;  %v2101_v6 = vmul.f32 0.3, %v2037_v0 }
 0x350   :  { %2201 = vrot.lane.b32.xlu1 %v6171_v29, %s5003_s7  ;;  %v6183_v16 = vsel %vm5309_vm6, %v6176_v2, 0.0  ;;  %v2084_v9 = vmul.f32 0.3, %v5987_v18  ;;  %vm2053_vm5 = vcmp.ge.f32.partialorder %v5993_v55, 0.0  ;;  %v2038_v37 = vadd.f32 %v7607_v3, %v1974_v4 }
 0x351   :  { %v2040_v26 = vadd.f32 %v7607_v3, %v1976_v10  ;;  %2217 = vrot.lane.b32.xlu0 %v6183_v16, %s5003_s7  ;;  %v2085_v33 = vmul.f32 0.3, %v5993_v55  ;;  %vm2055_vm7 = vcmp.ge.f32.partialorder %v5996_v49, 0.0  ;;  %v2103_v40 = vmul.f32 0.3, %v2039_v56 }
 0x352   :  { %v6196_v60 = vsel %vm2052_vm0, %v5987_v18, %v2084_v9  ;;  %v2087_v57 = vmul.f32 0.3, %v5996_v49  ;;  %vm2069_vm9 = vcmp.ge.f32.partialorder %v2037_v0, 0.0  ;;  %vm2070_vm10 = vcmp.ge.f32.partialorder %v2038_v37, 0.0 }
 0x353   :  { %v6202_v3 = vsel %vm5325_vm8, %v6196_v60, 0.0  ;;  %v6205_v45 = vsel %vm2053_vm5, %v5993_v55, %v2085_v33  ;;  %v2102_v35 = vmul.f32 0.3, %v2038_v37  ;;  %vm2072_vm11 = vcmp.ge.f32.partialorder %v2040_v26, 0.0 }
 0x354   :  { %2233 = vrot.lane.b32.xlu1 %v6202_v3, %s5003_s7  ;;  %v2149_v18 = vsel %vm165_vm3, %v6205_v45, 0.0  ;;  %v6213_v13 = vsel %vm2055_vm7, %v5996_v49, %v2087_v57  ;;  %vm2054_vm12 = vcmp.ge.f32.partialorder %v6012_v24, 0.0  ;;  %v6219_v55 = vsel %vm2069_vm9, %v2037_v0, %v2101_v6 }
 0x355   :  { %2187 = vrot.lane.b32.xlu0 %v2149_v18, %s5003_s7  ;;  %v6217_v4 = vsel %vm2070_vm10, %v2038_v37, %v2102_v35  ;;  %v2104_v10 = vmul.f32 0.3, %v2040_v26  ;;  %v2086_v9 = vmul.f32 0.3, %v6012_v24  ;;  %vm2066_vm14 = vcmp.ge.f32.partialorder %v2034_v12, 0.0 }
 0x356   :  { %4563 = vmatprep.subr.msk.mxu0 %vm5301_vm4, %v6217_v4  ;;  %v2098_v33 = vmul.f32 0.3, %v2034_v12  ;;  %vm2071_vm15 = vcmp.ge.f32.partialorder %v2039_v56, 0.0  ;;  %vm2065_vm0 = vcmp.ge.f32.partialorder %v6109_v21, 0.0  ;;  %v2151_v49 = vsel %vm5309_vm6, %v6213_v13, 0.0 }
 0x357   :  { %4564 = vmatpush1.msk.msra.mxu0 %vm165_vm3, %v6219_v55  ;;  %v6232_v0 = vsel %vm2072_vm11, %v2040_v26, %v2104_v10  ;;  %v2118_v6 = vsel %vm2054_vm12, %v6012_v24, %v2086_v9  ;;  %v6235_v37 = vsel %vm2071_vm15, %v2039_v56, %v2103_v40  ;;  %v6245_v35 = vsel %vm2065_vm0, %v6109_v21, %v6141_v28  ;;  %v181_v9 = vld [vmem:[%s7520_s5 + $0x60] sm:$0xff] }
 0x358   :  { %2315 = vrot.lane.b32.xlu1 %v2151_v49, %s5004_s0  ;;  %4583 = vmatprep.subr.msk.mxu1 %vm5325_vm8, %v6232_v0  ;;  %v6241_v57 = vsel %vm2066_vm14, %v2034_v12, %v2098_v33  ;;  %vm2068_vm5 = vcmp.ge.f32.partialorder %v2036_v14, 0.0  ;;  %v2100_v53 = vmul.f32 0.3, %v2036_v14  ;;  %v2150_v24 = vsel %vm5301_vm4, %v2118_v6, 0.0 }
 0x359   :  { %2219 = vrot.lane.b32.xlu0 %v2151_v49, %s5003_s7  ;;  %4565 = vmatprep.subr.msk.mxu0 %vm5301_vm4, %v6241_v57  ;;  %vm2062_vm7 = vcmp.ge.f32.partialorder %v6098_v17, 0.0  ;;  %v2094_v12 = vmul.f32 0.3, %v6098_v17  ;;  %vm2067_vm9 = vcmp.ge.f32.partialorder %v6124_v63, 0.0  ;;  %vm2061_vm10 = vcmp.ge.f32.partialorder %v6057_v41, 0.0 }
 0x35a   :  { %4584 = vmatpush1.msk.msra.mxu1 %vm5309_vm6, %v6235_v37  ;;  %4566 = vmatpush1.msk.msra.mxu0 %vm165_vm3, %v6245_v35  ;;  %v6262_v21 = vsel %vm2068_vm5, %v2036_v14, %v2100_v53  ;;  %v6266_v28 = vsel %vm2067_vm9, %v6124_v63, %v6144_v48  ;;  %vm2064_vm11 = vcmp.ge.f32.partialorder %v6121_v62, 0.0  ;;  %v2096_v26 = vmul.f32 0.3, %v6121_v62 }
 0x35b   :  { %4585 = vmatprep.subr.msk.mxu1 %vm5325_vm8, %v6262_v21  ;;  %v6274_v56 = vsel %vm2062_vm7, %v6098_v17, %v2094_v12  ;;  %vm2056_vm12 = vcmp.ge.f32.partialorder %v6032_v47, 0.0  ;;  %v2088_v53 = vmul.f32 0.3, %v6032_v47  ;;  %vm2058_vm14 = vcmp.ge.f32.partialorder %v6042_v27, 0.0 }
 0x35c   :  { %2203 = vrot.lane.b32.xlu1 %v2150_v24, %s5003_s7  ;;  %4567 = vmatprep.subr.msk.mxu0 %vm5301_vm4, %v6274_v56  ;;  %v2090_v63 = vmul.f32 0.3, %v6042_v27  ;;  %vm2063_vm15 = vcmp.ge.f32.partialorder %v6063_v44, 0.0  ;;  %vm2057_vm0 = vcmp.ge.f32.partialorder %v6022_v38, 0.0  ;;  %v2125_v17 = vsel %vm2061_vm10, %v6057_v41, %v6077_v32 }
 0x35d   :  { %2283 = vrot.lane.b32.xlu0 %v2149_v18, %s5004_s0  ;;  %4586 = vmatpush1.msk.msra.mxu1 %vm5309_vm6, %v6266_v28  ;;  %v2128_v48 = vsel %vm2064_vm11, %v6121_v62, %v2096_v26  ;;  %v2120_v14 = vsel %vm2056_vm12, %v6032_v47, %v2088_v53  ;;  %vm2060_vm5 = vcmp.ge.f32.partialorder %v6049_v15, 0.0  ;;  %v2127_v18 = vsel %vm2063_vm15, %v6063_v44, %v6095_v43  ;;  %v2174_v62 = vld [vmem:[#allocation4 + $0x28] sm:$0xff] }
 0x35e   :  { %4568 = vmatpush1.msk.msra.mxu0 %vm165_vm3, %v2125_v17  ;;  %4587 = vmatprep.subr.msk.mxu1 %vm5325_vm8, %v2128_v48  ;;  %v2122_v40 = vsel %vm2058_vm14, %v6042_v27, %v2090_v63  ;;  %v2092_v10 = vmul.f32 0.3, %v6049_v15  ;;  %v6306_v41 = vsel %vm5325_vm8, %v2120_v14, 0.0  ;;  %v2121_v47 = vsel %vm2057_vm0, %v6022_v38, %v6035_v46 }
 0x35f   :  { %4569 = vmatprep.subr.msk.mxu0 %vm5301_vm4, %v2122_v40  ;;  %4588 = vmatpush1.msk.msra.mxu1 %vm5309_vm6, %v2127_v18  ;;  %vm2059_vm7 = vcmp.ge.f32.partialorder %v6038_v42, 0.0  ;;  %v2153_v46 = vsel %vm165_vm3, %v2121_v47, 0.0  ;;  %v2165_v32 = vsel %vm165_vm3, %v6219_v55, 0.0  ;;  %vm2373_vm9 = vcmask 523264  }
 0x360   :  { %2235 = vrot.lane.b32.xlu1 %v6306_v41, %s5003_s7  ;;  %4570 = vmatpush1.msk.msra.mxu0 %vm165_vm3, %v2121_v47  ;;  %v2124_v27 = vsel %vm2060_vm5, %v6049_v15, %v2092_v10  ;;  %v2123_v44 = vsel %vm2059_vm7, %v6038_v42, %v6069_v1  ;;  %v2160_v42 = vsel %vm5325_vm8, %v2128_v48, 0.0  ;;  %v2161_v15 = vsel %vm165_vm3, %v6245_v35, 0.0 }
 0x361   :  { %4589 = vmatprep.subr.msk.mxu1 %vm5325_vm8, %v2124_v27  ;;  %2299 = vrot.lane.b32.xlu0 %v2150_v24, %s5004_s0  ;;  %v2155_v38 = vsel %vm5309_vm6, %v2123_v44, 0.0  ;;  %v2162_v1 = vsel %vm5301_vm4, %v6241_v57, 0.0  ;;  %v2167_v43 = vsel %vm5309_vm6, %v6235_v37, 0.0  ;;  %v7611_v37 = vmov 1   ;;  %v183_v57 = vld [vmem:[%s7520_s5 + $0x70] sm:$0xff] }
 0x362   :  { %4571 = vmatprep.subr.msk.mxu0 %vm5301_vm4, %v2118_v6  ;;  %4590 = vmatpush1.msk.msra.mxu1 %vm5309_vm6, %v2123_v44 }
 0x363   :  { %4572 = vmatpush1.msk.msra.mxu0 %vm165_vm3, %v6205_v45  ;;  %4591 = vmatprep.subr.msk.mxu1 %vm5325_vm8, %v2120_v14  ;;  %v2176_v45 = vld [vmem:[#allocation4 + $0x38] sm:$0xff] }
 0x364   :  { %2317 = vrot.lane.b32.xlu1 %v2155_v38, %s5004_s0  ;;  %4573 = vmatprep.subr.msk.mxu0 %vm5301_vm4, %v6165_v19  ;;  %v2154_v19 = vsel %vm5301_vm4, %v2122_v40, 0.0 }
 0x365   :  { %4592 = vmatpush1.msk.msra.mxu1 %vm5309_vm6, %v6213_v13  ;;  %4574 = vmatpush1.msk.msra.mxu0 %vm165_vm3, %v6136_v59  ;;  %v2175_v59 = vld [vmem:[#allocation4 + $0x30] sm:$0xff] }
 0x366   :  { %4593 = vmatprep.subr.msk.mxu1 %vm5325_vm8, %v6196_v60  ;;  %2189 = vrot.lane.b32.xlu0 %v2153_v46, %s5003_s7  ;;  %v2168_v60 = vsel %vm5325_vm8, %v6232_v0, 0.0 }
 0x367   :  { %4575 = vmatprep.subr.msk.mxu0 %vm5301_vm4, %v6072_v20  ;;  %4594 = vmatpush1.msk.msra.mxu1 %vm5309_vm6, %v6176_v2  ;;  %v2164_v20 = vsel %vm5325_vm8, %v6262_v21, 0.0  ;;  %v2166_v2 = vsel %vm5301_vm4, %v6217_v4, 0.0 }
 0x368   :  { %4576 = vmatpush1.msk.msra.mxu0 %vm165_vm3, %v6044_v11  ;;  %4595 = vmatprep.subr.msk.mxu1 %vm5325_vm8, %v6115_v61  ;;  %v2163_v11 = vsel %vm5309_vm6, %v6266_v28, 0.0  ;;  %v7608_v61 = vmov 0.0  }
 0x369   :  { %2205 = vrot.lane.b32.xlu1 %v2154_v19, %s5003_s7  ;;  %4577 = vmatprep.subr.msk.mxu0 %vm5301_vm4, %v5951_v54  ;;  %v2156_v54 = vsel %vm5325_vm8, %v2124_v27, 0.0 }
 0x36a   :  { %4596 = vmatpush1.msk.msra.mxu1 %vm5309_vm6, %v6089_v36  ;;  %4578 = vmatpush1.msk.msra.mxu0 %vm165_vm3, %v5937_v34  ;;  %v2159_v34 = vsel %vm5309_vm6, %v2127_v18, 0.0  ;;  %v2173_v36 = vld [vmem:[#allocation4 + $0x20] sm:$0xff] }
 0x36b   :  { %4597 = vmatprep.subr.msk.mxu1 %vm5325_vm8, %v6008_v30  ;;  %2221 = vrot.lane.b32.xlu0 %v2155_v38, %s5003_s7  ;;  %v2157_v30 = vsel %vm165_vm3, %v2125_v17, 0.0 }
 0x36c   :  { %4598 = vmatpush1.msk.msra.mxu1 %vm5309_vm6, %v5989_v22  ;;  %v2158_v22 = vsel %vm5301_vm4, %v6274_v56, 0.0  ;;  %4579 = vmatmul.mubr.msk.f32.vlgmr.msra.gmra.mxu0 %vm2373_vm9, %v2173_v36 }
 0x36d   :  { %2237 = vrot.lane.b32.xlu1 %v2156_v54, %s5003_s7  ;;  %4599 = vmatmul.mubr.msk.f32.vlgmr.msra.gmra.mxu1 %vm2373_vm9, %v2173_v36 }
 0x36e   :  { %2456 = vmatprep.mubr.f32.mxu0 %v7608_v61  ;;  %2545 = vmatprep.mubr.f32.mxu1 %v7608_v61 }
 0x36f   :  { %2285 = vrot.lane.b32.xlu0 %v2153_v46, %s5004_s0 }
 0x370   :  { %4580 = vmatmul.mubr.msk.f32.gmra.mxu0 %vm2373_vm9, %v2174_v62 }
 0x371   :  { %2333 = vrot.lane.b32.xlu1 %v2156_v54, %s5004_s0  ;;  %4600 = vmatmul.mubr.msk.f32.gmra.mxu1 %vm2373_vm9, %v2174_v62 }
 0x372   :  { %2462 = vmatprep.mubr.f32.mxu0 %v7608_v61  ;;  %2551 = vmatprep.mubr.f32.mxu1 %v7608_v61 }
 0x373   :  { %2301 = vrot.lane.b32.xlu0 %v2154_v19, %s5004_s0 }
 0x374   :  { %4581 = vmatmul.mubr.msk.f32.gmra.mxu0 %vm2373_vm9, %v2175_v59 }
 0x375   :  { %2319 = vrot.lane.b32.xlu1 %v2159_v34, %s5004_s0  ;;  %4601 = vmatmul.mubr.msk.f32.gmra.mxu1 %vm2373_vm9, %v2175_v59 }
 0x376   :  { %2468 = vmatprep.mubr.f32.mxu0 %v7608_v61  ;;  %2557 = vmatprep.mubr.f32.mxu1 %v7608_v61 }
 0x377   :  { %2191 = vrot.lane.b32.xlu0 %v2157_v30, %s5003_s7 }
 0x378   :  { %4582 = vmatmul.mubr.msk.f32.gmra.mxu0 %vm2373_vm9, %v2176_v45 }
 0x379   :  { %2207 = vrot.lane.b32.xlu1 %v2158_v22, %s5003_s7  ;;  %4602 = vmatmul.mubr.msk.f32.gmra.mxu1 %vm2373_vm9, %v2176_v45 }
 0x37a   :  { %2640 = vmatprep.mubr.f32.mxu0 %v7608_v61  ;;  %2729 = vmatprep.mubr.f32.mxu1 %v7608_v61 }
 0x37b   :  { %2223 = vrot.lane.b32.xlu0 %v2159_v34, %s5003_s7 }
 0x37d   :  { %2239 = vrot.lane.b32.xlu1 %v2160_v42, %s5003_s7 }
 0x37f   :  { %2287 = vrot.lane.b32.xlu0 %v2157_v30, %s5004_s0 }
 0x381   :  { %2335 = vrot.lane.b32.xlu1 %v2160_v42, %s5004_s0 }
 0x383   :  { %2303 = vrot.lane.b32.xlu0 %v2158_v22, %s5004_s0 }
 0x385   :  { %2321 = vrot.lane.b32.xlu1 %v2163_v11, %s5004_s0 }
 0x387   :  { %2193 = vrot.lane.b32.xlu0 %v2161_v15, %s5003_s7 }
 0x389   :  { %2209 = vrot.lane.b32.xlu1 %v2162_v1, %s5003_s7 }
 0x38b   :  { %2225 = vrot.lane.b32.xlu0 %v2163_v11, %s5003_s7 }
 0x38d   :  { %2241 = vrot.lane.b32.xlu1 %v2164_v20, %s5003_s7 }
 0x38f   :  { %2289 = vrot.lane.b32.xlu0 %v2161_v15, %s5004_s0 }
 0x391   :  { %2337 = vrot.lane.b32.xlu1 %v2164_v20, %s5004_s0 }
 0x393   :  { %2305 = vrot.lane.b32.xlu0 %v2162_v1, %s5004_s0 }
 0x395   :  { %2195 = vrot.lane.b32.xlu1 %v2165_v32, %s5003_s7 }
 0x397   :  { %2227 = vrot.lane.b32.xlu0 %v2167_v43, %s5003_s7 }
 0x399   :  { %2323 = vrot.lane.b32.xlu1 %v2167_v43, %s5004_s0 }
 0x39b   :  { %2291 = vrot.lane.b32.xlu0 %v2165_v32, %s5004_s0 }
 0x39d   :  { %2211 = vrot.lane.b32.xlu1 %v2166_v2, %s5003_s7 }
 0x39f   :  { %2297 = vrot.lane.b32.xlu0 %v6171_v29, %s5004_s0 }
 0x3a1   :  { %2243 = vrot.lane.b32.xlu1 %v2168_v60, %s5003_s7 }
 0x3a3   :  { %2281 = vrot.lane.b32.xlu0 %v6149_v51, %s5004_s0 }
 0x3a5   :  { %2331 = vrot.lane.b32.xlu1 %v6306_v41, %s5004_s0 }
 0x3a6   :  { %v6467_v29 = vpop.permute.xlu0 %2181 }
 0x3a7   :  { %2307 = vrot.lane.b32.xlu0 %v2166_v2, %s5004_s0 }
 0x3a8   :  { %v6473_v13 = vpop.permute.xlu1 %2197 }
 0x3a9   :  { %2313 = vrot.lane.b32.xlu1 %v6183_v16, %s5004_s0 }
 0x3ab   :  { %2295 = vrot.lane.b32.xlu0 %v6082_v25, %s5004_s0 }
 0x3ad   :  { %2329 = vrot.lane.b32.xlu1 %v6202_v3, %s5004_s0  ;;  %v6477_v51 = vpop.permute.xlu0 %2213 }
 0x3af   :  { %2279 = vrot.lane.b32.xlu0 %v6054_v50, %s5004_s0  ;;  %v6482_v4 = vpop.permute.xlu1 %2229  ;;  %v184_v50 = vld [vmem:[%s7520_s5 + $0x78] sm:$0xff] }
 0x3b1   :  { %2339 = vrot.lane.b32.xlu1 %v2168_v60, %s5004_s0 }
 0x3b3   :  { %2293 = vrot.lane.b32.xlu0 %v5969_v52, %s5004_s0 }
 0x3b4   :  { %v6486_v16 = vpop.permute.xlu0 %2183 }
 0x3b5   :  { %2311 = vrot.lane.b32.xlu1 %v6103_v23, %s5004_s0  ;;  %v182_v23 = vld [vmem:[%s7520_s5 + $0x68] sm:$0xff] }
 0x3b7   :  { %2277 = vrot.lane.b32.xlu0 %v5949_v39, %s5004_s0  ;;  %v6492_v25 = vpop.permute.xlu1 %2199  ;;  %v7609_v39 = vld [vmem:[#allocation18_spill] sm:$0xff] }
 0x3b9   :  { %2327 = vrot.lane.b32.xlu1 %v6129_v58, %s5004_s0  ;;  %v6499_v3 = vpop.permute.xlu0 %2215  ;;  %v7610_v58 = vld [vmem:[#allocation17_spill] sm:$0xff] }
 0x3bb   :  { %2977 = vperm.xlu0 %4853, %v184_v50  }
 0x3bc   :  { %v6501_v52 = vpop.permute.xlu1 %2231 }
 0x3bd   :  { %2309 = vrot.lane.b32.xlu1 %v7609_v39, %s5004_s0 }
 0x3be   :  { %v6508_v55 = vpop.permute.xlu0 %2185 }
 0x3bf   :  { %2967 = vperm.xlu0 %4853, %v182_v23  }
 0x3c1   :  { %2325 = vrot.lane.b32.xlu1 %v7610_v58, %s5004_s0 }
 0x3c2   :  { %v6515_v33 = vpop.permute.xlu1 %2201 }
 0x3c3   :  { %2962 = vperm.xlu0 %4853, %v181_v9   ;;  %v6517_v49 = vpop.permute.xlu0 %2217 }
 0x3c5   :  { %2972 = vperm.xlu1 %4854, %v183_v57  }
 0x3c6   :  { %v6519_v0 = vpop.permute.xlu1 %2233 }
 0x3c7   :  { %v6521_v6 = vpop.permute.xlu0 %2187  ;;  %4856 = vset.pattern.permute.xlu0 %v7611_v37 }
 0x3c8   :  { %2997 = vperm.xlu0 %4856, %v181_v9  }
 0x3c9   :  { %4855 = vset.pattern.permute.xlu1 %v7611_v37 }
 0x3ca   :  { %v6527_v35 = vpop.permute.xlu1 %2315  ;;  %3009 = vperm.xlu1 %4855, %v184_v50  }
 0x3cb   :  { %v6529_v24 = vpop.permute.xlu0 %2219 }
 0x3ce   :  { %v6531_v12 = vpop.permute.xlu1 %2203  ;;  %3005 = vperm.xlu1 %4855, %v183_v57  }
 0x3cf   :  { %v6534_v21 = vpop.permute.xlu0 %2283 }
 0x3d2   :  { %v6536_v28 = vpop.permute.xlu1 %2235  ;;  %3001 = vperm.xlu1 %4855, %v182_v23  }
 0x3d3   :  { %v6538_v56 = vpop.permute.xlu0 %2299 }
 0x3d6   :  { %v6540_v26 = vpop.permute.xlu1 %2317 }
 0x3d8   :  { %v2190_v53 = vpop.permute.xlu0 %2189 }
 0x3db   :  { %v6542_v63 = vpop.permute.xlu1 %2205 }
 0x3dd   :  { %v6544_v17 = vpop.permute.xlu0 %2221 }
 0x3df   :  { %v2238_v48 = vpop.permute.xlu1 %2237 }
 0x3e1   :  { %v6546_v14 = vpop.permute.xlu0 %2285 }
 0x3e3   :  { %v6548_v40 = vpop.permute.xlu1 %2333 }
 0x3e5   :  { %v6550_v18 = vpop.permute.xlu0 %2301 }
 0x3e7   :  { %v6552_v10 = vpop.permute.xlu1 %2319 }
 0x3e9   :  { %v2192_v41 = vpop.permute.xlu0 %2191 }
 0x3eb   :  { %v2208_v47 = vpop.permute.xlu1 %2207 }
 0x3ec   :  { %v2266_v57 = vsel %vm225_vm1, %v2192_v41, %v2208_v47 }
 0x3ed   :  { %v2224_v27 = vpop.permute.xlu0 %2223 }
 0x3ef   :  { %v2240_v44 = vpop.permute.xlu1 %2239 }
 0x3f1   :  { %v6554_v38 = vpop.permute.xlu0 %2287 }
 0x3f3   :  { %v6556_v46 = vpop.permute.xlu1 %2335 }
 0x3f5   :  { %v6558_v19 = vpop.permute.xlu0 %2303 }
 0x3f7   :  { %v6560_v54 = vpop.permute.xlu1 %2321 }
 0x3f9   :  { %v2194_v34 = vpop.permute.xlu0 %2193 }
 0x3fb   :  { %v2210_v30 = vpop.permute.xlu1 %2209 }
 0x3fc   :  { %v2267_v39 = vsel %vm225_vm1, %v2194_v34, %v2210_v30 }
 0x3fd   :  { %v2226_v22 = vpop.permute.xlu0 %2225 }
 0x3ff   :  { %v2242_v42 = vpop.permute.xlu1 %2241 }
 0x400   :  { %v2275_v9 = vsel %vm225_vm1, %v2242_v42, %v2194_v34  ;;  %v2251_v58 = vsel %vm225_vm1, %v2226_v22, %v2242_v42  ;;  %v2274_v34 = vsel %vm225_vm1, %v2240_v44, %v2192_v41  ;;  %v2250_v42 = vsel %vm225_vm1, %v2224_v27, %v2240_v44 }
 0x401   :  { %v6562_v11 = vpop.permute.xlu0 %2289  ;;  %v2249_v41 = vsel %vm225_vm1, %v6544_v17, %v2238_v48  ;;  %v2264_v44 = vsel %vm225_vm1, %v6521_v6, %v6531_v12 }
 0x403   :  { %v6564_v15 = vpop.permute.xlu1 %2337 }
 0x405   :  { %v6566_v1 = vpop.permute.xlu0 %2305 }
 0x407   :  { %v2196_v20 = vpop.permute.xlu1 %2195 }
 0x409   :  { %v2228_v32 = vpop.permute.xlu0 %2227 }
 0x40b   :  { %v6568_v36 = vpop.permute.xlu1 %2323 }
 0x40d   :  { %v6570_v43 = vpop.permute.xlu0 %2291 }
 0x40f   :  { %v2212_v62 = vpop.permute.xlu1 %2211 }
 0x410   :  { %v2268_v59 = vsel %vm225_vm1, %v2196_v20, %v2212_v62  ;;  %v2260_v23 = vsel %vm225_vm1, %v2212_v62, %v2228_v32  ;;  %v2265_v62 = vsel %vm225_vm1, %v2190_v53, %v6542_v63 }
 0x411   :  { %2592 = vmatprep.subr.mxu0 %v2268_v59  ;;  %v6574_v2 = vpop.permute.xlu0 %2297  ;;  %v2258_v59 = vsel %vm225_vm1, %v2208_v47, %v2224_v27  ;;  %v2257_v47 = vsel %vm225_vm1, %v6542_v63, %v6544_v17  ;;  %v2263_v27 = vsel %vm225_vm1, %v6508_v55, %v6515_v33  ;;  %v2256_v63 = vsel %vm225_vm1, %v6531_v12, %v6529_v24 }
 0x412   :  { %v2255_v12 = vsel %vm225_vm1, %v6515_v33, %v6517_v49  ;;  %v2254_v33 = vsel %vm225_vm1, %v6492_v25, %v6499_v3 }
 0x413   :  { %v2244_v60 = vpop.permute.xlu1 %2243 }
 0x414   :  { %v2276_v45 = vsel %vm225_vm1, %v2244_v60, %v2196_v20  ;;  %v2252_v50 = vsel %vm225_vm1, %v2228_v32, %v2244_v60  ;;  %v2259_v20 = vsel %vm225_vm1, %v2210_v30, %v2226_v22  ;;  %v2273_v30 = vsel %vm225_vm1, %v2238_v48, %v2190_v53 }
 0x415   :  { %2593 = vmatpush1.msra.mxu0 %v2276_v45  ;;  %2681 = vmatprep.subr.mxu1 %v2252_v50  ;;  %v6594_v32 = vpop.permute.xlu0 %2281  ;;  %v2272_v53 = vsel %vm225_vm1, %v6536_v28, %v6521_v6  ;;  %v2248_v48 = vsel %vm225_vm1, %v6529_v24, %v6536_v28  ;;  %v2271_v6 = vsel %vm225_vm1, %v6519_v0, %v6508_v55 }
 0x416   :  { %2594 = vmatprep.subr.mxu0 %v2267_v39  ;;  %2682 = vmatpush1.msra.mxu1 %v2260_v23  ;;  %v2247_v28 = vsel %vm225_vm1, %v6517_v49, %v6519_v0  ;;  %v2262_v24 = vsel %vm225_vm1, %v6486_v16, %v6492_v25  ;;  %v2270_v55 = vsel %vm225_vm1, %v6501_v52, %v6486_v16  ;;  %v2169_v49 = vld [vmem:[#allocation4] sm:$0xff]  ;;  %v2170_v39 = vld [vmem:[#allocation4 + $0x8] sm:$0xff] }
 0x417   :  { %v6588_v37 = vpop.permute.xlu1 %2331  ;;  %2595 = vmatpush1.msra.mxu0 %v2275_v9  ;;  %2683 = vmatprep.subr.mxu1 %v2251_v58  ;;  %v2246_v0 = vsel %vm225_vm1, %v6499_v3, %v6501_v52  ;;  %v2261_v45 = vsel %vm225_vm1, %v6467_v29, %v6473_v13  ;;  %v2269_v16 = vsel %vm225_vm1, %v6482_v4, %v6467_v29 }
 0x418   :  { %2596 = vmatprep.subr.mxu0 %v2266_v57  ;;  %2684 = vmatpush1.msra.mxu1 %v2259_v20  ;;  %v2245_v52 = vsel %vm225_vm1, %v6477_v51, %v6482_v4  ;;  %v2253_v25 = vsel %vm225_vm1, %v6473_v13, %v6477_v51  ;;  %v2355_v51 = vsel %vm262_vm2, %v6566_v1, %v6560_v54 }
 0x419   :  { %2597 = vmatpush1.msra.mxu0 %v2274_v34  ;;  %2685 = vmatprep.subr.mxu1 %v2250_v42  ;;  %v2308_v17 = vpop.permute.xlu0 %2307  ;;  %v2347_v57 = vsel %vm262_vm2, %v6560_v54, %v6564_v15  ;;  %v2370_v20 = vsel %vm262_vm2, %v6556_v46, %v6554_v38  ;;  %v2353_v54 = vsel %vm262_vm2, %v6550_v18, %v6540_v26 }
 0x41a   :  { %2598 = vmatprep.subr.mxu0 %v2265_v62  ;;  %2686 = vmatpush1.msra.mxu1 %v2258_v59  ;;  %v2356_v29 = vsel %vm262_vm2, %v2308_v17, %v6568_v36  ;;  %v2364_v13 = vsel %vm262_vm2, %v6570_v43, %v2308_v17  ;;  %v2369_v42 = vsel %vm262_vm2, %v6548_v40, %v6546_v14  ;;  %v2178_v17 = vld [vmem:[#allocation4 + $0x48] sm:$0xff] }
 0x41b   :  { %v6610_v22 = vpop.permute.xlu1 %2313  ;;  %2599 = vmatpush1.msra.mxu0 %v2273_v30  ;;  %2687 = vmatprep.subr.mxu1 %v2249_v41  ;;  %v2368_v59 = vsel %vm262_vm2, %v6588_v37, %v6534_v21  ;;  %v2344_v30 = vsel %vm262_vm2, %v6527_v35, %v6588_v37 }
 0x41c   :  { %2600 = vmatprep.subr.mxu0 %v2264_v44  ;;  %2688 = vmatpush1.msra.mxu1 %v2257_v47 }
 0x41d   :  { %2601 = vmatpush1.msra.mxu0 %v2272_v53  ;;  %2689 = vmatprep.subr.mxu1 %v2248_v48  ;;  %v6682_v3 = vpop.permute.xlu0 %2295  ;;  %v2177_v53 = vld [vmem:[#allocation4 + $0x40] sm:$0xff] }
 0x41e   :  { %2602 = vmatprep.subr.mxu0 %v2263_v27  ;;  %2690 = vmatpush1.msra.mxu1 %v2256_v63 }
 0x41f   :  { %v6644_v60 = vpop.permute.xlu1 %2329  ;;  %2603 = vmatpush1.msra.mxu0 %v2271_v6  ;;  %2691 = vmatprep.subr.mxu1 %v2247_v28  ;;  %v2179_v6 = vld [vmem:[#allocation4 + $0x50] sm:$0xff]  ;;  %v2180_v28 = vld [vmem:[#allocation4 + $0x58] sm:$0xff] }
 0x420   :  { %2604 = vmatprep.subr.mxu0 %v2262_v24  ;;  %2692 = vmatpush1.msra.mxu1 %v2255_v12 }
 0x421   :  { %2605 = vmatpush1.msra.mxu0 %v2270_v55  ;;  %2693 = vmatprep.subr.mxu1 %v2246_v0  ;;  %v2280_v58 = vpop.permute.xlu0 %2279 }
 0x422   :  { %2606 = vmatprep.subr.mxu0 %v2261_v45  ;;  %2694 = vmatpush1.msra.mxu1 %v2254_v33  ;;  %v2358_v41 = vsel %vm262_vm2, %v2280_v58, %v6682_v3 }
 0x423   :  { %v2340_v50 = vpop.permute.xlu1 %2339  ;;  %2607 = vmatpush1.msra.mxu0 %v2269_v16  ;;  %2695 = vmatprep.subr.mxu1 %v2245_v52 }
 0x424   :  { %v2348_v23 = vsel %vm262_vm2, %v6568_v36, %v2340_v50  ;;  %4603 = vmatmul.mubr.msk.f32.vlgmr.msra.gmra.mxu0 %vm2373_vm9, %v2169_v49  ;;  %2696 = vmatpush1.msra.mxu1 %v2253_v25  ;;  %v2372_v4 = vsel %vm262_vm2, %v2340_v50, %v6570_v43  ;;  %v2363_v36 = vsel %vm262_vm2, %v6562_v11, %v6566_v1 }
 0x425   :  { %2782 = vmatprep.subr.mxu0 %v2356_v29  ;;  %4607 = vmatmul.mubr.msk.f32.vlgmr.msra.gmra.mxu1 %vm2373_vm9, %v2169_v49  ;;  %v2371_v43 = vsel %vm262_vm2, %v6564_v15, %v6562_v11  ;;  %v2354_v1 = vsel %vm262_vm2, %v6558_v19, %v6552_v10  ;;  %v2362_v11 = vsel %vm262_vm2, %v6554_v38, %v6558_v19  ;;  %v2171_v15 = vld [vmem:[#allocation4 + $0x10] sm:$0xff]  ;;  %v2294_v62 = vpop.permute.xlu0 %2293 }
 0x426   :  { %2783 = vmatpush1.msra.mxu0 %v2364_v13  ;;  %2871 = vmatprep.subr.mxu1 %v2372_v4  ;;  %v2346_v19 = vsel %vm262_vm2, %v6552_v10, %v6556_v46  ;;  %v2361_v38 = vsel %vm262_vm2, %v6546_v14, %v6550_v18  ;;  %v2352_v10 = vsel %vm262_vm2, %v6538_v56, %v6527_v35 }
 0x427   :  { %2784 = vmatprep.subr.mxu0 %v2355_v51  ;;  %2872 = vmatpush1.msra.mxu1 %v2348_v23  ;;  %v6706_v9 = vpop.permute.xlu1 %2311  ;;  %v2345_v18 = vsel %vm262_vm2, %v6540_v26, %v6548_v40  ;;  %v2360_v14 = vsel %vm262_vm2, %v6534_v21, %v6538_v56  ;;  %v2351_v56 = vsel %vm262_vm2, %v6574_v2, %v6610_v22  ;;  %v2172_v26 = vld [vmem:[#allocation4 + $0x18] sm:$0xff] }
 0x428   :  { %2646 = vmatprep.mubr.f32.mxu0 %v7608_v61  ;;  %2785 = vmatpush1.msra.mxu0 %v2363_v36  ;;  %v2359_v40 = vsel %vm262_vm2, %v6594_v32, %v6574_v2  ;;  %v2367_v35 = vsel %vm262_vm2, %v6644_v60, %v6594_v32  ;;  %v2350_v21 = vsel %vm262_vm2, %v6682_v3, %v6706_v9 }
 0x429   :  { %2873 = vmatprep.subr.mxu1 %v2371_v43  ;;  %4604 = vmatmul.mubr.msk.f32.gmra.mxu0 %vm2373_vm9, %v2170_v39  ;;  %v2343_v2 = vsel %vm262_vm2, %v6610_v22, %v6644_v60  ;;  %v2278_v44 = vpop.permute.xlu0 %2277 }
 0x42a   :  { %2735 = vmatprep.mubr.f32.mxu1 %v7608_v61  ;;  %2786 = vmatprep.subr.mxu0 %v2354_v1  ;;  %v2357_v27 = vsel %vm262_vm2, %v2278_v44, %v2294_v62 }
 0x42b   :  { %2874 = vmatpush1.msra.mxu1 %v2347_v57  ;;  %2787 = vmatpush1.msra.mxu0 %v2362_v11  ;;  %v2328_v34 = vpop.permute.xlu1 %2327 }
 0x42c   :  { %4608 = vmatmul.mubr.msk.f32.gmra.mxu1 %vm2373_vm9, %v2170_v39  ;;  %2875 = vmatprep.subr.mxu1 %v2370_v20  ;;  %v2366_v47 = vsel %vm262_vm2, %v2328_v34, %v2280_v58  ;;  %v2342_v22 = vsel %vm262_vm2, %v6706_v9, %v2328_v34  ;;  %v2452_v60 = vpop.f32.mrf.mxu0 }
 0x42d   :  { %2788 = vmatprep.subr.mxu0 %v2353_v54  ;;  %2876 = vmatpush1.msra.mxu1 %v2346_v19  ;;  %v2541_v24 = vpop.f32.mrf.mxu1 }
 0x42e   :  { %2652 = vmatprep.mubr.f32.mxu0 %v7608_v61  ;;  %2789 = vmatpush1.msra.mxu0 %v2361_v38  ;;  %v2454_v12 = vpop.f32.mrf.mxu0 }
 0x42f   :  { %2877 = vmatprep.subr.mxu1 %v2369_v42  ;;  %4605 = vmatmul.mubr.msk.f32.gmra.mxu0 %vm2373_vm9, %v2171_v15  ;;  %v2310_v46 = vpop.permute.xlu1 %2309  ;;  %v2543_v55 = vpop.f32.mrf.mxu1 }
 0x430   :  { %2741 = vmatprep.mubr.f32.mxu1 %v7608_v61  ;;  %2790 = vmatprep.subr.mxu0 %v2352_v10  ;;  %v2349_v32 = vsel %vm262_vm2, %v2294_v62, %v2310_v46  ;;  %v2458_v0 = vpop.f32.mrf.mxu0 }
 0x431   :  { %2878 = vmatpush1.msra.mxu1 %v2345_v18  ;;  %2791 = vmatpush1.msra.mxu0 %v2360_v14  ;;  %v2547_v45 = vpop.f32.mrf.mxu1 }
 0x432   :  { %4609 = vmatmul.mubr.msk.f32.gmra.mxu1 %vm2373_vm9, %v2171_v15  ;;  %2879 = vmatprep.subr.mxu1 %v2368_v59  ;;  %v2460_v33 = vpop.f32.mrf.mxu0 }
 0x433   :  { %2792 = vmatprep.subr.mxu0 %v2351_v56  ;;  %2880 = vmatpush1.msra.mxu1 %v2344_v30  ;;  %v2326_v37 = vpop.permute.xlu1 %2325  ;;  %v2549_v49 = vpop.f32.mrf.mxu1 }
 0x434   :  { %2658 = vmatprep.mubr.f32.mxu0 %v7608_v61  ;;  %2793 = vmatpush1.msra.mxu0 %v2359_v40  ;;  %v2365_v48 = vsel %vm262_vm2, %v2326_v37, %v2278_v44  ;;  %v2341_v63 = vsel %vm262_vm2, %v2310_v46, %v2326_v37  ;;  %v2464_v16 = vpop.f32.mrf.mxu0 }
 0x435   :  { %2881 = vmatprep.subr.mxu1 %v2367_v35  ;;  %4606 = vmatmul.mubr.msk.f32.gmra.mxu0 %vm2373_vm9, %v2172_v26  ;;  %v2553_v52 = vpop.f32.mrf.mxu1 }
 0x436   :  { %2747 = vmatprep.mubr.f32.mxu1 %v7608_v61  ;;  %2794 = vmatprep.subr.mxu0 %v2350_v21  ;;  %v2466_v50 = vpop.f32.mrf.mxu0  ;;  %v6830_v43 = vpop.permute.xlu0 %2977 }
 0x437   :  { %2882 = vmatpush1.msra.mxu1 %v2343_v2  ;;  %2795 = vmatpush1.msra.mxu0 %v2358_v41  ;;  %v2555_v25 = vpop.f32.mrf.mxu1 }
 0x438   :  { %4610 = vmatmul.mubr.msk.f32.gmra.mxu1 %vm2373_vm9, %v2172_v26  ;;  %2883 = vmatprep.subr.mxu1 %v2366_v47  ;;  %v2470_v3 = vpop.f32.mrf.mxu0 }
 0x439   :  { %2796 = vmatprep.subr.mxu0 %v2349_v32  ;;  %2884 = vmatpush1.msra.mxu1 %v2342_v22  ;;  %v2559_v23 = vpop.f32.mrf.mxu1 }
 0x43a   :  { %2797 = vmatpush1.msra.mxu0 %v2357_v27  ;;  %2830 = vmatprep.mubr.f32.mxu0 %v7608_v61  ;;  %v2472_v29 = vpop.f32.mrf.mxu0  ;;  %v6832_v20 = vpop.permute.xlu0 %2967 }
 0x43b   :  { %4611 = vmatmul.mubr.msk.f32.vlgmr.msra.gmra.mxu0 %vm2373_vm9, %v2177_v53  ;;  %2885 = vmatprep.subr.mxu1 %v2365_v48  ;;  %v2561_v4 = vpop.f32.mrf.mxu1 }
 0x43c   :  { %2886 = vmatpush1.msra.mxu1 %v2341_v63  ;;  %2919 = vmatprep.mubr.f32.mxu1 %v7608_v61 }
 0x43d   :  { %2836 = vmatprep.mubr.f32.mxu0 %v7608_v61  ;;  %4615 = vmatmul.mubr.msk.f32.vlgmr.msra.gmra.mxu1 %vm2373_vm9, %v2177_v53 }
 0x43e   :  { %2925 = vmatprep.mubr.f32.mxu1 %v7608_v61  ;;  %v2963_v42 = vpop.permute.xlu0 %2962 }
 0x43f   :  { %4612 = vmatmul.mubr.msk.f32.gmra.mxu0 %vm2373_vm9, %v2178_v17 }
 0x440   :  { %2842 = vmatprep.mubr.f32.mxu0 %v7608_v61  ;;  %v6834_v19 = vpop.permute.xlu1 %2972 }
 0x441   :  { %4616 = vmatmul.mubr.msk.f32.gmra.mxu1 %vm2373_vm9, %v2178_v17 }
 0x442   :  { %2931 = vmatprep.mubr.f32.mxu1 %v7608_v61 }
 0x443   :  { %4613 = vmatmul.mubr.msk.f32.gmra.mxu0 %vm2373_vm9, %v2179_v6  ;;  %v6838_v26 = vpop.permute.xlu0 %2997 }
 0x444   :  { %2848 = vmatprep.mubr.f32.mxu0 %v7608_v61 }
 0x445   :  { %4617 = vmatmul.mubr.msk.f32.gmra.mxu1 %vm2373_vm9, %v2179_v6  ;;  %v6836_v62 = vpop.permute.xlu1 %3009 }
 0x446   :  { %2937 = vmatprep.mubr.f32.mxu1 %v7608_v61 }
 0x447   :  { %4614 = vmatmul.mubr.msk.f32.gmra.mxu0 %vm2373_vm9, %v2180_v28 }
 0x448   :  { %3276 = vmatprep.mubr.f32.mxu0 %v7608_v61 }
 0x449   :  { %4618 = vmatmul.mubr.msk.f32.gmra.mxu1 %vm2373_vm9, %v2180_v28  ;;  %v6840_v53 = vpop.permute.xlu1 %3005 }
 0x44a   :  { %3365 = vmatprep.mubr.f32.mxu1 %v7608_v61 }
 0x4e4   :  { %v2642_v13 = vpop.f32.mrf.mxu0 }
 0x4e5   :  { %v2731_v51 = vpop.f32.mrf.mxu1  ;;  %v2643_v18 = vadd.f32 %v2642_v13, %v2452_v60 }
 0x4e6   :  { %v2644_v39 = vpop.f32.mrf.mxu0  ;;  %v2732_v40 = vadd.f32 %v2731_v51, %v2541_v24 }
 0x4e7   :  { %v2733_v36 = vpop.f32.mrf.mxu1  ;;  %v2645_v30 = vadd.f32 %v2644_v39, %v2454_v12 }
 0x4e8   :  { %v2734_v35 = vadd.f32 %v2733_v36, %v2543_v55 }
 0x4e9   :  { %v2648_v9 = vpop.f32.mrf.mxu0 }
 0x4ea   :  { %v2649_v21 = vadd.f32 %v2648_v9, %v2458_v0 }
 0x4eb   :  { %v2650_v1 = vpop.f32.mrf.mxu0 }
 0x4ec   :  { %v2737_v58 = vpop.f32.mrf.mxu1  ;;  %v2651_v37 = vadd.f32 %v2650_v1, %v2460_v33 }
 0x4ed   :  { %v2738_v44 = vadd.f32 %v2737_v58, %v2547_v45 }
 0x4ee   :  { %v2739_v57 = vpop.f32.mrf.mxu1 }
 0x4ef   :  { %v2654_v11 = vpop.f32.mrf.mxu0  ;;  %v2740_v32 = vadd.f32 %v2739_v57, %v2549_v49 }
 0x4f0   :  { %v2655_v48 = vadd.f32 %v2654_v11, %v2464_v16 }
 0x4f1   :  { %v2656_v34 = vpop.f32.mrf.mxu0 }
 0x4f2   :  { %v2743_v54 = vpop.f32.mrf.mxu1  ;;  %v2657_v63 = vadd.f32 %v2656_v34, %v2466_v50 }
 0x4f3   :  { %v2744_v27 = vadd.f32 %v2743_v54, %v2553_v52 }
 0x4f4   :  { %v2745_v15 = vpop.f32.mrf.mxu1 }
 0x4f5   :  { %v2660_v38 = vpop.f32.mrf.mxu0  ;;  %v2746_v17 = vadd.f32 %v2745_v15, %v2555_v25 }
 0x4f6   :  { %v2661_v0 = vadd.f32 %v2660_v38, %v2470_v3 }
 0x4f7   :  { %v2662_v10 = vpop.f32.mrf.mxu0 }
 0x4f8   :  { %v2749_v46 = vpop.f32.mrf.mxu1  ;;  %v2663_v13 = vadd.f32 %v2662_v10, %v2472_v29 }
 0x4f9   :  { %v2750_v33 = vadd.f32 %v2749_v46, %v2559_v23  ;;  %v3002_v23 = vpop.permute.xlu1 %3001 }
 0x4fa   :  { %v2751_v14 = vpop.f32.mrf.mxu1 }
 0x4fb   :  { %v2832_v59 = vpop.f32.mrf.mxu0  ;;  %v2752_v39 = vadd.f32 %v2751_v14, %v2561_v4 }
 0x4fc   :  { %v2944_v56 = vadd.f32 %v2832_v59, %v2643_v18 }
 0x4fd   :  { %v2834_v2 = vpop.f32.mrf.mxu0  ;;  %v2921_v41 = vpop.f32.mrf.mxu1 }
 0x4fe   :  { %v2980_v47 = vmul.f32 %v2963_v42, %v2944_v56  ;;  %v2945_v22 = vadd.f32 %v2834_v2, %v2645_v30  ;;  %v2946_v12 = vadd.f32 %v2921_v41, %v2732_v40 }
 0x4ff   :  { %v2838_v6 = vpop.f32.mrf.mxu0  ;;  %v2923_v28 = vpop.f32.mrf.mxu1 }
 0x500   :  { %v2981_v60 = vmul.f32 %v2963_v42, %v2945_v22  ;;  %v2948_v24 = vadd.f32 %v2838_v6, %v2649_v21  ;;  %v3012_v55 = vadd.f32 %v6838_v26, %v2980_v47  ;;  %v2947_v45 = vadd.f32 %v2923_v28, %v2734_v35 }
 0x501   :  { %v2840_v49 = vpop.f32.mrf.mxu0  ;;  %v2927_v51 = vpop.f32.mrf.mxu1  ;;  %v6845_v57 = vmul.f32 %v2963_v42, %v2946_v12 }
 0x502   :  { %v2984_v36 = vmul.f32 %v6832_v20, %v2948_v24  ;;  %v3013_v16 = vadd.f32 %v6838_v26, %v2981_v60  ;;  %v2949_v52 = vadd.f32 %v2840_v49, %v2651_v37  ;;  %v2983_v50 = vmul.f32 %v2963_v42, %v2947_v45 }
 0x503   :  { %v2950_v25 = vadd.f32 %v2927_v51, %v2738_v44  ;;  %v2844_v9 = vpop.f32.mrf.mxu0  ;;  %v2929_v1 = vpop.f32.mrf.mxu1  ;;  %vm3028_vm10 = vcmp.ge.f32.partialorder %v3012_v55, 0.0  ;;  %v3044_v58 = vmul.f32 0.3, %v3012_v55 }
 0x504   :  { %v2985_v3 = vmul.f32 %v6832_v20, %v2949_v52  ;;  %v2952_v29 = vadd.f32 %v2844_v9, %v2655_v48  ;;  %v2951_v11 = vadd.f32 %v2929_v1, %v2740_v32  ;;  %v3015_v4 = vadd.f32 %v6838_v26, %v2983_v50 }
 0x505   :  { %v2986_v34 = vmul.f32 %v6832_v20, %v2950_v25  ;;  %v3016_v54 = vadd.f32 %v3002_v23, %v2984_v36  ;;  %v2846_v15 = vpop.f32.mrf.mxu0  ;;  %v2933_v38 = vpop.f32.mrf.mxu1  ;;  %v6850_v10 = vsel %vm3028_vm10, %v3012_v55, %v3044_v58  ;;  %vm3029_vm11 = vcmp.ge.f32.partialorder %v3013_v16, 0.0 }
 0x506   :  { %v2988_v46 = vmul.f32 %v6834_v19, %v2952_v29  ;;  %v2987_v18 = vmul.f32 %v6832_v20, %v2951_v11  ;;  %v2953_v42 = vadd.f32 %v2846_v15, %v2657_v63  ;;  %v3017_v14 = vadd.f32 %v3002_v23, %v2985_v3 }
 0x507   :  { %v2954_v59 = vadd.f32 %v2933_v38, %v2744_v27  ;;  %v6857_v30 = vsel %vm165_vm3, %v6850_v10, 0.0  ;;  %v2850_v56 = vpop.f32.mrf.mxu0  ;;  %v2935_v40 = vpop.f32.mrf.mxu1  ;;  %v3045_v35 = vmul.f32 0.3, %v3013_v16  ;;  %v6859_v21 = vadd.f32 %v3002_v23, %v2986_v34 }
 0x508   :  { %v3020_v37 = vadd.f32 %v6840_v53, %v2988_v46  ;;  %v2989_v2 = vmul.f32 %v6834_v19, %v2953_v42  ;;  %3104 = vrot.lane.b32.xlu1 %v6857_v30, %s5003_s7  ;;  %v2956_v20 = vadd.f32 %v2850_v56, %v2661_v0  ;;  %v3019_v41 = vadd.f32 %v3002_v23, %v2987_v18 }
 0x509   :  { %v2990_v44 = vmul.f32 %v6834_v19, %v2954_v59  ;;  %v2955_v32 = vadd.f32 %v2935_v40, %v2746_v17  ;;  %v6866_v47 = vsel %vm3029_vm11, %v3013_v16, %v3045_v35  ;;  %v2852_v22 = vpop.f32.mrf.mxu0  ;;  %v2939_v48 = vpop.f32.mrf.mxu1  ;;  %vm3031_vm12 = vcmp.ge.f32.partialorder %v3015_v4, 0.0 }
 0x50a   :  { %v2992_v27 = vmul.f32 %v6830_v43, %v2956_v20  ;;  %v6872_v63 = vsel %vm5301_vm4, %v6866_v47, 0.0  ;;  %v2957_v6 = vadd.f32 %v2852_v22, %v2663_v13  ;;  %v3021_v28 = vadd.f32 %v6840_v53, %v2989_v2 }
 0x50b   :  { %v2991_v60 = vmul.f32 %v6834_v19, %v2955_v32  ;;  %3112 = vrot.lane.b32.xlu0 %v6872_v63, %s5003_s7  ;;  %v2958_v17 = vadd.f32 %v2939_v48, %v2750_v33  ;;  %v3047_v12 = vmul.f32 0.3, %v3015_v4  ;;  %v2941_v24 = vpop.f32.mrf.mxu1  ;;  %v6879_v55 = vadd.f32 %v6840_v53, %v2990_v44  ;;  %v3096_v32 = vld [vmem:[#allocation6 + $0x20] sm:$0xff]  ;;  %v3098_v48 = vld [vmem:[#allocation6 + $0x30] sm:$0xff] }
 0x50c   :  { %v3024_v0 = vadd.f32 %v6836_v62, %v2992_v27  ;;  %v2993_v45 = vmul.f32 %v6830_v43, %v2957_v6  ;;  %v2959_v49 = vadd.f32 %v2941_v24, %v2752_v39  ;;  %vm3032_vm14 = vcmp.ge.f32.partialorder %v3016_v54, 0.0 }
 0x50d   :  { %v3023_v13 = vadd.f32 %v6840_v53, %v2991_v60  ;;  %v2994_v51 = vmul.f32 %v6830_v43, %v2958_v17  ;;  %v6885_v36 = vsel %vm3031_vm12, %v3015_v4, %v3047_v12  ;;  %v3048_v53 = vmul.f32 0.3, %v3016_v54  ;;  %v188_v17 = vld [vmem:[%s7520_s5 + $0x98] sm:$0xff] }
 0x50e   :  { %v3056_v19 = vmul.f32 0.3, %v3024_v0  ;;  %v3025_v33 = vadd.f32 %v6836_v62, %v2993_v45  ;;  %v6891_v16 = vsel %vm5325_vm8, %v6885_v36, 0.0  ;;  %v2995_v52 = vmul.f32 %v6830_v43, %v2959_v49 }
 0x50f   :  { %v3026_v50 = vadd.f32 %v6836_v62, %v2994_v51  ;;  %3128 = vrot.lane.b32.xlu1 %v6891_v16, %s5003_s7  ;;  %vm3033_vm15 = vcmp.ge.f32.partialorder %v3017_v14, 0.0  ;;  %v3049_v39 = vmul.f32 0.3, %v3017_v14  ;;  %vm3035_vm0 = vcmp.ge.f32.partialorder %v3019_v41, 0.0 }
 0x510   :  { %v3027_v25 = vadd.f32 %v6836_v62, %v2995_v52  ;;  %v3051_v9 = vmul.f32 0.3, %v3019_v41  ;;  %vm3041_vm5 = vcmp.ge.f32.partialorder %v3025_v33, 0.0  ;;  %v3064_v58 = vsel %vm3032_vm14, %v3016_v54, %v3048_v53 }
 0x511   :  { %v3058_v1 = vmul.f32 0.3, %v3026_v50  ;;  %v3065_v3 = vsel %vm3033_vm15, %v3017_v14, %v3049_v39  ;;  %v3057_v23 = vmul.f32 0.3, %v3025_v33  ;;  %v6900_v43 = vsel %vm165_vm3, %v3064_v58, 0.0 }
 0x512   :  { %v6904_v29 = vsel %vm5301_vm4, %v3065_v3, 0.0  ;;  %v3067_v11 = vsel %vm3035_vm0, %v3019_v41, %v3051_v9  ;;  %vm3036_vm7 = vcmp.ge.f32.partialorder %v3020_v37, 0.0  ;;  %3106 = vrot.lane.b32.xlu0 %v6900_v43, %s5003_s7  ;;  %v3052_v34 = vmul.f32 0.3, %v3020_v37 }
 0x513   :  { %3114 = vrot.lane.b32.xlu1 %v6904_v29, %s5003_s7  ;;  %v6912_v62 = vsel %vm5325_vm8, %v3067_v11, 0.0  ;;  %v6914_v4 = vsel %vm3041_vm5, %v3025_v33, %v3057_v23  ;;  %vm3040_vm9 = vcmp.ge.f32.partialorder %v3024_v0, 0.0  ;;  %vm3037_vm10 = vcmp.ge.f32.partialorder %v3021_v28, 0.0 }
 0x514   :  { %4619 = vmatprep.subr.msk.mxu0 %vm5301_vm4, %v6914_v4  ;;  %v3072_v54 = vsel %vm3040_vm9, %v3024_v0, %v3056_v19  ;;  %v3053_v15 = vmul.f32 0.3, %v3021_v28  ;;  %vm3043_vm11 = vcmp.ge.f32.partialorder %v3027_v25, 0.0  ;;  %v3068_v38 = vsel %vm3036_vm7, %v3020_v37, %v3052_v34 }
 0x515   :  { %4620 = vmatpush1.msk.msra.mxu0 %vm165_vm3, %v3072_v54  ;;  %v3059_v46 = vmul.f32 0.3, %v3027_v25  ;;  %vm3042_vm12 = vcmp.ge.f32.partialorder %v3026_v50, 0.0  ;;  %vm3039_vm14 = vcmp.ge.f32.partialorder %v3023_v13, 0.0  ;;  %v6923_v18 = vsel %vm165_vm3, %v3068_v38, 0.0 }
 0x516   :  { %v3055_v42 = vmul.f32 0.3, %v3023_v13  ;;  %v3054_v14 = vmul.f32 0.3, %v6879_v55  ;;  %3130 = vrot.lane.b32.xlu0 %v6912_v62, %s5003_s7  ;;  %v3069_v59 = vsel %vm3037_vm10, %v3021_v28, %v3053_v15  ;;  %v3014_v40 = vadd.f32 %v6838_v26, %v6845_v57  ;;  %v3099_v28 = vld [vmem:[#allocation6 + $0x38] sm:$0xff] }
 0x517   :  { %3108 = vrot.lane.b32.xlu1 %v6923_v18, %s5003_s7  ;;  %v3075_v56 = vsel %vm3043_vm11, %v3027_v25, %v3059_v46  ;;  %4621 = vmatprep.subr.msk.mxu0 %vm5301_vm4, %v3069_v59  ;;  %v3074_v35 = vsel %vm3042_vm12, %v3026_v50, %v3058_v1  ;;  %vm3038_vm15 = vcmp.ge.f32.partialorder %v6879_v55, 0.0  ;;  %v3050_v2 = vmul.f32 0.3, %v6859_v21 }
 0x518   :  { %4631 = vmatprep.subr.msk.mxu1 %vm5325_vm8, %v3075_v56  ;;  %v3071_v37 = vsel %vm3039_vm14, %v3023_v13, %v3055_v42  ;;  %4622 = vmatpush1.msk.msra.mxu0 %vm165_vm3, %v3068_v38  ;;  %v3085_v26 = vsel %vm5301_vm4, %v3069_v59, 0.0  ;;  %vm3034_vm0 = vcmp.ge.f32.partialorder %v6859_v21, 0.0  ;;  %v3070_v20 = vsel %vm3038_vm15, %v6879_v55, %v3054_v14 }
 0x519   :  { %4632 = vmatpush1.msk.msra.mxu1 %vm5309_vm6, %v3074_v35  ;;  %4623 = vmatprep.subr.msk.mxu0 %vm5301_vm4, %v3065_v3  ;;  %v6948_v57 = vsel %vm5325_vm8, %v3071_v37, 0.0  ;;  %v3046_v41 = vmul.f32 0.3, %v3014_v40  ;;  %v3066_v44 = vsel %vm3034_vm0, %v6859_v21, %v3050_v2  ;;  %vm3030_vm5 = vcmp.ge.f32.partialorder %v3014_v40, 0.0 }
 0x51a   :  { %4633 = vmatprep.subr.msk.mxu1 %vm5325_vm8, %v3071_v37  ;;  %3116 = vrot.lane.b32.xlu0 %v3085_v26, %s5003_s7  ;;  %v3090_v22 = vsel %vm5309_vm6, %v3074_v35, 0.0  ;;  %v3091_v27 = vsel %vm5325_vm8, %v3075_v56, 0.0  ;;  %v3089_v6 = vsel %vm5301_vm4, %v6914_v4, 0.0  ;;  %v3086_v7 = vsel %vm5309_vm6, %v3070_v20, 0.0 }
 0x51b   :  { %3132 = vrot.lane.b32.xlu1 %v6948_v57, %s5003_s7  ;;  %4624 = vmatpush1.msk.msra.mxu0 %vm165_vm3, %v3064_v58  ;;  %v3062_v21 = vsel %vm3030_vm5, %v3014_v40, %v3046_v41  ;;  %v3082_v8 = vsel %vm5309_vm6, %v3066_v44, 0.0  ;;  %v3094_v40 = vld [vmem:[#allocation6 + $0x10] sm:$0xff] }
 0x51c   :  { %4634 = vmatpush1.msk.msra.mxu1 %vm5309_vm6, %v3070_v20  ;;  %4625 = vmatprep.subr.msk.mxu0 %vm5301_vm4, %v6866_v47  ;;  %v3088_v47 = vsel %vm165_vm3, %v3072_v54, 0.0  ;;  %v3078_v60 = vsel %vm5309_vm6, %v3062_v21, 0.0  ;;  %v3092_v54 = vld [vmem:[#allocation6] sm:$0xff] }
 0x51d   :  { %4635 = vmatprep.subr.msk.mxu1 %vm5325_vm8, %v3067_v11  ;;  %4626 = vmatpush1.msk.msra.mxu0 %vm165_vm3, %v6850_v10  ;;  %v3097_v10 = vld [vmem:[#allocation6 + $0x28] sm:$0xff] }
 0x51e   :  { %4636 = vmatpush1.msk.msra.mxu1 %vm5309_vm6, %v3066_v44  ;;  %3126 = vrot.lane.b32.xlu0 %v3090_v22, %s5003_s7 }
 0x51f   :  { %3110 = vrot.lane.b32.xlu1 %v3088_v47, %s5003_s7  ;;  %4637 = vmatprep.subr.msk.mxu1 %vm5325_vm8, %v6885_v36 }
 0x520   :  { %4627 = vmatmul.mubr.msk.f32.vlgmr.msra.gmra.mxu0 %vm1122_vm13, %v3096_v32  ;;  %4638 = vmatpush1.msk.msra.mxu1 %vm5309_vm6, %v3062_v21 }
 0x521   :  { %3282 = vmatprep.mubr.f32.mxu0 %v7608_v61  ;;  %4639 = vmatmul.mubr.msk.f32.vlgmr.msra.gmra.mxu1 %vm1122_vm13, %v3096_v32 }
 0x522   :  { %3174 = vrot.lane.b32.xlu0 %v3090_v22, %s5004_s0  ;;  %3371 = vmatprep.mubr.f32.mxu1 %v7608_v61  ;;  %v3095_v22 = vld [vmem:[#allocation6 + $0x18] sm:$0xff] }
 0x523   :  { %3158 = vrot.lane.b32.xlu1 %v3088_v47, %s5004_s0 }
 0x524   :  { %4628 = vmatmul.mubr.msk.f32.gmra.mxu0 %vm1122_vm13, %v3097_v10 }
 0x525   :  { %3288 = vmatprep.mubr.f32.mxu0 %v7608_v61  ;;  %4640 = vmatmul.mubr.msk.f32.gmra.mxu1 %vm1122_vm13, %v3097_v10 }
 0x526   :  { %3134 = vrot.lane.b32.xlu0 %v3091_v27, %s5003_s7  ;;  %3377 = vmatprep.mubr.f32.mxu1 %v7608_v61 }
 0x527   :  { %3118 = vrot.lane.b32.xlu1 %v3089_v6, %s5003_s7 }
 0x528   :  { %4629 = vmatmul.mubr.msk.f32.gmra.mxu0 %vm1122_vm13, %v3098_v48 }
 0x529   :  { %3294 = vmatprep.mubr.f32.mxu0 %v7608_v61  ;;  %4641 = vmatmul.mubr.msk.f32.gmra.mxu1 %vm1122_vm13, %v3098_v48 }
 0x52a   :  { %3124 = vrot.lane.b32.xlu0 %v3086_v7, %s5003_s7  ;;  %3383 = vmatprep.mubr.f32.mxu1 %v7608_v61 }
 0x52b   :  { %3164 = vrot.lane.b32.xlu1 %v3085_v26, %s5004_s0 }
 0x52c   :  { %4630 = vmatmul.mubr.msk.f32.gmra.mxu0 %vm1122_vm13, %v3099_v28 }
 0x52d   :  { %3466 = vmatprep.mubr.f32.mxu0 %v7608_v61  ;;  %4642 = vmatmul.mubr.msk.f32.gmra.mxu1 %vm1122_vm13, %v3099_v28 }
 0x52e   :  { %3172 = vrot.lane.b32.xlu0 %v3086_v7, %s5004_s0  ;;  %3555 = vmatprep.mubr.f32.mxu1 %v7608_v61 }
 0x52f   :  { %3156 = vrot.lane.b32.xlu1 %v6923_v18, %s5004_s0  ;;  %v3093_v18 = vld [vmem:[#allocation6 + $0x8] sm:$0xff] }
 0x532   :  { %3122 = vrot.lane.b32.xlu0 %v3082_v8, %s5003_s7 }
 0x533   :  { %3162 = vrot.lane.b32.xlu1 %v6904_v29, %s5004_s0 }
 0x536   :  { %3170 = vrot.lane.b32.xlu0 %v3082_v8, %s5004_s0  ;;  %v3100_v8 = vld [vmem:[#allocation6 + $0x40] sm:$0xff] }
 0x537   :  { %3154 = vrot.lane.b32.xlu1 %v6900_v43, %s5004_s0 }
 0x53a   :  { %3120 = vrot.lane.b32.xlu0 %v3078_v60, %s5003_s7 }
 0x53b   :  { %3166 = vrot.lane.b32.xlu1 %v3089_v6, %s5004_s0 }
 0x53e   :  { %3168 = vrot.lane.b32.xlu0 %v3078_v60, %s5004_s0 }
 0x53f   :  { %3160 = vrot.lane.b32.xlu1 %v6872_v63, %s5004_s0  ;;  %v187_v63 = vld [vmem:[%s7520_s5 + $0x90] sm:$0xff] }
 0x542   :  { %3182 = vrot.lane.b32.xlu0 %v3091_v27, %s5004_s0 }
 0x543   :  { %3152 = vrot.lane.b32.xlu1 %v6857_v30, %s5004_s0  ;;  %v186_v30 = vld [vmem:[%s7520_s5 + $0x88] sm:$0xff] }
 0x546   :  { %3178 = vrot.lane.b32.xlu0 %v6912_v62, %s5004_s0 }
 0x547   :  { %3180 = vrot.lane.b32.xlu1 %v6948_v57, %s5004_s0 }
 0x54a   :  { %3788 = vperm.xlu0 %4856, %v185_v5  }
 0x54b   :  { %3176 = vrot.lane.b32.xlu1 %v6891_v16, %s5004_s0 }
 0x54e   :  { %3798 = vperm.xlu0 %4856, %v187_v63  }
 0x54f   :  { %3793 = vperm.xlu1 %4855, %v186_v30   ;;  %v3838_v30 = vld [vmem:[#allocation7 + $0x78] sm:$0xff] }
 0x553   :  { %3803 = vperm.xlu1 %4855, %v188_v17  }
 0x57a   :  { %v3105_v12 = vpop.permute.xlu1 %3104 }
 0x57d   :  { %v3113_v24 = vpop.permute.xlu0 %3112 }
 0x57e   :  { %v3144_v34 = vsel %vm225_vm1, %v3105_v12, %v3113_v24 }
 0x581   :  { %v3129_v55 = vpop.permute.xlu1 %3128 }
 0x582   :  { %v3148_v15 = vsel %vm225_vm1, %v3129_v55, %v3105_v12 }
 0x584   :  { %v3107_v0 = vpop.permute.xlu0 %3106 }
 0x585   :  { %v3115_v45 = vpop.permute.xlu1 %3114 }
 0x586   :  { %v3145_v62 = vsel %vm225_vm1, %v3107_v0, %v3115_v45 }
 0x588   :  { %v3131_v49 = vpop.permute.xlu0 %3130 }
 0x589   :  { %v3109_v13 = vpop.permute.xlu1 %3108  ;;  %v3149_v4 = vsel %vm225_vm1, %v3131_v49, %v3107_v0 }
 0x58c   :  { %v3117_v51 = vpop.permute.xlu0 %3116 }
 0x58d   :  { %v3133_v36 = vpop.permute.xlu1 %3132  ;;  %v3146_v58 = vsel %vm225_vm1, %v3109_v13, %v3117_v51 }
 0x58e   :  { %v3150_v3 = vsel %vm225_vm1, %v3133_v36, %v3109_v13 }
 0x590   :  { %v3127_v19 = vpop.permute.xlu0 %3126 }
 0x591   :  { %v3111_v33 = vpop.permute.xlu1 %3110 }
 0x594   :  { %v7051_v16 = vpop.permute.xlu0 %3174 }
 0x595   :  { %v7053_v52 = vpop.permute.xlu1 %3158 }
 0x598   :  { %v3135_v50 = vpop.permute.xlu0 %3134 }
 0x599   :  { %v3119_v53 = vpop.permute.xlu1 %3118  ;;  %v3139_v39 = vsel %vm225_vm1, %v3127_v19, %v3135_v50  ;;  %v3151_v1 = vsel %vm225_vm1, %v3135_v50, %v3111_v33  ;;  %v3835_v50 = vld [vmem:[#allocation7 + $0x60] sm:$0xff] }
 0x59a   :  { %v3143_v25 = vsel %vm225_vm1, %v3119_v53, %v3127_v19  ;;  %v3147_v9 = vsel %vm225_vm1, %v3111_v33, %v3119_v53  ;;  %3515 = vmatprep.subr.mxu1 %v3139_v39  ;;  %v3837_v33 = vld [vmem:[#allocation7 + $0x70] sm:$0xff]  ;;  %v3834_v53 = vld [vmem:[#allocation7 + $0x58] sm:$0xff] }
 0x59b   :  { %3426 = vmatprep.subr.mxu0 %v3147_v9  ;;  %3516 = vmatpush1.msra.mxu1 %v3143_v25  ;;  %v3833_v39 = vld [vmem:[#allocation7 + $0x50] sm:$0xff]  ;;  %v3832_v25 = vld [vmem:[#allocation7 + $0x48] sm:$0xff]  ;;  %v3831_v9 = vld [vmem:[#allocation7 + $0x40] sm:$0xff] }
 0x59c   :  { %3427 = vmatpush1.msra.mxu0 %v3151_v1  ;;  %v3125_v23 = vpop.permute.xlu0 %3124  ;;  %v3830_v1 = vld [vmem:[#allocation7 + $0x38] sm:$0xff] }
 0x59d   :  { %3428 = vmatprep.subr.mxu0 %v3146_v58  ;;  %v3165_v43 = vpop.permute.xlu1 %3164  ;;  %v3142_v29 = vsel %vm225_vm1, %v3117_v51, %v3125_v23  ;;  %v3138_v11 = vsel %vm225_vm1, %v3125_v23, %v3133_v36  ;;  %v3102_v51 = vld [vmem:[#allocation6 + $0x50] sm:$0xff]  ;;  %v3826_v23 = vld [vmem:[#allocation7 + $0x18] sm:$0xff] }
 0x59e   :  { %3429 = vmatpush1.msra.mxu0 %v3150_v3  ;;  %3517 = vmatprep.subr.mxu1 %v3138_v11  ;;  %v3829_v58 = vld [vmem:[#allocation7 + $0x30] sm:$0xff]  ;;  %v3827_v3 = vld [vmem:[#allocation7 + $0x20] sm:$0xff] }
 0x59f   :  { %3430 = vmatprep.subr.mxu0 %v3145_v62  ;;  %3518 = vmatpush1.msra.mxu1 %v3142_v29  ;;  %v3824_v29 = vld [vmem:[#allocation7 + $0x8] sm:$0xff]  ;;  %v3823_v11 = vld [vmem:[#allocation7] sm:$0xff] }
 0x5a0   :  { %3431 = vmatpush1.msra.mxu0 %v3149_v4  ;;  %v7079_v38 = vpop.permute.xlu0 %3172 }
 0x5a1   :  { %3432 = vmatprep.subr.mxu0 %v3144_v34  ;;  %v7081_v46 = vpop.permute.xlu1 %3156  ;;  %v3190_v32 = vsel %vm262_vm2, %v3165_v43, %v7079_v38 }
 0x5a2   :  { %3433 = vmatpush1.msra.mxu0 %v3148_v15  ;;  %v3194_v47 = vsel %vm262_vm2, %v7081_v46, %v3165_v43  ;;  %v3825_v43 = vld [vmem:[#allocation7 + $0x10] sm:$0xff] }
 0x5a3   :  { %4643 = vmatmul.mubr.msk.f32.vlgmr.msra.gmra.mxu0 %vm1122_vm13, %v3092_v54 }
 0x5a4   :  { %3472 = vmatprep.mubr.f32.mxu0 %v7608_v61  ;;  %v3123_v42 = vpop.permute.xlu0 %3122 }
 0x5a5   :  { %v3163_v14 = vpop.permute.xlu1 %3162  ;;  %v3141_v59 = vsel %vm225_vm1, %v3115_v45, %v3123_v42  ;;  %v3137_v56 = vsel %vm225_vm1, %v3123_v42, %v3131_v49 }
 0x5a6   :  { %3519 = vmatprep.subr.mxu1 %v3137_v56 }
 0x5a7   :  { %4644 = vmatmul.mubr.msk.f32.gmra.mxu0 %vm1122_vm13, %v3093_v18  ;;  %3520 = vmatpush1.msra.mxu1 %v3141_v59 }
 0x5a8   :  { %3478 = vmatprep.mubr.f32.mxu0 %v7608_v61  ;;  %v3171_v35 = vpop.permute.xlu0 %3170 }
 0x5a9   :  { %v3155_v37 = vpop.permute.xlu1 %3154  ;;  %v3189_v48 = vsel %vm262_vm2, %v3163_v14, %v3171_v35 }
 0x5aa   :  { %v3193_v27 = vsel %vm262_vm2, %v3155_v37, %v3163_v14 }
 0x5ab   :  { %4645 = vmatmul.mubr.msk.f32.gmra.mxu0 %vm1122_vm13, %v3094_v40 }
 0x5ac   :  { %3484 = vmatprep.mubr.f32.mxu0 %v7608_v61  ;;  %v3121_v2 = vpop.permute.xlu0 %3120 }
 0x5ad   :  { %v3167_v26 = vpop.permute.xlu1 %3166  ;;  %v3140_v57 = vsel %vm225_vm1, %v3113_v24, %v3121_v2  ;;  %v3136_v20 = vsel %vm225_vm1, %v3121_v2, %v3129_v55  ;;  %v3101_v24 = vld [vmem:[#allocation6 + $0x48] sm:$0xff]  ;;  %vm3988_vm1 = vcmp.lt.s32.totalorder %v7593_v31, 34 }
 0x5ae   :  { %v3195_v41 = vsel %vm262_vm2, %v7053_v52, %v3167_v26  ;;  %v3191_v44 = vsel %vm262_vm2, %v3167_v26, %v7051_v16  ;;  %3521 = vmatprep.subr.mxu1 %v3136_v20  ;;  %v4292_v31 = vld [vmem:[#allocation9 + $0x28] sm:$0xff] }
 0x5af   :  { %3616 = vmatprep.subr.mxu0 %v3191_v44  ;;  %3522 = vmatpush1.msra.mxu1 %v3140_v57 }
 0x5b0   :  { %3617 = vmatpush1.msra.mxu0 %v3195_v41  ;;  %v3169_v21 = vpop.permute.xlu0 %3168  ;;  %4647 = vmatmul.mubr.msk.f32.vlgmr.msra.gmra.mxu1 %vm1122_vm13, %v3092_v54 }
 0x5b1   :  { %3618 = vmatprep.subr.mxu0 %v3190_v32  ;;  %v3161_v10 = vpop.permute.xlu1 %3160  ;;  %3561 = vmatprep.mubr.f32.mxu1 %v7608_v61 }
 0x5b2   :  { %3619 = vmatpush1.msra.mxu0 %v3194_v47  ;;  %v3188_v6 = vsel %vm262_vm2, %v3161_v10, %v3169_v21 }
 0x5b3   :  { %3620 = vmatprep.subr.mxu0 %v3189_v48  ;;  %4646 = vmatmul.mubr.msk.f32.gmra.mxu0 %vm1122_vm13, %v3095_v22 }
 0x5b4   :  { %3621 = vmatpush1.msra.mxu0 %v3193_v27  ;;  %3656 = vmatprep.mubr.f32.mxu0 %v7608_v61  ;;  %v3183_v28 = vpop.permute.xlu0 %3182 }
 0x5b5   :  { %4648 = vmatmul.mubr.msk.f32.gmra.mxu1 %vm1122_vm13, %v3093_v18  ;;  %3622 = vmatprep.subr.mxu0 %v3188_v6  ;;  %v3153_v7 = vpop.permute.xlu1 %3152  ;;  %v3187_v60 = vsel %vm262_vm2, %v7051_v16, %v3183_v28  ;;  %v3199_v5 = vsel %vm262_vm2, %v3183_v28, %v7053_v52  ;;  %v3103_v16 = vld [vmem:[#allocation6 + $0x58] sm:$0xff]  ;;  %v3836_v52 = vld [vmem:[#allocation7 + $0x68] sm:$0xff] }
 0x5b6   :  { %v3192_v63 = vsel %vm262_vm2, %v3153_v7, %v3161_v10  ;;  %3567 = vmatprep.mubr.f32.mxu1 %v7608_v61  ;;  %3705 = vmatprep.subr.mxu1 %v3199_v5 }
 0x5b7   :  { %3623 = vmatpush1.msra.mxu0 %v3192_v63  ;;  %3706 = vmatpush1.msra.mxu1 %v3187_v60 }
 0x5b8   :  { %4651 = vmatmul.mubr.msk.f32.vlgmr.msra.gmra.mxu0 %vm1122_vm13, %v3100_v8  ;;  %v3179_v17 = vpop.permute.xlu0 %3178  ;;  %4723 = vmatprep.subr.mxu0 %v3838_v30 }
 0x5b9   :  { %4649 = vmatmul.mubr.msk.f32.gmra.mxu1 %vm1122_vm13, %v3094_v40  ;;  %v3181_v12 = vpop.permute.xlu1 %3180  ;;  %3662 = vmatprep.mubr.f32.mxu0 %v7608_v61  ;;  %v3197_v45 = vsel %vm262_vm2, %v3179_v17, %v3155_v37  ;;  %v3185_v49 = vsel %vm262_vm2, %v3171_v35, %v3179_v17 }
 0x5ba   :  { %v3186_v55 = vsel %vm262_vm2, %v7079_v38, %v3181_v12  ;;  %v3198_v0 = vsel %vm262_vm2, %v3181_v12, %v7081_v46  ;;  %3573 = vmatprep.mubr.f32.mxu1 %v7608_v61  ;;  %4724 = vmatpush3.msra.mxu0 %v3838_v30 }
 0x5bb   :  { %3707 = vmatprep.subr.mxu1 %v3198_v0  ;;  %4725 = vmatprep.subr.mxu0 %v3837_v33 }
 0x5bc   :  { %4652 = vmatmul.mubr.msk.f32.gmra.mxu0 %vm1122_vm13, %v3101_v24  ;;  %3708 = vmatpush1.msra.mxu1 %v3186_v55 }
 0x5bd   :  { %4650 = vmatmul.mubr.msk.f32.gmra.mxu1 %vm1122_vm13, %v3095_v22  ;;  %3709 = vmatprep.subr.mxu1 %v3197_v45  ;;  %v3177_v13 = vpop.permute.xlu1 %3176 }
 0x5be   :  { %v3184_v36 = vsel %vm262_vm2, %v3169_v21, %v3177_v13  ;;  %3710 = vmatpush1.msra.mxu1 %v3185_v49  ;;  %3668 = vmatprep.mubr.f32.mxu0 %v7608_v61  ;;  %v3196_v19 = vsel %vm262_vm2, %v3177_v13, %v3153_v7 }
 0x5bf   :  { %3711 = vmatprep.subr.mxu1 %v3196_v19  ;;  %3745 = vmatprep.mubr.f32.mxu1 %v7608_v61 }
 0x5c0   :  { %4653 = vmatmul.mubr.msk.f32.gmra.mxu0 %vm1122_vm13, %v3102_v51  ;;  %3712 = vmatpush1.msra.mxu1 %v3184_v36 }
 0x5c1   :  { %4655 = vmatmul.mubr.msk.f32.vlgmr.msra.gmra.mxu1 %vm1122_vm13, %v3100_v8  ;;  %3674 = vmatprep.mubr.f32.mxu0 %v7608_v61 }
 0x5c2   :  { %3751 = vmatprep.mubr.f32.mxu1 %v7608_v61  ;;  %4726 = vmatpush3.msra.mxu0 %v3837_v33 }
 0x5c3   :  { %4727 = vmatprep.subr.mxu0 %v3836_v52 }
 0x5c4   :  { %4654 = vmatmul.mubr.msk.f32.gmra.mxu0 %vm1122_vm13, %v3103_v16 }
 0x5c5   :  { %4656 = vmatmul.mubr.msk.f32.gmra.mxu1 %vm1122_vm13, %v3101_v24  ;;  %4728 = vmatpush3.msra.mxu0 %v3836_v52  ;;  %v7181_v60 = vpop.permute.xlu0 %3788 }
 0x5c6   :  { %3757 = vmatprep.mubr.f32.mxu1 %v7608_v61  ;;  %4729 = vmatprep.subr.mxu0 %v3835_v50 }
 0x5c7   :  { %4730 = vmatpush3.msra.mxu0 %v3835_v50 }
 0x5c8   :  { %4731 = vmatprep.subr.mxu0 %v3834_v53 }
 0x5c9   :  { %4657 = vmatmul.mubr.msk.f32.gmra.mxu1 %vm1122_vm13, %v3102_v51  ;;  %4732 = vmatpush3.msra.mxu0 %v3834_v53 }
 0x5ca   :  { %3763 = vmatprep.mubr.f32.mxu1 %v7608_v61  ;;  %4733 = vmatprep.subr.mxu0 %v3833_v39  ;;  %v3828_v61 = vld [vmem:[#allocation7 + $0x28] sm:$0xff]  ;;  %v7186_v0 = vpop.permute.xlu1 %3793 }
 0x5cb   :  { %4734 = vmatpush3.msra.mxu0 %v3833_v39 }
 0x5cc   :  { %4735 = vmatprep.subr.mxu0 %v3832_v25 }
 0x5cd   :  { %4658 = vmatmul.mubr.msk.f32.gmra.mxu1 %vm1122_vm13, %v3103_v16  ;;  %4736 = vmatpush3.msra.mxu0 %v3832_v25  ;;  %v3799_v16 = vpop.permute.xlu0 %3798 }
 0x5ce   :  { %4737 = vmatprep.subr.mxu0 %v3831_v9 }
 0x5cf   :  { %4738 = vmatpush3.msra.mxu0 %v3831_v9 }
 0x5d0   :  { %4739 = vmatprep.subr.mxu0 %v3830_v1 }
 0x5d1   :  { %4740 = vmatpush3.msra.mxu0 %v3830_v1 }
 0x5d2   :  { %4741 = vmatprep.subr.mxu0 %v3829_v58 }
 0x5d3   :  { %4742 = vmatpush3.msra.mxu0 %v3829_v58 }
 0x5d4   :  { %4743 = vmatprep.subr.mxu0 %v3828_v61 }
 0x5d5   :  { %4744 = vmatpush3.msra.mxu0 %v3828_v61 }
 0x5d6   :  { %4745 = vmatprep.subr.mxu0 %v3827_v3 }
 0x5d7   :  { %4746 = vmatpush3.msra.mxu0 %v3827_v3 }
 0x5d8   :  { %4747 = vmatprep.subr.mxu0 %v3826_v23 }
 0x5d9   :  { %4748 = vmatpush3.msra.mxu0 %v3826_v23  ;;  %v3804_v23 = vpop.permute.xlu1 %3803 }
 0x5da   :  { %4749 = vmatprep.subr.mxu0 %v3825_v43 }
 0x5db   :  { %4750 = vmatpush3.msra.mxu0 %v3825_v43 }
 0x5dc   :  { %4751 = vmatprep.subr.mxu0 %v3824_v29 }
 0x5dd   :  { %4752 = vmatpush3.msra.mxu0 %v3824_v29 }
 0x5de   :  { %4753 = vmatprep.subr.mxu0 %v3823_v11 }
 0x5df   :  { %4754 = vmatpush3.msra.mxu0 %v3823_v11 }
 0x5e0   :  { %v3278_v62 = vpop.f32.mrf.mxu0 }
 0x5e1   :  { %v7161_v15 = vpop.f32.mrf.mxu1 }
 0x5e2   :  { %v3280_v4 = vpop.f32.mrf.mxu0 }
 0x5e3   :  { %v7163_v46 = vpop.f32.mrf.mxu1 }
 0x5e4   :  { %v3284_v34 = vpop.f32.mrf.mxu0 }
 0x5e5   :  { %v7165_v42 = vpop.f32.mrf.mxu1 }
 0x5e6   :  { %v3286_v54 = vpop.f32.mrf.mxu0 }
 0x5e7   :  { %v7167_v59 = vpop.f32.mrf.mxu1 }
 0x5e8   :  { %v3290_v38 = vpop.f32.mrf.mxu0 }
 0x5e9   :  { %v7169_v40 = vpop.f32.mrf.mxu1 }
 0x5ea   :  { %v3292_v18 = vpop.f32.mrf.mxu0 }
 0x5eb   :  { %v7171_v2 = vpop.f32.mrf.mxu1 }
 0x5ec   :  { %v3296_v14 = vpop.f32.mrf.mxu0 }
 0x5ed   :  { %v7173_v57 = vpop.f32.mrf.mxu1 }
 0x5ee   :  { %v3298_v56 = vpop.f32.mrf.mxu0 }
 0x5ef   :  { %v7175_v44 = vpop.f32.mrf.mxu1 }
 0x663   :  { %v3468_v35 = vpop.f32.mrf.mxu0 }
 0x664   :  { %v3469_v27 = vadd.f32 %v3468_v35, %v3278_v62 }
 0x665   :  { %v3470_v37 = vpop.f32.mrf.mxu0 }
 0x666   :  { %v3471_v52 = vadd.f32 %v3470_v37, %v3280_v4 }
 0x667   :  { %v3474_v26 = vpop.f32.mrf.mxu0 }
 0x668   :  { %v3475_v63 = vadd.f32 %v3474_v26, %v3284_v34 }
 0x669   :  { %v3476_v20 = vpop.f32.mrf.mxu0 }
 0x66a   :  { %v3477_v58 = vadd.f32 %v3476_v20, %v3286_v54 }
 0x66b   :  { %v3480_v41 = vpop.f32.mrf.mxu0 }
 0x66c   :  { %v3481_v49 = vadd.f32 %v3480_v41, %v3290_v38 }
 0x66d   :  { %v3482_v32 = vpop.f32.mrf.mxu0 }
 0x66e   :  { %v3483_v43 = vadd.f32 %v3482_v32, %v3292_v18 }
 0x670   :  { %v3557_v22 = vpop.f32.mrf.mxu1 }
 0x672   :  { %v7177_v47 = vpop.f32.mrf.mxu1 }
 0x673   :  { %v3486_v21 = vpop.f32.mrf.mxu0 }
 0x674   :  { %v3487_v53 = vadd.f32 %v3486_v21, %v3296_v14  ;;  %v3558_v14 = vadd.f32 %v3557_v22, %v7161_v15  ;;  %v3560_v22 = vadd.f32 %v7177_v47, %v7163_v46 }
 0x675   :  { %v3563_v10 = vpop.f32.mrf.mxu1  ;;  %v3488_v48 = vpop.f32.mrf.mxu0 }
 0x676   :  { %v3489_v4 = vadd.f32 %v3488_v48, %v3298_v56  ;;  %v3564_v18 = vadd.f32 %v3563_v10, %v7165_v42 }
 0x677   :  { %v7179_v6 = vpop.f32.mrf.mxu1 }
 0x678   :  { %v3658_v28 = vpop.f32.mrf.mxu0 }
 0x679   :  { %v3770_v7 = vadd.f32 %v3658_v28, %v3469_v27  ;;  %v3569_v8 = vpop.f32.mrf.mxu1 }
 0x67a   :  { %v3660_v5 = vpop.f32.mrf.mxu0  ;;  %v3570_v32 = vadd.f32 %v3569_v8, %v7169_v40  ;;  %v3566_v40 = vadd.f32 %v7179_v6, %v7167_v59 }
 0x67b   :  { %v3806_v30 = vadd.f32 %v7181_v60, %v3770_v7  ;;  %v7184_v17 = vpop.f32.mrf.mxu1  ;;  %v3771_v9 = vadd.f32 %v3660_v5, %v3471_v52 }
 0x67c   :  { %v3664_v12 = vpop.f32.mrf.mxu0  ;;  %v3572_v8 = vadd.f32 %v7184_v17, %v7171_v2  ;;  %v7612_v2 = vlaneseq }
 0x67d   :  { %v3774_v24 = vadd.f32 %v3664_v12, %v3475_v63  ;;  %v3575_v55 = vpop.f32.mrf.mxu1  ;;  %4755 = vmatprep.mubr.f32.mxu0 %v3806_v30  ;;  %v3807_v34 = vadd.f32 %v7181_v60, %v3771_v9 }
 0x67e   :  { %v3666_v45 = vpop.f32.mrf.mxu0  ;;  %v3576_v15 = vadd.f32 %v3575_v55, %v7173_v57  ;;  %v7207_v6 = vshrl.u32 %v7612_v2, 7 }
 0x67f   :  { %v3810_v13 = vadd.f32 %v7186_v0, %v3774_v24  ;;  %v3577_v51 = vpop.f32.mrf.mxu1  ;;  %v3775_v29 = vadd.f32 %v3666_v45, %v3477_v58 }
 0x680   :  { %v3670_v36 = vpop.f32.mrf.mxu0  ;;  %v3578_v47 = vadd.f32 %v3577_v51, %v7175_v44  ;;  %v3841_v17 = vsub.s32 0, %v7207_v6 }
 0x681   :  { %v3778_v19 = vadd.f32 %v3670_v36, %v3481_v49  ;;  %v3747_v33 = vpop.f32.mrf.mxu1  ;;  %4756 = vmatmul.mubr.f32.vlgmr.msra.gmra.mxu0 %v3810_v13  ;;  %v3811_v54 = vadd.f32 %v7186_v0, %v3775_v29 }
 0x682   :  { %v3672_v50 = vpop.f32.mrf.mxu0  ;;  %v3772_v20 = vadd.f32 %v3747_v33, %v3558_v14 }
 0x683   :  { %v3814_v39 = vadd.f32 %v3799_v16, %v3778_v19  ;;  %v3749_v25 = vpop.f32.mrf.mxu1  ;;  %v3779_v38 = vadd.f32 %v3672_v50, %v3483_v43 }
 0x684   :  { %v3676_v1 = vpop.f32.mrf.mxu0  ;;  %v3808_v56 = vadd.f32 %v7181_v60, %v3772_v20  ;;  %v3773_v10 = vadd.f32 %v3749_v25, %v3560_v22 }
 0x685   :  { %v3782_v61 = vadd.f32 %v3676_v1, %v3487_v53  ;;  %v3753_v3 = vpop.f32.mrf.mxu1  ;;  %4758 = vmatprep.mubr.f32.mxu0 %v3814_v39  ;;  %v3815_v41 = vadd.f32 %v3799_v16, %v3779_v38 }
 0x686   :  { %v3678_v35 = vpop.f32.mrf.mxu0  ;;  %v3776_v27 = vadd.f32 %v3753_v3, %v3564_v18  ;;  %v3809_v12 = vadd.f32 %v7181_v60, %v3773_v10  ;;  %v7213_v60 = vld [vmem:[%s7523_s8] sm:$0xff] }
 0x687   :  { %v3818_v11 = vadd.f32 %v3804_v23, %v3782_v61  ;;  %v3755_v62 = vpop.f32.mrf.mxu1  ;;  %v3783_v26 = vadd.f32 %v3678_v35, %v3489_v4  ;;  %v3842_v44 = vrot.slane %v7213_v60, %v3841_v17 }
 0x688   :  { %v3812_v5 = vadd.f32 %v7186_v0, %v3776_v27  ;;  %v3777_v30 = vadd.f32 %v3755_v62, %v3566_v40 }
 0x689   :  { %v3759_v37 = vpop.f32.mrf.mxu1  ;;  %4759 = vmatmul.mubr.f32.gmra.mxu0 %v3818_v11  ;;  %v3819_v28 = vadd.f32 %v3804_v23, %v3783_v26 }
 0x68a   :  { %4761 = vmatprep.mubr.f32.mxu0 %v3807_v34  ;;  %v3780_v48 = vadd.f32 %v3759_v37, %v3570_v32  ;;  %v3813_v55 = vadd.f32 %v7186_v0, %v3777_v30  ;;  %v4302_v30 = vld [vmem:[#allocation9 + $0x78] sm:$0xff] }
 0x68b   :  { %v3761_v21 = vpop.f32.mrf.mxu1  ;;  %4779 = vmatprep.subr.mxu1 %v4302_v30 }
 0x68c   :  { %v3816_v63 = vadd.f32 %v3799_v16, %v3780_v48  ;;  %v3781_v24 = vadd.f32 %v3761_v21, %v3572_v8  ;;  %4780 = vmatpush3.msra.mxu1 %v4302_v30 }
 0x68d   :  { %4762 = vmatmul.mubr.f32.gmra.mxu0 %v3811_v54  ;;  %v3765_v7 = vpop.f32.mrf.mxu1 }
 0x68e   :  { %4764 = vmatprep.mubr.f32.mxu0 %v3815_v41  ;;  %v3784_v42 = vadd.f32 %v3765_v7, %v3576_v15  ;;  %v3817_v49 = vadd.f32 %v3799_v16, %v3781_v24 }
 0x68f   :  { %v3767_v46 = vpop.f32.mrf.mxu1 }
 0x690   :  { %v3820_v57 = vadd.f32 %v3804_v23, %v3784_v42  ;;  %v3785_v45 = vadd.f32 %v3767_v46, %v3578_v47 }
 0x691   :  { %4765 = vmatmul.mubr.f32.gmra.mxu0 %v3819_v28 }
 0x692   :  { %4767 = vmatprep.mubr.f32.mxu0 %v3808_v56  ;;  %v3821_v59 = vadd.f32 %v3804_v23, %v3785_v45 }
 0x695   :  { %4768 = vmatmul.mubr.f32.gmra.mxu0 %v3812_v5 }
 0x696   :  { %4770 = vmatprep.mubr.f32.mxu0 %v3816_v63 }
 0x699   :  { %4771 = vmatmul.mubr.f32.gmra.mxu0 %v3820_v57 }
 0x69a   :  { %4773 = vmatprep.mubr.f32.mxu0 %v3809_v12 }
 0x69d   :  { %4774 = vmatmul.mubr.f32.gmra.mxu0 %v3813_v55 }
 0x69e   :  { %4776 = vmatprep.mubr.f32.mxu0 %v3817_v49 }
 0x6a1   :  { %4777 = vmatmul.mubr.f32.gmra.mxu0 %v3821_v59 }
 0x741   :  { %v4757_v13 = vpop.f32.mrf.mxu0 }
 0x742   :  { %v7217_v0 = vadd.f32 %v4757_v13, %v3842_v44 }
 0x743   :  { %v3909_v51 = vpop.f32.mrf.mxu0 }
 0x744   :  { %v7219_v36 = vadd.f32 %v3909_v51, %v3842_v44  ;;  %v3992_v19 = vsel %vm3988_vm1, %v7217_v0, 0.0 }
 0x745   :  { %4009 = vadd.xlane.f32.xlu1 %v3992_v19 }
 0x746   :  { %v3991_v33 = vsel %vm3988_vm1, %v7219_v36, 0.0 }
 0x747   :  { %4007 = vadd.xlane.f32.xlu0 %v3991_v33 }
 0x749   :  { %v4760_v16 = vpop.f32.mrf.mxu0 }
 0x74a   :  { %v7229_v39 = vadd.f32 %v4760_v16, %v3842_v44 }
 0x74b   :  { %v3919_v52 = vpop.f32.mrf.mxu0 }
 0x74c   :  { %v7227_v50 = vadd.f32 %v3919_v52, %v3842_v44  ;;  %v3994_v23 = vsel %vm3988_vm1, %v7229_v39, 0.0 }
 0x74d   :  { %v4763_v53 = vpop.f32.mrf.mxu0 }
 0x74e   :  { %v3993_v25 = vsel %vm3988_vm1, %v7227_v50, 0.0  ;;  %v7236_v61 = vadd.f32 %v4763_v53, %v3842_v44 }
 0x74f   :  { %v3929_v9 = vpop.f32.mrf.mxu0  ;;  %4011 = vadd.xlane.f32.xlu0 %v3993_v25 }
 0x750   :  { %v7234_v1 = vadd.f32 %v3929_v9, %v3842_v44  ;;  %v3996_v38 = vsel %vm3988_vm1, %v7236_v61, 0.0 }
 0x751   :  { %v4766_v58 = vpop.f32.mrf.mxu0 }
 0x752   :  { %v3995_v3 = vsel %vm3988_vm1, %v7234_v1, 0.0  ;;  %v7246_v62 = vadd.f32 %v4766_v58, %v3842_v44 }
 0x753   :  { %v3939_v43 = vpop.f32.mrf.mxu0  ;;  %4015 = vadd.xlane.f32.xlu1 %v3995_v3  ;;  %4013 = vadd.xlane.f32.xlu0 %v3994_v23 }
 0x754   :  { %v7244_v29 = vadd.f32 %v3939_v43, %v3842_v44  ;;  %v3998_v26 = vsel %vm3988_vm1, %v7246_v62, 0.0 }
 0x755   :  { %v4769_v11 = vpop.f32.mrf.mxu0 }
 0x756   :  { %v3997_v34 = vsel %vm3988_vm1, %v7244_v29, 0.0  ;;  %v7256_v14 = vadd.f32 %v4769_v11, %v3842_v44 }
 0x757   :  { %v3949_v35 = vpop.f32.mrf.mxu0  ;;  %4019 = vadd.xlane.f32.xlu1 %v3997_v34  ;;  %4017 = vadd.xlane.f32.xlu0 %v3996_v38 }
 0x758   :  { %v7254_v4 = vadd.f32 %v3949_v35, %v3842_v44  ;;  %v4000_v27 = vsel %vm3988_vm1, %v7256_v14, 0.0 }
 0x759   :  { %v4772_v37 = vpop.f32.mrf.mxu0 }
 0x75a   :  { %v3999_v54 = vsel %vm3988_vm1, %v7254_v4, 0.0  ;;  %v7266_v18 = vadd.f32 %v4772_v37, %v3842_v44 }
 0x75b   :  { %v3959_v20 = vpop.f32.mrf.mxu0  ;;  %4023 = vadd.xlane.f32.xlu1 %v3999_v54  ;;  %4021 = vadd.xlane.f32.xlu0 %v3998_v26 }
 0x75c   :  { %v7264_v41 = vadd.f32 %v3959_v20, %v3842_v44  ;;  %v4002_v22 = vsel %vm3988_vm1, %v7266_v18, 0.0 }
 0x75d   :  { %v4775_v21 = vpop.f32.mrf.mxu0 }
 0x75e   :  { %v4001_v32 = vsel %vm3988_vm1, %v7264_v41, 0.0  ;;  %v7276_v7 = vadd.f32 %v4775_v21, %v3842_v44 }
 0x75f   :  { %v3969_v28 = vpop.f32.mrf.mxu0  ;;  %4027 = vadd.xlane.f32.xlu1 %v4001_v32  ;;  %4025 = vadd.xlane.f32.xlu0 %v4000_v27 }
 0x760   :  { %v7274_v56 = vadd.f32 %v3969_v28, %v3842_v44  ;;  %v4004_v40 = vsel %vm3988_vm1, %v7276_v7, 0.0 }
 0x761   :  { %v4778_v48 = vpop.f32.mrf.mxu0 }
 0x762   :  { %v4003_v15 = vsel %vm3988_vm1, %v7274_v56, 0.0  ;;  %v7286_v10 = vadd.f32 %v4778_v48, %v3842_v44 }
 0x763   :  { %v3979_v5 = vpop.f32.mrf.mxu0  ;;  %4031 = vadd.xlane.f32.xlu1 %v4003_v15  ;;  %4029 = vadd.xlane.f32.xlu0 %v4002_v22 }
 0x764   :  { %v7284_v42 = vadd.f32 %v3979_v5, %v3842_v44  ;;  %v4006_v8 = vsel %vm3988_vm1, %v7286_v10, 0.0 }
 0x766   :  { %v4005_v63 = vsel %vm3988_vm1, %v7284_v42, 0.0 }
 0x767   :  { %4035 = vadd.xlane.f32.xlu1 %v4005_v63  ;;  %4033 = vadd.xlane.f32.xlu0 %v4004_v40 }
 0x76b   :  { %4037 = vadd.xlane.f32.xlu0 %v4006_v8 }
 0x7ce   :  { %v4010_v57 = vpop.xlane.xlu1 %4009 }
 0x7cf   :  { %v4040_v12 = vmul.f32 0.029411765, %v4010_v57 }
 0x7d0   :  { %v4008_v24 = vpop.xlane.xlu0 %4007 }
 0x7d1   :  { %v4056_v46 = vsub.f32 %v7217_v0, %v4040_v12  ;;  %v4039_v47 = vmul.f32 0.029411765, %v4008_v24 }
 0x7d3   :  { %v7300_v55 = vsel %vm3988_vm1, %v4056_v46, 0.0  ;;  %v4055_v45 = vsub.f32 %v7219_v36, %v4039_v47 }
 0x7d4   :  { %v4088_v49 = vmul.f32 %v7300_v55, %v7300_v55 }
 0x7d5   :  { %v7307_v59 = vsel %vm3988_vm1, %v4055_v45, 0.0  ;;  %v4301_v45 = vld [vmem:[#allocation9 + $0x70] sm:$0xff] }
 0x7d6   :  { %4105 = vadd.xlane.f32.xlu0 %v4088_v49  ;;  %v4087_v2 = vmul.f32 %v7307_v59, %v7307_v59  ;;  %4781 = vmatprep.subr.mxu1 %v4301_v45 }
 0x7d7   :  { %4782 = vmatpush3.msra.mxu1 %v4301_v45 }
 0x7d8   :  { %4103 = vadd.xlane.f32.xlu1 %v4087_v2  ;;  %v4012_v17 = vpop.xlane.xlu0 %4011 }
 0x7d9   :  { %v4041_v44 = vmul.f32 0.029411765, %v4012_v17 }
 0x7db   :  { %v4057_v13 = vsub.f32 %v7227_v50, %v4041_v44 }
 0x7dc   :  { %v4014_v0 = vpop.xlane.xlu0 %4013  ;;  %v4016_v51 = vpop.xlane.xlu1 %4015 }
 0x7dd   :  { %v7314_v36 = vsel %vm3988_vm1, %v4057_v13, 0.0  ;;  %v4042_v19 = vmul.f32 0.029411765, %v4014_v0  ;;  %v4043_v33 = vmul.f32 0.029411765, %v4016_v51  ;;  %v4300_v51 = vld [vmem:[#allocation9 + $0x68] sm:$0xff] }
 0x7de   :  { %v4089_v16 = vmul.f32 %v7314_v36, %v7314_v36  ;;  %4783 = vmatprep.subr.mxu1 %v4300_v51 }
 0x7df   :  { %v4058_v52 = vsub.f32 %v7229_v39, %v4042_v19  ;;  %v4059_v53 = vsub.f32 %v7234_v1, %v4043_v33  ;;  %4784 = vmatpush3.msra.mxu1 %v4300_v51 }
 0x7e0   :  { %4107 = vadd.xlane.f32.xlu1 %v4089_v16  ;;  %v4018_v25 = vpop.xlane.xlu0 %4017  ;;  %v4020_v9 = vpop.xlane.xlu1 %4019  ;;  %v4299_v16 = vld [vmem:[#allocation9 + $0x60] sm:$0xff] }
 0x7e1   :  { %v7322_v50 = vsel %vm3988_vm1, %v4058_v52, 0.0  ;;  %v7326_v58 = vsel %vm3988_vm1, %v4059_v53, 0.0  ;;  %v4044_v3 = vmul.f32 0.029411765, %v4018_v25  ;;  %v4045_v23 = vmul.f32 0.029411765, %v4020_v9  ;;  %4785 = vmatprep.subr.mxu1 %v4299_v16 }
 0x7e2   :  { %v4090_v43 = vmul.f32 %v7322_v50, %v7322_v50  ;;  %v4091_v39 = vmul.f32 %v7326_v58, %v7326_v58  ;;  %4786 = vmatpush3.msra.mxu1 %v4299_v16 }
 0x7e3   :  { %v4060_v1 = vsub.f32 %v7236_v61, %v4044_v3  ;;  %v4061_v11 = vsub.f32 %v7244_v29, %v4045_v23  ;;  %v4298_v3 = vld [vmem:[#allocation9 + $0x58] sm:$0xff] }
 0x7e4   :  { %v4022_v34 = vpop.xlane.xlu0 %4021  ;;  %4109 = vadd.xlane.f32.xlu0 %v4090_v43  ;;  %4111 = vadd.xlane.f32.xlu1 %v4091_v39  ;;  %v4024_v38 = vpop.xlane.xlu1 %4023  ;;  %v4297_v43 = vld [vmem:[#allocation9 + $0x50] sm:$0xff] }
 0x7e5   :  { %v7336_v35 = vsel %vm3988_vm1, %v4060_v1, 0.0  ;;  %v7340_v37 = vsel %vm3988_vm1, %v4061_v11, 0.0  ;;  %v4046_v54 = vmul.f32 0.029411765, %v4022_v34  ;;  %v4047_v26 = vmul.f32 0.029411765, %v4024_v38  ;;  %4787 = vmatprep.subr.mxu1 %v4298_v3 }
 0x7e6   :  { %v4092_v20 = vmul.f32 %v7336_v35, %v7336_v35  ;;  %v4093_v61 = vmul.f32 %v7340_v37, %v7340_v37  ;;  %4788 = vmatpush3.msra.mxu1 %v4298_v3  ;;  %v4296_v11 = vld [vmem:[#allocation9 + $0x48] sm:$0xff]  ;;  %v4295_v34 = vld [vmem:[#allocation9 + $0x40] sm:$0xff]  ;;  %v4293_v38 = vld [vmem:[#allocation9 + $0x30] sm:$0xff] }
 0x7e7   :  { %v4062_v29 = vsub.f32 %v7246_v62, %v4046_v54  ;;  %v4063_v21 = vsub.f32 %v7254_v4, %v4047_v26  ;;  %4789 = vmatprep.subr.mxu1 %v4297_v43  ;;  %v4291_v54 = vld [vmem:[#allocation9 + $0x20] sm:$0xff]  ;;  %v4290_v26 = vld [vmem:[#allocation9 + $0x18] sm:$0xff] }
 0x7e8   :  { %v4026_v32 = vpop.xlane.xlu0 %4025  ;;  %4113 = vadd.xlane.f32.xlu0 %v4092_v20  ;;  %4115 = vadd.xlane.f32.xlu1 %v4093_v61  ;;  %v4028_v27 = vpop.xlane.xlu1 %4027  ;;  %v4289_v20 = vld [vmem:[#allocation9 + $0x10] sm:$0xff]  ;;  %v4288_v61 = vld [vmem:[#allocation9 + $0x8] sm:$0xff] }
 0x7e9   :  { %v7350_v28 = vsel %vm3988_vm1, %v4062_v29, 0.0  ;;  %v7354_v48 = vsel %vm3988_vm1, %v4063_v21, 0.0  ;;  %v4048_v15 = vmul.f32 0.029411765, %v4026_v32  ;;  %v4049_v22 = vmul.f32 0.029411765, %v4028_v27  ;;  %4790 = vmatpush3.msra.mxu1 %v4297_v43 }
 0x7ea   :  { %v4094_v5 = vmul.f32 %v7350_v28, %v7350_v28  ;;  %v4095_v62 = vmul.f32 %v7354_v48, %v7354_v48  ;;  %4791 = vmatprep.subr.mxu1 %v4296_v11  ;;  %v4287_v29 = vld [vmem:[#allocation9] sm:$0xff] }
 0x7eb   :  { %v4064_v4 = vsub.f32 %v7256_v14, %v4048_v15  ;;  %v4065_v63 = vsub.f32 %v7264_v41, %v4049_v22  ;;  %4792 = vmatpush3.msra.mxu1 %v4296_v11 }
 0x7ec   :  { %v4030_v40 = vpop.xlane.xlu0 %4029  ;;  %4117 = vadd.xlane.f32.xlu0 %v4094_v5  ;;  %4119 = vadd.xlane.f32.xlu1 %v4095_v62  ;;  %v4032_v8 = vpop.xlane.xlu1 %4031 }
 0x7ed   :  { %v7364_v30 = vsel %vm3988_vm1, %v4064_v4, 0.0  ;;  %v7368_v57 = vsel %vm3988_vm1, %v4065_v63, 0.0  ;;  %v4050_v12 = vmul.f32 0.029411765, %v4030_v40  ;;  %v4051_v24 = vmul.f32 0.029411765, %v4032_v8  ;;  %4793 = vmatprep.subr.mxu1 %v4295_v34 }
 0x7ee   :  { %v4096_v46 = vmul.f32 %v7364_v30, %v7364_v30  ;;  %v4097_v14 = vmul.f32 %v7368_v57, %v7368_v57  ;;  %4794 = vmatpush3.msra.mxu1 %v4295_v34  ;;  %v4201_v40 = vsub.s32 1, %v7207_v6 }
 0x7ef   :  { %v4066_v41 = vsub.f32 %v7266_v18, %v4050_v12  ;;  %v4067_v47 = vsub.f32 %v7274_v56, %v4051_v24 }
 0x7f0   :  { %v4034_v49 = vpop.xlane.xlu0 %4033  ;;  %4121 = vadd.xlane.f32.xlu0 %v4096_v46  ;;  %4123 = vadd.xlane.f32.xlu1 %v4097_v14  ;;  %v4036_v2 = vpop.xlane.xlu1 %4035  ;;  %v4221_v14 = vsub.s32 2, %v7207_v6  ;;  %v7412_v45 = vrot.slane %v7213_v60, %v4201_v40 }
 0x7f1   :  { %v7378_v17 = vsel %vm3988_vm1, %v4066_v41, 0.0  ;;  %v7382_v44 = vsel %vm3988_vm1, %v4067_v47, 0.0  ;;  %v4052_v13 = vmul.f32 0.029411765, %v4034_v49  ;;  %v4053_v0 = vmul.f32 0.029411765, %v4036_v2 }
 0x7f2   :  { %v4098_v18 = vmul.f32 %v7378_v17, %v7378_v17  ;;  %v4099_v56 = vmul.f32 %v7382_v44, %v7382_v44 }
 0x7f3   :  { %v4068_v19 = vsub.f32 %v7276_v7, %v4052_v13  ;;  %v4069_v33 = vsub.f32 %v7284_v42, %v4053_v0 }
 0x7f4   :  { %v4038_v52 = vpop.xlane.xlu0 %4037  ;;  %4125 = vadd.xlane.f32.xlu0 %v4098_v18  ;;  %4127 = vadd.xlane.f32.xlu1 %v4099_v56 }
 0x7f5   :  { %v7392_v53 = vsel %vm3988_vm1, %v4068_v19, 0.0  ;;  %v7396_v25 = vsel %vm3988_vm1, %v4069_v33, 0.0  ;;  %v4054_v9 = vmul.f32 0.029411765, %v4038_v52  ;;  %v7416_v19 = vrot.slane %v7213_v60, %v4221_v14 }
 0x7f6   :  { %v4100_v7 = vmul.f32 %v7392_v53, %v7392_v53  ;;  %v4101_v42 = vmul.f32 %v7396_v25, %v7396_v25 }
 0x7f7   :  { %v4070_v23 = vsub.f32 %v7286_v10, %v4054_v9  ;;  %v4294_v10 = vld [vmem:[#allocation9 + $0x38] sm:$0xff] }
 0x7f8   :  { %4129 = vadd.xlane.f32.xlu0 %v4100_v7  ;;  %4131 = vadd.xlane.f32.xlu1 %v4101_v42 }
 0x7f9   :  { %v7405_v39 = vsel %vm3988_vm1, %v4070_v23, 0.0  ;;  %4795 = vmatprep.subr.mxu1 %v4294_v10 }
 0x7fa   :  { %v4102_v1 = vmul.f32 %v7405_v39, %v7405_v39  ;;  %4796 = vmatpush3.msra.mxu1 %v4294_v10 }
 0x7fb   :  { %4797 = vmatprep.subr.mxu1 %v4293_v38 }
 0x7fc   :  { %4133 = vadd.xlane.f32.xlu0 %v4102_v1  ;;  %4798 = vmatpush3.msra.mxu1 %v4293_v38 }
 0x7fd   :  { %4799 = vmatprep.subr.mxu1 %v4292_v31 }
 0x7fe   :  { %4800 = vmatpush3.msra.mxu1 %v4292_v31 }
 0x7ff   :  { %4801 = vmatprep.subr.mxu1 %v4291_v54 }
 0x800   :  { %4802 = vmatpush3.msra.mxu1 %v4291_v54 }
 0x801   :  { %4803 = vmatprep.subr.mxu1 %v4290_v26 }
 0x802   :  { %4804 = vmatpush3.msra.mxu1 %v4290_v26 }
 0x803   :  { %4805 = vmatprep.subr.mxu1 %v4289_v20 }
 0x804   :  { %4806 = vmatpush3.msra.mxu1 %v4289_v20 }
 0x805   :  { %4807 = vmatprep.subr.mxu1 %v4288_v61 }
 0x806   :  { %4808 = vmatpush3.msra.mxu1 %v4288_v61 }
 0x807   :  { %4809 = vmatprep.subr.mxu1 %v4287_v29 }
 0x808   :  { %4810 = vmatpush3.msra.mxu1 %v4287_v29 }
 0x85f   :  { %v4106_v21 = vpop.xlane.xlu0 %4105 }
 0x860   :  { %v4136_v32 = vmul.f32 0.029411765, %v4106_v21 }
 0x861   :  { %v4104_v27 = vpop.xlane.xlu1 %4103 }
 0x862   :  { %v4152_v15 = vadd.f32 1e-05, %v4136_v32  ;;  %v4135_v22 = vmul.f32 0.029411765, %v4104_v27 }
 0x864   :  { %4857 = vrsqrt.f32 %v4152_v15  ;;  %v4151_v5 = vadd.f32 1e-05, %v4135_v22 }
 0x866   :  { %4859 = vrsqrt.f32 %v4151_v5 }
 0x869   :  { %v4108_v62 = vpop.xlane.xlu1 %4107 }
 0x86a   :  { %v4137_v4 = vmul.f32 0.029411765, %v4108_v62 }
 0x86c   :  { %v4153_v63 = vadd.f32 1e-05, %v4137_v4 }
 0x86d   :  { %v4110_v8 = vpop.xlane.xlu0 %4109  ;;  %v4112_v12 = vpop.xlane.xlu1 %4111 }
 0x86e   :  { %4861 = vrsqrt.f32 %v4153_v63  ;;  %v4138_v24 = vmul.f32 0.029411765, %v4110_v8  ;;  %v4139_v46 = vmul.f32 0.029411765, %v4112_v12 }
 0x870   :  { %v4154_v41 = vadd.f32 1e-05, %v4138_v24  ;;  %v4155_v47 = vadd.f32 1e-05, %v4139_v46 }
 0x871   :  { %v4858_v49 = vpop.eup %4857  ;;  %v4114_v2 = vpop.xlane.xlu0 %4113 }
 0x872   :  { %v4116_v13 = vpop.xlane.xlu1 %4115  ;;  %v4184_v0 = vmul.f32 %v4858_v49, %v7300_v55  ;;  %4863 = vrsqrt.f32 %v4154_v41  ;;  %v4140_v18 = vmul.f32 0.029411765, %v4114_v2 }
 0x873   :  { %v4141_v56 = vmul.f32 0.029411765, %v4116_v13  ;;  %v4860_v51 = vpop.eup %4859  ;;  %4865 = vrsqrt.f32 %v4155_v47 }
 0x874   :  { %v4156_v33 = vadd.f32 1e-05, %v4140_v18  ;;  %v4183_v52 = vmul.f32 %v4860_v51, %v7307_v59  ;;  %v4204_v9 = vmul.f32 %v7412_v45, %v4184_v0 }
 0x875   :  { %v4157_v16 = vadd.f32 1e-05, %v4141_v56  ;;  %v4118_v7 = vpop.xlane.xlu0 %4117 }
 0x876   :  { %v4120_v42 = vpop.xlane.xlu1 %4119  ;;  %4867 = vrsqrt.f32 %v4156_v33  ;;  %v4142_v3 = vmul.f32 0.029411765, %v4118_v7  ;;  %v4203_v55 = vmul.f32 %v7412_v45, %v4183_v52  ;;  %v4224_v43 = vadd.f32 %v7416_v19, %v4204_v9 }
 0x877   :  { %v4143_v23 = vmul.f32 0.029411765, %v4120_v42  ;;  %4869 = vrsqrt.f32 %v4157_v16 }
 0x878   :  { %v4158_v1 = vadd.f32 1e-05, %v4142_v3  ;;  %v4223_v34 = vadd.f32 %v7416_v19, %v4203_v55  ;;  %vm4240_vm2 = vcmp.ge.f32.partialorder %v4224_v43, 0.0  ;;  %v4256_v59 = vmul.f32 0.3, %v4224_v43 }
 0x879   :  { %v4159_v11 = vadd.f32 1e-05, %v4143_v23  ;;  %v4122_v10 = vpop.xlane.xlu0 %4121 }
 0x87a   :  { %v4124_v38 = vpop.xlane.xlu1 %4123  ;;  %4871 = vrsqrt.f32 %v4158_v1  ;;  %v4144_v31 = vmul.f32 0.029411765, %v4122_v10  ;;  %vm4239_vm3 = vcmp.ge.f32.partialorder %v4223_v34, 0.0  ;;  %v4255_v20 = vmul.f32 0.3, %v4223_v34 }
 0x87b   :  { %v4145_v54 = vmul.f32 0.029411765, %v4124_v38  ;;  %v4862_v26 = vpop.eup %4861  ;;  %4873 = vrsqrt.f32 %v4159_v11  ;;  %v4272_v22 = vsel %vm4240_vm2, %v4224_v43, %v4256_v59 }
 0x87c   :  { %v4160_v61 = vadd.f32 1e-05, %v4144_v31  ;;  %v4185_v21 = vmul.f32 %v4862_v26, %v7314_v36  ;;  %v4271_v27 = vsel %vm4239_vm3, %v4223_v34, %v4255_v20 }
 0x87d   :  { %v4161_v29 = vadd.f32 1e-05, %v4145_v54  ;;  %v4126_v32 = vpop.xlane.xlu0 %4125  ;;  %4811 = vmatprep.mubr.f32.mxu1 %v4271_v27 }
 0x87e   :  { %v4128_v15 = vpop.xlane.xlu1 %4127  ;;  %4875 = vrsqrt.f32 %v4160_v61  ;;  %v4146_v5 = vmul.f32 0.029411765, %v4126_v32  ;;  %v4205_v4 = vmul.f32 %v7412_v45, %v4185_v21  ;;  %4812 = vmatmul.mubr.f32.vlgmr.msra.gmra.mxu1 %v4272_v22 }
 0x87f   :  { %v4147_v62 = vmul.f32 0.029411765, %v4128_v15  ;;  %v4864_v63 = vpop.eup %4863  ;;  %4877 = vrsqrt.f32 %v4161_v29 }
 0x880   :  { %v4866_v40 = vpop.eup %4865  ;;  %v4162_v8 = vadd.f32 1e-05, %v4146_v5  ;;  %v4225_v24 = vadd.f32 %v7416_v19, %v4205_v4  ;;  %v4186_v36 = vmul.f32 %v4864_v63, %v7322_v50 }
 0x881   :  { %v4163_v12 = vadd.f32 1e-05, %v4147_v62  ;;  %v4130_v46 = vpop.xlane.xlu0 %4129  ;;  %v4187_v41 = vmul.f32 %v4866_v40, %v7326_v58 }
 0x882   :  { %v4132_v14 = vpop.xlane.xlu1 %4131  ;;  %4879 = vrsqrt.f32 %v4162_v8  ;;  %v4148_v47 = vmul.f32 0.029411765, %v4130_v46  ;;  %vm4241_vm4 = vcmp.ge.f32.partialorder %v4225_v24, 0.0  ;;  %v4257_v13 = vmul.f32 0.3, %v4225_v24 }
 0x883   :  { %v4149_v49 = vmul.f32 0.029411765, %v4132_v14  ;;  %v4868_v2 = vpop.eup %4867  ;;  %4881 = vrsqrt.f32 %v4163_v12  ;;  %v4206_v0 = vmul.f32 %v7412_v45, %v4186_v36  ;;  %v4207_v18 = vmul.f32 %v7412_v45, %v4187_v41 }
 0x884   :  { %v4870_v56 = vpop.eup %4869  ;;  %v4164_v51 = vadd.f32 1e-05, %v4148_v47  ;;  %v4188_v50 = vmul.f32 %v4868_v2, %v7336_v35  ;;  %v4273_v52 = vsel %vm4241_vm4, %v4225_v24, %v4257_v13 }
 0x885   :  { %v4165_v33 = vadd.f32 1e-05, %v4149_v49  ;;  %v4134_v16 = vpop.xlane.xlu0 %4133  ;;  %v4226_v58 = vadd.f32 %v7416_v19, %v4206_v0  ;;  %v4227_v9 = vadd.f32 %v7416_v19, %v4207_v18  ;;  %v4189_v7 = vmul.f32 %v4870_v56, %v7340_v37  ;;  %4814 = vmatprep.mubr.f32.mxu1 %v4273_v52 }
 0x886   :  { %4883 = vrsqrt.f32 %v4164_v51  ;;  %v4150_v42 = vmul.f32 0.029411765, %v4134_v16  ;;  %v4208_v3 = vmul.f32 %v7412_v45, %v4188_v50 }
 0x887   :  { %v4872_v23 = vpop.eup %4871  ;;  %4885 = vrsqrt.f32 %v4165_v33  ;;  %vm4242_vm6 = vcmp.ge.f32.partialorder %v4226_v58, 0.0  ;;  %v4258_v55 = vmul.f32 0.3, %v4226_v58  ;;  %vm4243_vm8 = vcmp.ge.f32.partialorder %v4227_v9, 0.0 }
 0x888   :  { %v4874_v43 = vpop.eup %4873  ;;  %v4166_v35 = vadd.f32 1e-05, %v4150_v42  ;;  %v4259_v1 = vmul.f32 0.3, %v4227_v9  ;;  %v4228_v11 = vadd.f32 %v7416_v19, %v4208_v3  ;;  %v4209_v34 = vmul.f32 %v7412_v45, %v4189_v7 }
 0x889   :  { %v4274_v10 = vsel %vm4242_vm6, %v4226_v58, %v4258_v55  ;;  %v4190_v37 = vmul.f32 %v4872_v23, %v7350_v28  ;;  %v4191_v38 = vmul.f32 %v4874_v43, %v7354_v48 }
 0x88a   :  { %4887 = vrsqrt.f32 %v4166_v35  ;;  %4815 = vmatmul.mubr.f32.gmra.mxu1 %v4274_v10  ;;  %v4275_v59 = vsel %vm4243_vm8, %v4227_v9, %v4259_v1  ;;  %vm4244_vm13 = vcmp.ge.f32.partialorder %v4228_v11, 0.0  ;;  %v4260_v31 = vmul.f32 0.3, %v4228_v11 }
 0x88b   :  { %v4876_v54 = vpop.eup %4875  ;;  %4817 = vmatprep.mubr.f32.mxu1 %v4275_v59  ;;  %v4229_v26 = vadd.f32 %v7416_v19, %v4209_v34  ;;  %v4210_v20 = vmul.f32 %v7412_v45, %v4190_v37  ;;  %v4211_v61 = vmul.f32 %v7412_v45, %v4191_v38  ;;  %v4305_v34 = vsub.s32 3, %v7207_v6 }
 0x88c   :  { %v4878_v29 = vpop.eup %4877  ;;  %v4276_v21 = vsel %vm4244_vm13, %v4228_v11, %v4260_v31  ;;  %v4192_v32 = vmul.f32 %v4876_v54, %v7364_v30 }
 0x88d   :  { %vm4245_vm7 = vcmp.ge.f32.partialorder %v4229_v26, 0.0  ;;  %v4261_v28 = vmul.f32 0.3, %v4229_v26  ;;  %v4230_v48 = vadd.f32 %v7416_v19, %v4210_v20  ;;  %v4231_v27 = vadd.f32 %v7416_v19, %v4211_v61 }
 0x88e   :  { %4818 = vmatmul.mubr.f32.gmra.mxu1 %v4276_v21  ;;  %v4212_v15 = vmul.f32 %v7412_v45, %v4192_v32  ;;  %v4193_v22 = vmul.f32 %v4878_v29, %v7368_v57  ;;  %v4306_v10 = vrot.slane %v7213_v60, %v4305_v34 }
 0x88f   :  { %v4880_v5 = vpop.eup %4879  ;;  %v4277_v62 = vsel %vm4245_vm7, %v4229_v26, %v4261_v28  ;;  %vm4246_vm9 = vcmp.ge.f32.partialorder %v4230_v48, 0.0  ;;  %v4262_v4 = vmul.f32 0.3, %v4230_v48  ;;  %vm4247_vm10 = vcmp.ge.f32.partialorder %v4231_v27, 0.0 }
 0x890   :  { %v4882_v63 = vpop.eup %4881  ;;  %4820 = vmatprep.mubr.f32.mxu1 %v4277_v62  ;;  %v4263_v40 = vmul.f32 0.3, %v4231_v27  ;;  %v4232_v30 = vadd.f32 %v7416_v19, %v4212_v15  ;;  %v4213_v8 = vmul.f32 %v7412_v45, %v4193_v22  ;;  %v4194_v12 = vmul.f32 %v4880_v5, %v7378_v17 }
 0x891   :  { %v4278_v24 = vsel %vm4246_vm9, %v4230_v48, %v4262_v4  ;;  %v4195_v36 = vmul.f32 %v4882_v63, %v7382_v44 }
 0x892   :  { %4821 = vmatmul.mubr.f32.gmra.mxu1 %v4278_v24  ;;  %v4279_v46 = vsel %vm4247_vm10, %v4231_v27, %v4263_v40  ;;  %vm4248_vm11 = vcmp.ge.f32.partialorder %v4232_v30, 0.0  ;;  %v4264_v57 = vmul.f32 0.3, %v4232_v30  ;;  %v4233_v14 = vadd.f32 %v7416_v19, %v4213_v8 }
 0x893   :  { %v4884_v41 = vpop.eup %4883  ;;  %4823 = vmatprep.mubr.f32.mxu1 %v4279_v46  ;;  %v4214_v47 = vmul.f32 %v7412_v45, %v4194_v12  ;;  %v4215_v49 = vmul.f32 %v7412_v45, %v4195_v36 }
 0x894   :  { %v4886_v2 = vpop.eup %4885  ;;  %v4280_v13 = vsel %vm4248_vm11, %v4232_v30, %v4264_v57  ;;  %vm4249_vm12 = vcmp.ge.f32.partialorder %v4233_v14, 0.0  ;;  %v4265_v0 = vmul.f32 0.3, %v4233_v14  ;;  %v4196_v17 = vmul.f32 %v4884_v41, %v7392_v53 }
 0x895   :  { %v4234_v44 = vadd.f32 %v7416_v19, %v4214_v47  ;;  %v4235_v18 = vadd.f32 %v7416_v19, %v4215_v49  ;;  %v4197_v56 = vmul.f32 %v4886_v2, %v7396_v25 }
 0x896   :  { %4824 = vmatmul.mubr.f32.gmra.mxu1 %v4280_v13  ;;  %v4281_v51 = vsel %vm4249_vm12, %v4233_v14, %v4265_v0  ;;  %v4216_v33 = vmul.f32 %v7412_v45, %v4196_v17 }
 0x897   :  { %v4888_v50 = vpop.eup %4887  ;;  %4826 = vmatprep.mubr.f32.mxu1 %v4281_v51  ;;  %vm4250_vm14 = vcmp.ge.f32.partialorder %v4234_v44, 0.0  ;;  %v4266_v16 = vmul.f32 0.3, %v4234_v44  ;;  %vm4251_vm15 = vcmp.ge.f32.partialorder %v4235_v18, 0.0  ;;  %v4267_v52 = vmul.f32 0.3, %v4235_v18 }
 0x898   :  { %v4236_v58 = vadd.f32 %v7416_v19, %v4216_v33  ;;  %v4217_v53 = vmul.f32 %v7412_v45, %v4197_v56  ;;  %v4198_v9 = vmul.f32 %v4888_v50, %v7405_v39 }
 0x899   :  { %v4282_v7 = vsel %vm4250_vm14, %v4234_v44, %v4266_v16  ;;  %v4283_v42 = vsel %vm4251_vm15, %v4235_v18, %v4267_v52 }
 0x89a   :  { %4827 = vmatmul.mubr.f32.gmra.mxu1 %v4282_v7  ;;  %vm4252_vm0 = vcmp.ge.f32.partialorder %v4236_v58, 0.0  ;;  %v4268_v25 = vmul.f32 0.3, %v4236_v58  ;;  %v4237_v3 = vadd.f32 %v7416_v19, %v4217_v53  ;;  %v4218_v23 = vmul.f32 %v7412_v45, %v4198_v9 }
 0x89b   :  { %4829 = vmatprep.mubr.f32.mxu1 %v4283_v42 }
 0x89c   :  { %v4284_v55 = vsel %vm4252_vm0, %v4236_v58, %v4268_v25  ;;  %vm4253_vm5 = vcmp.ge.f32.partialorder %v4237_v3, 0.0  ;;  %v4269_v43 = vmul.f32 0.3, %v4237_v3  ;;  %v4238_v35 = vadd.f32 %v7416_v19, %v4218_v23 }
 0x89e   :  { %4830 = vmatmul.mubr.f32.gmra.mxu1 %v4284_v55  ;;  %v4285_v1 = vsel %vm4253_vm5, %v4237_v3, %v4269_v43  ;;  %vm4254_vm1 = vcmp.ge.f32.partialorder %v4238_v35, 0.0  ;;  %v4270_v11 = vmul.f32 0.3, %v4238_v35 }
 0x89f   :  { %4832 = vmatprep.mubr.f32.mxu1 %v4285_v1 }
 0x8a0   :  { %v4286_v39 = vsel %vm4254_vm1, %v4238_v35, %v4270_v11 }
 0x8a2   :  { %4833 = vmatmul.mubr.f32.gmra.mxu1 %v4286_v39 }
 0x93e   :  { %v4813_v37 = vpop.f32.mrf.mxu1 }
 0x93f   :  { %v4379_v38 = vadd.f32 %v4813_v37, %v4306_v10 }
 0x940   :  { %v4373_v45 = vpop.f32.mrf.mxu1 }
 0x941   :  { %4453 = vst [vmem:[%s7524_s9 + $0x8] sm:$0xff] %v4379_v38  ;;  %v4374_v59 = vadd.f32 %v4373_v45, %v4306_v10 }
 0x943   :  { %4452 = vst [vmem:[%s7524_s9] sm:$0xff] %v4374_v59 }
 0x94a   :  { %v4816_v19 = vpop.f32.mrf.mxu1 }
 0x94b   :  { %v4389_v31 = vadd.f32 %v4816_v19, %v4306_v10 }
 0x94c   :  { %v4383_v54 = vpop.f32.mrf.mxu1 }
 0x94d   :  { %4455 = vst [vmem:[%s7524_s9 + $0x18] sm:$0xff] %v4389_v31  ;;  %v4384_v6 = vadd.f32 %v4383_v54, %v4306_v10 }
 0x94e   :  { %v4819_v60 = vpop.f32.mrf.mxu1 }
 0x94f   :  { %4454 = vst [vmem:[%s7524_s9 + $0x10] sm:$0xff] %v4384_v6  ;;  %v4399_v26 = vadd.f32 %v4819_v60, %v4306_v10 }
 0x950   :  { %v4393_v20 = vpop.f32.mrf.mxu1 }
 0x951   :  { %4457 = vst [vmem:[%s7524_s9 + $0x28] sm:$0xff] %v4399_v26  ;;  %v4394_v61 = vadd.f32 %v4393_v20, %v4306_v10 }
 0x952   :  { %v4822_v29 = vpop.f32.mrf.mxu1 }
 0x953   :  { %4456 = vst [vmem:[%s7524_s9 + $0x20] sm:$0xff] %v4394_v61  ;;  %v4409_v21 = vadd.f32 %v4822_v29, %v4306_v10 }
 0x954   :  { %v4403_v32 = vpop.f32.mrf.mxu1 }
 0x955   :  { %4459 = vst [vmem:[%s7524_s9 + $0x38] sm:$0xff] %v4409_v21  ;;  %v4404_v28 = vadd.f32 %v4403_v32, %v4306_v10 }
 0x956   :  { %v4825_v48 = vpop.f32.mrf.mxu1 }
 0x957   :  { %4458 = vst [vmem:[%s7524_s9 + $0x30] sm:$0xff] %v4404_v28  ;;  %v4419_v27 = vadd.f32 %v4825_v48, %v4306_v10 }
 0x958   :  { %v4413_v15 = vpop.f32.mrf.mxu1 }
 0x959   :  { %4461 = vst [vmem:[%s7524_s9 + $0x48] sm:$0xff] %v4419_v27  ;;  %v4414_v22 = vadd.f32 %v4413_v15, %v4306_v10 }
 0x95a   :  { %v4828_v5 = vpop.f32.mrf.mxu1 }
 0x95b   :  { %4460 = vst [vmem:[%s7524_s9 + $0x40] sm:$0xff] %v4414_v22  ;;  %v4429_v62 = vadd.f32 %v4828_v5, %v4306_v10 }
 0x95c   :  { %v4423_v4 = vpop.f32.mrf.mxu1 }
 0x95d   :  { %4463 = vst [vmem:[%s7524_s9 + $0x58] sm:$0xff] %v4429_v62  ;;  %v4424_v63 = vadd.f32 %v4423_v4, %v4306_v10 }
 0x95e   :  { %v4831_v40 = vpop.f32.mrf.mxu1 }
 0x95f   :  { %4462 = vst [vmem:[%s7524_s9 + $0x50] sm:$0xff] %v4424_v63  ;;  %v4439_v30 = vadd.f32 %v4831_v40, %v4306_v10 }
 0x960   :  { %v4433_v8 = vpop.f32.mrf.mxu1 }
 0x961   :  { %4465 = vst [vmem:[%s7524_s9 + $0x68] sm:$0xff] %v4439_v30  ;;  %v4434_v12 = vadd.f32 %v4433_v8, %v4306_v10 }
 0x962   :  { %v4834_v24 = vpop.f32.mrf.mxu1 }
 0x963   :  { %4464 = vst [vmem:[%s7524_s9 + $0x60] sm:$0xff] %v4434_v12  ;;  %v4449_v36 = vadd.f32 %v4834_v24, %v4306_v10 }
 0x964   :  { %v4443_v46 = vpop.f32.mrf.mxu1 }
 0x965   :  { %4467 = vst [vmem:[%s7524_s9 + $0x78] sm:$0xff] %v4449_v36  ;;  %v4444_v57 = vadd.f32 %v4443_v46, %v4306_v10 }
 0x967   :  { %4466 = vst [vmem:[%s7524_s9 + $0x70] sm:$0xff] %v4444_v57 }
 0x968   :  { %4472 = vsyncpa [#allocation3], 1 }
 0x969   :  { %4473 = vsyncpa [#allocation5], 1 }
 0x96a   :  { %4474 = vsyncpa [#allocation8], 1 }

</bundles_post_ra>
